<compile_context>
chip_gen: v5e
topology: v5e:2x2
jax: 0.10.0
libtpu: 0.0.40
codegen_flags: <defaults>
</compile_context>

<pallas_src>
import functools
import math

import jax
import jax.numpy as jnp
import numpy as np
from jax import lax
from jax.experimental import pallas as pl
from jax.experimental.pallas import tpu as pltpu

LN_EPS = 1e-5  # PyTorch nn.LayerNorm default eps


def _layernorm(y, g, b):
    mu = jnp.mean(y, axis=-1, keepdims=True)
    var = jnp.mean((y - mu) ** 2, axis=-1, keepdims=True)
    return (y - mu) * lax.rsqrt(var + LN_EPS) * g + b


def slot_attention_kernel(
    x_ref, slots0_ref,
    wq_ref, bq_ref, wkv_ref, bkv_ref,
    wih_ref, whh_ref, bih_ref, bhh_ref,
    w1_ref, b1_ref, w2_ref, b2_ref,
    gin_ref, betain_ref, gsl_ref, betasl_ref, gmlp_ref, betamlp_ref,
    out_ref,
    *, iters, eps):
    BB, N, E = x_ref.shape
    K = slots0_ref.shape[1]
    E2 = 2 * E

    # ---- hoist all loop-invariant parameter reads (the iteration loop is
    #      fully unrolled; JAX does not CSE repeated ref loads) ----
    wq, bq = wq_ref[...], bq_ref[...]            # query scale already folded in
    w_ih, w_hh = wih_ref[...], whh_ref[...]
    b_ih, b_hh = bih_ref[...], bhh_ref[...]
    w1, b1 = w1_ref[...], b1_ref[...]
    w2, b2 = w2_ref[...], b2_ref[...]
    gsl, betasl = gsl_ref[...], betasl_ref[...]
    gmlp, betamlp = gmlp_ref[...], betamlp_ref[...]

    # ---- layout-free batch stacking along the row (sublane) axis ----
    x2 = x_ref[...].astype(jnp.float32).reshape(BB * N, E)           # (BB*N, E)
    slots = slots0_ref[...].astype(jnp.float32).reshape(BB * K, E)   # (BB*K, E)

    # ---- once per call: input LayerNorm + fused k|v projection ----
    xn = _layernorm(x2, gin_ref[...], betain_ref[...])
    kv = jnp.dot(xn, wkv_ref[...], preferred_element_type=jnp.float32) + bkv_ref[...]
    k3 = kv[:, :E].reshape(BB, N, E)                                  # (BB, N, E)
    v3 = kv[:, E:].reshape(BB, N, E)                                  # (BB, N, E)

    for _ in range(iters):
        slots_prev = slots

        sn = _layernorm(slots, gsl, betasl)
        q = jnp.dot(sn, wq, preferred_element_type=jnp.float32) + bq  # (BB*K, E)

        # ---- attention in lane-dense (K, N) layout, batched over BB ----
        q3 = q.reshape(BB, K, E)
        logits = lax.dot_general(                                     # (BB, K, N)
            q3, k3, (((2,), (2,)), ((0,), (0,))),
            preferred_element_type=jnp.float32)
        logits = logits - jnp.max(logits, axis=1, keepdims=True)
        p = jnp.exp(logits)
        attn = p * pl.reciprocal(jnp.sum(p, axis=1, keepdims=True),
                                 approx=True) + eps                   # softmax over K
        attn_n = attn * pl.reciprocal(jnp.sum(attn, axis=2, keepdims=True),
                                      approx=True)                    # renorm over N
        updates = lax.dot_general(                                    # (BB, K, E)
            attn_n, v3, (((2,), (1,)), ((0,), (0,))),
            preferred_element_type=jnp.float32).reshape(BB * K, E)

        # ---- GRUCell, fused gate matmuls (PyTorch gate order r, z, n) ----
        gi = jnp.dot(updates, w_ih, preferred_element_type=jnp.float32) + b_ih     # (BB*K, 3E)
        gh = jnp.dot(slots_prev, w_hh, preferred_element_type=jnp.float32) + b_hh  # (BB*K, 3E)
        rz = jax.nn.sigmoid(gi[:, :E2] + gh[:, :E2])   # one 2E-lane sigmoid for r and z
        r = rz[:, :E]
        z = rz[:, E:]
        n = jnp.tanh(gi[:, E2:] + r * gh[:, E2:])
        slots = (1.0 - z) * n + z * slots_prev

        # ---- residual MLP: slots + W2(relu(W1(LN(slots)))) ----
        sm = _layernorm(slots, gmlp, betamlp)
        h = jnp.maximum(jnp.dot(sm, w1, preferred_element_type=jnp.float32) + b1, 0.0)
        slots = slots + jnp.dot(h, w2, preferred_element_type=jnp.float32) + b2

    # ---- single bulk store ----
    out_ref[...] = slots.reshape(BB, K, E).astype(out_ref.dtype)


KERNEL_PARAM_ORDER = (
    "wq", "bq", "wkv", "bkv",
    "w_ih", "w_hh", "b_ih", "b_hh",
    "w1", "b1", "w2", "b2",
    "gin", "betain", "gsl", "betasl", "gmlp", "betamlp",
)


def prepare_kernel_params(params):
    """One-time prep: fold the E**-0.5 query scale into wq/bq and pre-concat
    the fused k|v projection. mu/sigma are consumed by make_slots_init."""
    E = params["wq"].shape[0]
    scale = float(E) ** -0.5
    kp = {name: params[name] for name in KERNEL_PARAM_ORDER if name in params}
    kp["wq"] = params["wq"] * scale
    kp["bq"] = params["bq"] * scale
    kp["wkv"] = jnp.concatenate([params["wk"], params["wv"]], axis=1)   # (E, 2E)
    kp["bkv"] = jnp.concatenate([params["bk"], params["bv"]], axis=1)   # (1, 2E)
    return kp


def make_slots_init(params, noise):
    """slots0 = mu + noise * sigma, computed outside the kernel (XLA fuses it)."""
    return params["mu"][None] + noise * params["sigma"][None]


def _default_batch_block(B, K):
    """Target BB*K ~ 256 MXU rows while keeping >= 2 grid steps (megacore +
    DMA/compute overlap); returns the largest divisor of B under that cap."""
    if B < 2:
        return max(B, 1)
    cap = min(B // 2, max(1, 256 // max(K, 1)))
    bb = 1
    for d in range(1, cap + 1):
        if B % d == 0:
            bb = d
    return bb


def _padded_f32_bytes(shape):
    """f32 VMEM footprint of a block with (8,128) padding on the last two dims."""
    if len(shape) == 0:
        return 4
    if len(shape) == 1:
        lead, r, c = 1, 1, shape[0]
    else:
        lead = int(math.prod(shape[:-2])) if len(shape) > 2 else 1
        r, c = shape[-2], shape[-1]
    return lead * (-(-r // 8) * 8) * (-(-c // 128) * 128) * 4


def slot_sampler_forward(x, slots0, kernel_params, iters=3, eps=1e-8,
                         batch_block=None):
    B, N, E = x.shape
    K = slots0.shape[1]
    if batch_block is None:
        batch_block = _default_batch_block(B, K)
    assert B % batch_block == 0, (B, batch_block)
    grid = (B // batch_block,)

    param_list = [kernel_params[name] for name in KERNEL_PARAM_ORDER]

    def const_spec(p):
        return pl.BlockSpec(p.shape, lambda g, _nd=p.ndim: (0,) * _nd)

    in_specs = [
        pl.BlockSpec((batch_block, N, E), lambda g: (g, 0, 0)),   # x
        pl.BlockSpec((batch_block, K, E), lambda g: (g, 0, 0)),   # slots0
    ] + [const_spec(p) for p in param_list]

    # Explicit VMEM budget: double-buffered x/slots0/out blocks + resident
    # params + headroom for intermediates; capped to fit v7x's 64 MiB VMEM.
    block_bytes = (2 * (_padded_f32_bytes((batch_block, N, E))
                        + 2 * _padded_f32_bytes((batch_block, K, E)))
                   + sum(_padded_f32_bytes(p.shape) for p in param_list))
    vmem_limit = int(min(56 << 20, max(32 << 20, 4 * block_bytes)))

    # Advisory cost estimate for XLA scheduling around the custom call.
    flops = 2 * B * (N * E * 2 * E
                     + iters * (K * E * E + 2 * K * N * E
                                + 2 * K * E * 3 * E + 2 * K * E * 2 * E))
    transcendentals = B * (N + iters * (K * N + 3 * K * E + 3 * K))
    bytes_accessed = 4 * (B * N * E + 2 * B * K * E
                          + sum(int(math.prod(p.shape)) for p in param_list))

    kernel = functools.partial(slot_attention_kernel, iters=iters, eps=eps)

    return pl.pallas_call(
        kernel,
        out_shape=jax.ShapeDtypeStruct((B, K, E), x.dtype),
        grid=grid,
        in_specs=in_specs,
        out_specs=pl.BlockSpec((batch_block, K, E), lambda g: (g, 0, 0)),
        compiler_params=pltpu.CompilerParams(
            dimension_semantics=("parallel",),
            vmem_limit_bytes=vmem_limit),
        cost_estimate=pl.CostEstimate(flops=flops,
                                      transcendentals=transcendentals,
                                      bytes_accessed=bytes_accessed),
    )(x, slots0, *param_list)


def init_params(key, E, K):
    ks = jax.random.split(key, 8)

    def linear(k, fan_in, fan_out):
        bound = 1.0 / math.sqrt(fan_in)
        kw, kb = jax.random.split(k)
        W = jax.random.uniform(kw, (fan_in, fan_out), jnp.float32, -bound, bound)
        b = jax.random.uniform(kb, (1, fan_out), jnp.float32, -bound, bound)
        return W, b

    params = {}
    params["mu"] = jax.random.normal(ks[0], (K, E), jnp.float32)
    params["sigma"] = jnp.abs(jax.random.normal(ks[1], (K, E), jnp.float32))
    params["wq"], params["bq"] = linear(ks[2], E, E)
    params["wk"], params["bk"] = linear(ks[3], E, E)
    params["wv"], params["bv"] = linear(ks[4], E, E)

    # GRUCell params, PyTorch gate order (r, z, n), stored transposed (in, 3E).
    bound = 1.0 / math.sqrt(E)
    kih, khh, kbih, kbhh = jax.random.split(ks[5], 4)
    params["w_ih"] = jax.random.uniform(kih, (E, 3 * E), jnp.float32, -bound, bound)
    params["w_hh"] = jax.random.uniform(khh, (E, 3 * E), jnp.float32, -bound, bound)
    params["b_ih"] = jax.random.uniform(kbih, (1, 3 * E), jnp.float32, -bound, bound)
    params["b_hh"] = jax.random.uniform(kbhh, (1, 3 * E), jnp.float32, -bound, bound)

    params["w1"], params["b1"] = linear(ks[6], E, 2 * E)
    params["w2"], params["b2"] = linear(ks[7], 2 * E, E)

    # LayerNorm affine params (PyTorch default init: gamma=1, beta=0)
    for name in ("gin", "gsl", "gmlp"):
        params[name] = jnp.ones((1, E), jnp.float32)
    for name in ("betain", "betasl", "betamlp"):
        params[name] = jnp.zeros((1, E), jnp.float32)
    return params


def slot_sampler_ref(x, noise, params, iters=3, eps=1e-8):
    """Pure-JAX reference mirroring the PyTorch forward exactly."""
    def ln(y, g, b):
        mu = jnp.mean(y, axis=-1, keepdims=True)
        var = jnp.mean((y - mu) ** 2, axis=-1, keepdims=True)
        return (y - mu) / jnp.sqrt(var + LN_EPS) * g + b

    B, N, E = x.shape
    xn = ln(x, params["gin"], params["betain"])
    k = xn @ params["wk"] + params["bk"]
    v = xn @ params["wv"] + params["bv"]
    slots = params["mu"][None] + noise * params["sigma"][None]
    scale = float(E) ** -0.5
    for _ in range(iters):
        slots_prev = slots
        sn = ln(slots, params["gsl"], params["betasl"])
        q = (sn @ params["wq"] + params["bq"]) * scale
        logits = jnp.einsum("bne,bke->bnk", k, q)
        attn = jax.nn.softmax(logits, axis=-1) + eps
        attn_norm = attn / jnp.sum(attn, axis=1, keepdims=True)
        updates = jnp.einsum("bnk,bne->bke", attn_norm, v)
        gi = updates @ params["w_ih"] + params["b_ih"]
        gh = slots_prev @ params["w_hh"] + params["b_hh"]
        r = jax.nn.sigmoid(gi[..., :E] + gh[..., :E])
        z = jax.nn.sigmoid(gi[..., E:2 * E] + gh[..., E:2 * E])
        n = jnp.tanh(gi[..., 2 * E:] + r * gh[..., 2 * E:])
        slots = (1.0 - z) * n + z * slots_prev
        sm = ln(slots, params["gmlp"], params["betamlp"])
        h = jnp.maximum(sm @ params["w1"] + params["b1"], 0.0)
        slots = slots + h @ params["w2"] + params["b2"]
    return slots


if __name__ == "__main__":
    B, N, E, K, ITERS = 4, 128, 32, 8, 3

    key = jax.random.PRNGKey(0)
    kx, knoise, kparams = jax.random.split(key, 3)
    x = jax.random.normal(kx, (B, N, E), jnp.float32)
    noise = jax.random.normal(knoise, (B, K, E), jnp.float32)
    params = init_params(kparams, E, K)
    kernel_params = prepare_kernel_params(params)
    slots0 = make_slots_init(params, noise)

    ref = slot_sampler_ref(x, noise, params, iters=ITERS, eps=1e-8)

    # Default tiling: batch_block=2 -> grid=2 ("parallel"), BB>1 batched
    # dot_general path exercised.
    out = slot_sampler_forward(x, slots0, kernel_params, iters=ITERS, eps=1e-8)
    out = jax.block_until_ready(out)
    assert out.shape == (B, K, E), out.shape
    np.testing.assert_allclose(np.asarray(out), np.asarray(ref), rtol=2e-2, atol=5e-3)

    # Per-batch tiling (grid=B, BB=1) also exercised.
    out1 = slot_sampler_forward(x, slots0, kernel_params, iters=ITERS, eps=1e-8,
                                batch_block=1)
    out1 = jax.block_until_ready(out1)
    np.testing.assert_allclose(np.asarray(out1), np.asarray(ref), rtol=2e-2, atol=5e-3)

    print("KERNEL_OK")
</pallas_src>

<mosaic_0001>
module attributes {stable_mosaic.version = 11 : i64} {
  func.func @slot_attention_kernel(%arg0: i32, %arg1: memref<2x128x32xf32, #tpu.memory_space<vmem>>, %arg2: memref<2x8x32xf32, #tpu.memory_space<vmem>>, %arg3: memref<32x32xf32, #tpu.memory_space<vmem>>, %arg4: memref<1x32xf32, #tpu.memory_space<vmem>>, %arg5: memref<32x64xf32, #tpu.memory_space<vmem>>, %arg6: memref<1x64xf32, #tpu.memory_space<vmem>>, %arg7: memref<32x96xf32, #tpu.memory_space<vmem>>, %arg8: memref<32x96xf32, #tpu.memory_space<vmem>>, %arg9: memref<1x96xf32, #tpu.memory_space<vmem>>, %arg10: memref<1x96xf32, #tpu.memory_space<vmem>>, %arg11: memref<32x64xf32, #tpu.memory_space<vmem>>, %arg12: memref<1x64xf32, #tpu.memory_space<vmem>>, %arg13: memref<64x32xf32, #tpu.memory_space<vmem>>, %arg14: memref<1x32xf32, #tpu.memory_space<vmem>>, %arg15: memref<1x32xf32, #tpu.memory_space<vmem>>, %arg16: memref<1x32xf32, #tpu.memory_space<vmem>>, %arg17: memref<1x32xf32, #tpu.memory_space<vmem>>, %arg18: memref<1x32xf32, #tpu.memory_space<vmem>>, %arg19: memref<1x32xf32, #tpu.memory_space<vmem>>, %arg20: memref<1x32xf32, #tpu.memory_space<vmem>>, %arg21: memref<2x8x32xf32, #tpu.memory_space<vmem>>) attributes {dimension_semantics = [#tpu.dimension_semantics<parallel>], iteration_bounds = array<i64: 2>, scalar_prefetch = 0 : i64, scratch_operands = 0 : i64, tpu.core_type = #tpu.core_type<tc>, window_params = [{transform_indices = @transform_0, window_bounds = array<i64: 2, 128, 32>}, {transform_indices = @transform_1, window_bounds = array<i64: 2, 8, 32>}, {pipeline_mode = #tpu.pipeline_mode<synchronous>, transform_indices = @transform_2, window_bounds = array<i64: 32, 32>}, {pipeline_mode = #tpu.pipeline_mode<synchronous>, transform_indices = @transform_3, window_bounds = array<i64: 1, 32>}, {pipeline_mode = #tpu.pipeline_mode<synchronous>, transform_indices = @transform_4, window_bounds = array<i64: 32, 64>}, {pipeline_mode = #tpu.pipeline_mode<synchronous>, transform_indices = @transform_5, window_bounds = array<i64: 1, 64>}, {pipeline_mode = #tpu.pipeline_mode<synchronous>, transform_indices = @transform_6, window_bounds = array<i64: 32, 96>}, {pipeline_mode = #tpu.pipeline_mode<synchronous>, transform_indices = @transform_7, window_bounds = array<i64: 32, 96>}, {pipeline_mode = #tpu.pipeline_mode<synchronous>, transform_indices = @transform_8, window_bounds = array<i64: 1, 96>}, {pipeline_mode = #tpu.pipeline_mode<synchronous>, transform_indices = @transform_9, window_bounds = array<i64: 1, 96>}, {pipeline_mode = #tpu.pipeline_mode<synchronous>, transform_indices = @transform_10, window_bounds = array<i64: 32, 64>}, {pipeline_mode = #tpu.pipeline_mode<synchronous>, transform_indices = @transform_11, window_bounds = array<i64: 1, 64>}, {pipeline_mode = #tpu.pipeline_mode<synchronous>, transform_indices = @transform_12, window_bounds = array<i64: 64, 32>}, {pipeline_mode = #tpu.pipeline_mode<synchronous>, transform_indices = @transform_13, window_bounds = array<i64: 1, 32>}, {pipeline_mode = #tpu.pipeline_mode<synchronous>, transform_indices = @transform_14, window_bounds = array<i64: 1, 32>}, {pipeline_mode = #tpu.pipeline_mode<synchronous>, transform_indices = @transform_15, window_bounds = array<i64: 1, 32>}, {pipeline_mode = #tpu.pipeline_mode<synchronous>, transform_indices = @transform_16, window_bounds = array<i64: 1, 32>}, {pipeline_mode = #tpu.pipeline_mode<synchronous>, transform_indices = @transform_17, window_bounds = array<i64: 1, 32>}, {pipeline_mode = #tpu.pipeline_mode<synchronous>, transform_indices = @transform_18, window_bounds = array<i64: 1, 32>}, {pipeline_mode = #tpu.pipeline_mode<synchronous>, transform_indices = @transform_19, window_bounds = array<i64: 1, 32>}, {transform_indices = @transform_20, window_bounds = array<i64: 2, 8, 32>}]} {
    %c0 = arith.constant 0 : index
    %c0_0 = arith.constant 0 : index
    %0 = vector.load %arg3[%c0, %c0_0] : memref<32x32xf32, #tpu.memory_space<vmem>>, vector<32x32xf32>
    %c0_1 = arith.constant 0 : index
    %c0_2 = arith.constant 0 : index
    %1 = vector.load %arg4[%c0_1, %c0_2] : memref<1x32xf32, #tpu.memory_space<vmem>>, vector<1x32xf32>
    %c0_3 = arith.constant 0 : index
    %c0_4 = arith.constant 0 : index
    %2 = vector.load %arg7[%c0_3, %c0_4] : memref<32x96xf32, #tpu.memory_space<vmem>>, vector<32x96xf32>
    %c0_5 = arith.constant 0 : index
    %c0_6 = arith.constant 0 : index
    %3 = vector.load %arg8[%c0_5, %c0_6] : memref<32x96xf32, #tpu.memory_space<vmem>>, vector<32x96xf32>
    %c0_7 = arith.constant 0 : index
    %c0_8 = arith.constant 0 : index
    %4 = vector.load %arg9[%c0_7, %c0_8] : memref<1x96xf32, #tpu.memory_space<vmem>>, vector<1x96xf32>
    %c0_9 = arith.constant 0 : index
    %c0_10 = arith.constant 0 : index
    %5 = vector.load %arg10[%c0_9, %c0_10] : memref<1x96xf32, #tpu.memory_space<vmem>>, vector<1x96xf32>
    %c0_11 = arith.constant 0 : index
    %c0_12 = arith.constant 0 : index
    %6 = vector.load %arg11[%c0_11, %c0_12] : memref<32x64xf32, #tpu.memory_space<vmem>>, vector<32x64xf32>
    %c0_13 = arith.constant 0 : index
    %c0_14 = arith.constant 0 : index
    %7 = vector.load %arg12[%c0_13, %c0_14] : memref<1x64xf32, #tpu.memory_space<vmem>>, vector<1x64xf32>
    %c0_15 = arith.constant 0 : index
    %c0_16 = arith.constant 0 : index
    %8 = vector.load %arg13[%c0_15, %c0_16] : memref<64x32xf32, #tpu.memory_space<vmem>>, vector<64x32xf32>
    %c0_17 = arith.constant 0 : index
    %c0_18 = arith.constant 0 : index
    %9 = vector.load %arg14[%c0_17, %c0_18] : memref<1x32xf32, #tpu.memory_space<vmem>>, vector<1x32xf32>
    %c0_19 = arith.constant 0 : index
    %c0_20 = arith.constant 0 : index
    %10 = vector.load %arg17[%c0_19, %c0_20] : memref<1x32xf32, #tpu.memory_space<vmem>>, vector<1x32xf32>
    %c0_21 = arith.constant 0 : index
    %c0_22 = arith.constant 0 : index
    %11 = vector.load %arg18[%c0_21, %c0_22] : memref<1x32xf32, #tpu.memory_space<vmem>>, vector<1x32xf32>
    %c0_23 = arith.constant 0 : index
    %c0_24 = arith.constant 0 : index
    %12 = vector.load %arg19[%c0_23, %c0_24] : memref<1x32xf32, #tpu.memory_space<vmem>>, vector<1x32xf32>
    %c0_25 = arith.constant 0 : index
    %c0_26 = arith.constant 0 : index
    %13 = vector.load %arg20[%c0_25, %c0_26] : memref<1x32xf32, #tpu.memory_space<vmem>>, vector<1x32xf32>
    %c0_27 = arith.constant 0 : index
    %c0_28 = arith.constant 0 : index
    %c0_29 = arith.constant 0 : index
    %14 = vector.load %arg1[%c0_27, %c0_28, %c0_29] : memref<2x128x32xf32, #tpu.memory_space<vmem>>, vector<2x128x32xf32>
    %15 = vector.shape_cast %14 : vector<2x128x32xf32> to vector<256x32xf32>
    %c0_30 = arith.constant 0 : index
    %c0_31 = arith.constant 0 : index
    %c0_32 = arith.constant 0 : index
    %16 = vector.load %arg2[%c0_30, %c0_31, %c0_32] : memref<2x8x32xf32, #tpu.memory_space<vmem>>, vector<2x8x32xf32>
    %17 = vector.shape_cast %16 : vector<2x8x32xf32> to vector<16x32xf32>
    %c0_33 = arith.constant 0 : index
    %c0_34 = arith.constant 0 : index
    %18 = vector.load %arg15[%c0_33, %c0_34] : memref<1x32xf32, #tpu.memory_space<vmem>>, vector<1x32xf32>
    %c0_35 = arith.constant 0 : index
    %c0_36 = arith.constant 0 : index
    %19 = vector.load %arg16[%c0_35, %c0_36] : memref<1x32xf32, #tpu.memory_space<vmem>>, vector<1x32xf32>
    %cst = arith.constant dense<0.000000e+00> : vector<256xf32>
    %20 = vector.multi_reduction <add>, %15, %cst [1] : vector<256x32xf32> to vector<256xf32>
    %21 = vector.shape_cast %20 : vector<256xf32> to vector<256x1xf32>
    %cst_37 = arith.constant 3.200000e+01 : f32
    %22 = vector.broadcast %cst_37 : f32 to vector<256x1xf32>
    %23 = arith.divf %21, %22 : vector<256x1xf32>
    %24 = vector.broadcast %23 : vector<256x1xf32> to vector<256x32xf32>
    %25 = arith.subf %15, %24 : vector<256x32xf32>
    %26 = arith.mulf %25, %25 : vector<256x32xf32>
    %cst_38 = arith.constant dense<0.000000e+00> : vector<256xf32>
    %27 = vector.multi_reduction <add>, %26, %cst_38 [1] : vector<256x32xf32> to vector<256xf32>
    %28 = vector.shape_cast %27 : vector<256xf32> to vector<256x1xf32>
    %cst_39 = arith.constant 3.200000e+01 : f32
    %29 = vector.broadcast %cst_39 : f32 to vector<256x1xf32>
    %30 = arith.divf %28, %29 : vector<256x1xf32>
    %31 = vector.broadcast %23 : vector<256x1xf32> to vector<256x32xf32>
    %32 = arith.subf %15, %31 : vector<256x32xf32>
    %cst_40 = arith.constant 9.99999974E-6 : f32
    %33 = vector.broadcast %cst_40 : f32 to vector<256x1xf32>
    %34 = arith.addf %30, %33 : vector<256x1xf32>
    %35 = math.rsqrt %34 : vector<256x1xf32>
    %36 = vector.broadcast %35 : vector<256x1xf32> to vector<256x32xf32>
    %37 = arith.mulf %32, %36 : vector<256x32xf32>
    %38 = vector.broadcast %18 : vector<1x32xf32> to vector<256x32xf32>
    %39 = arith.mulf %37, %38 : vector<256x32xf32>
    %40 = vector.broadcast %19 : vector<1x32xf32> to vector<256x32xf32>
    %41 = arith.addf %39, %40 : vector<256x32xf32>
    %c0_41 = arith.constant 0 : index
    %c0_42 = arith.constant 0 : index
    %42 = vector.load %arg5[%c0_41, %c0_42] : memref<32x64xf32, #tpu.memory_space<vmem>>, vector<32x64xf32>
    %cst_43 = arith.constant dense<0.000000e+00> : vector<256x64xf32>
    %43 = tpu.matmul %41, %42, %cst_43 {dimension_numbers = #tpu.dot_dimension_numbers<[1], [0], [0], [1], [0, 0, 1, 1], [], []>} : vector<256x32xf32>, vector<32x64xf32>, vector<256x64xf32> -> vector<256x64xf32>
    %c0_44 = arith.constant 0 : index
    %c0_45 = arith.constant 0 : index
    %44 = vector.load %arg6[%c0_44, %c0_45] : memref<1x64xf32, #tpu.memory_space<vmem>>, vector<1x64xf32>
    %45 = vector.broadcast %44 : vector<1x64xf32> to vector<256x64xf32>
    %46 = arith.addf %43, %45 : vector<256x64xf32>
    %47 = vector.extract_strided_slice %46 {offsets = [0, 0], sizes = [256, 32], strides = [1, 1]} : vector<256x64xf32> to vector<256x32xf32>
    %48 = vector.shape_cast %47 : vector<256x32xf32> to vector<2x128x32xf32>
    %49 = vector.extract_strided_slice %46 {offsets = [0, 32], sizes = [256, 32], strides = [1, 1]} : vector<256x64xf32> to vector<256x32xf32>
    %50 = vector.shape_cast %49 : vector<256x32xf32> to vector<2x128x32xf32>
    %cst_46 = arith.constant dense<0.000000e+00> : vector<16xf32>
    %51 = vector.multi_reduction <add>, %17, %cst_46 [1] : vector<16x32xf32> to vector<16xf32>
    %52 = vector.shape_cast %51 : vector<16xf32> to vector<16x1xf32>
    %cst_47 = arith.constant 3.200000e+01 : f32
    %53 = vector.broadcast %cst_47 : f32 to vector<16x1xf32>
    %54 = arith.divf %52, %53 : vector<16x1xf32>
    %55 = vector.broadcast %54 : vector<16x1xf32> to vector<16x32xf32>
    %56 = arith.subf %17, %55 : vector<16x32xf32>
    %57 = arith.mulf %56, %56 : vector<16x32xf32>
    %cst_48 = arith.constant dense<0.000000e+00> : vector<16xf32>
    %58 = vector.multi_reduction <add>, %57, %cst_48 [1] : vector<16x32xf32> to vector<16xf32>
    %59 = vector.shape_cast %58 : vector<16xf32> to vector<16x1xf32>
    %cst_49 = arith.constant 3.200000e+01 : f32
    %60 = vector.broadcast %cst_49 : f32 to vector<16x1xf32>
    %61 = arith.divf %59, %60 : vector<16x1xf32>
    %62 = vector.broadcast %54 : vector<16x1xf32> to vector<16x32xf32>
    %63 = arith.subf %17, %62 : vector<16x32xf32>
    %cst_50 = arith.constant 9.99999974E-6 : f32
    %64 = vector.broadcast %cst_50 : f32 to vector<16x1xf32>
    %65 = arith.addf %61, %64 : vector<16x1xf32>
    %66 = math.rsqrt %65 : vector<16x1xf32>
    %67 = vector.broadcast %66 : vector<16x1xf32> to vector<16x32xf32>
    %68 = arith.mulf %63, %67 : vector<16x32xf32>
    %69 = vector.broadcast %10 : vector<1x32xf32> to vector<16x32xf32>
    %70 = arith.mulf %68, %69 : vector<16x32xf32>
    %71 = vector.broadcast %11 : vector<1x32xf32> to vector<16x32xf32>
    %72 = arith.addf %70, %71 : vector<16x32xf32>
    %cst_51 = arith.constant dense<0.000000e+00> : vector<16x32xf32>
    %73 = tpu.matmul %72, %0, %cst_51 {dimension_numbers = #tpu.dot_dimension_numbers<[1], [0], [0], [1], [0, 0, 1, 1], [], []>} : vector<16x32xf32>, vector<32x32xf32>, vector<16x32xf32> -> vector<16x32xf32>
    %74 = vector.broadcast %1 : vector<1x32xf32> to vector<16x32xf32>
    %75 = arith.addf %73, %74 : vector<16x32xf32>
    %76 = vector.shape_cast %75 : vector<16x32xf32> to vector<2x8x32xf32>
    %cst_52 = arith.constant dense<0.000000e+00> : vector<2x8x128xf32>
    %77 = tpu.matmul %76, %48, %cst_52 {dimension_numbers = #tpu.dot_dimension_numbers<[2], [2], [1], [1], [0, 0, 0, 1, 1, 1], [0], [0]>} : vector<2x8x32xf32>, vector<2x128x32xf32>, vector<2x8x128xf32> -> vector<2x8x128xf32>
    %cst_53 = arith.constant dense<0xFF800000> : vector<2x128xf32>
    %78 = vector.multi_reduction <maximumf>, %77, %cst_53 [1] : vector<2x8x128xf32> to vector<2x128xf32>
    %79 = vector.shape_cast %78 : vector<2x128xf32> to vector<2x1x128xf32>
    %80 = vector.broadcast %79 : vector<2x1x128xf32> to vector<2x8x128xf32>
    %81 = arith.subf %77, %80 : vector<2x8x128xf32>
    %82 = math.exp %81 : vector<2x8x128xf32>
    %cst_54 = arith.constant dense<0.000000e+00> : vector<2x128xf32>
    %83 = vector.multi_reduction <add>, %82, %cst_54 [1] : vector<2x8x128xf32> to vector<2x128xf32>
    %84 = vector.shape_cast %83 : vector<2x128xf32> to vector<2x1x128xf32>
    %85 = tpu.reciprocal %84 {approx = true} : vector<2x1x128xf32> -> vector<2x1x128xf32>
    %86 = vector.broadcast %85 : vector<2x1x128xf32> to vector<2x8x128xf32>
    %87 = arith.mulf %82, %86 : vector<2x8x128xf32>
    %cst_55 = arith.constant 9.99999993E-9 : f32
    %88 = vector.broadcast %cst_55 : f32 to vector<2x8x128xf32>
    %89 = arith.addf %87, %88 : vector<2x8x128xf32>
    %cst_56 = arith.constant dense<0.000000e+00> : vector<2x8xf32>
    %90 = vector.multi_reduction <add>, %89, %cst_56 [2] : vector<2x8x128xf32> to vector<2x8xf32>
    %91 = vector.shape_cast %90 : vector<2x8xf32> to vector<2x8x1xf32>
    %92 = tpu.reciprocal %91 {approx = true} : vector<2x8x1xf32> -> vector<2x8x1xf32>
    %93 = vector.broadcast %92 : vector<2x8x1xf32> to vector<2x8x128xf32>
    %94 = arith.mulf %89, %93 : vector<2x8x128xf32>
    %cst_57 = arith.constant dense<0.000000e+00> : vector<2x8x32xf32>
    %95 = tpu.matmul %94, %50, %cst_57 {dimension_numbers = #tpu.dot_dimension_numbers<[2], [1], [1], [2], [0, 0, 0, 1, 1, 2], [0], [0]>} : vector<2x8x128xf32>, vector<2x128x32xf32>, vector<2x8x32xf32> -> vector<2x8x32xf32>
    %96 = vector.shape_cast %95 : vector<2x8x32xf32> to vector<16x32xf32>
    %cst_58 = arith.constant dense<0.000000e+00> : vector<16x96xf32>
    %97 = tpu.matmul %96, %2, %cst_58 {dimension_numbers = #tpu.dot_dimension_numbers<[1], [0], [0], [1], [0, 0, 1, 1], [], []>} : vector<16x32xf32>, vector<32x96xf32>, vector<16x96xf32> -> vector<16x96xf32>
    %98 = vector.broadcast %4 : vector<1x96xf32> to vector<16x96xf32>
    %99 = arith.addf %97, %98 : vector<16x96xf32>
    %cst_59 = arith.constant dense<0.000000e+00> : vector<16x96xf32>
    %100 = tpu.matmul %17, %3, %cst_59 {dimension_numbers = #tpu.dot_dimension_numbers<[1], [0], [0], [1], [0, 0, 1, 1], [], []>} : vector<16x32xf32>, vector<32x96xf32>, vector<16x96xf32> -> vector<16x96xf32>
    %101 = vector.broadcast %5 : vector<1x96xf32> to vector<16x96xf32>
    %102 = arith.addf %100, %101 : vector<16x96xf32>
    %103 = vector.extract_strided_slice %99 {offsets = [0, 0], sizes = [16, 64], strides = [1, 1]} : vector<16x96xf32> to vector<16x64xf32>
    %104 = vector.extract_strided_slice %102 {offsets = [0, 0], sizes = [16, 64], strides = [1, 1]} : vector<16x96xf32> to vector<16x64xf32>
    %105 = arith.addf %103, %104 : vector<16x64xf32>
    %106 = arith.negf %105 : vector<16x64xf32>
    %107 = math.exp %106 : vector<16x64xf32>
    %cst_60 = arith.constant 1.000000e+00 : f32
    %108 = vector.broadcast %cst_60 : f32 to vector<16x64xf32>
    %109 = arith.addf %108, %107 : vector<16x64xf32>
    %110 = arith.divf %108, %109 : vector<16x64xf32>
    %111 = vector.extract_strided_slice %110 {offsets = [0, 0], sizes = [16, 32], strides = [1, 1]} : vector<16x64xf32> to vector<16x32xf32>
    %112 = vector.extract_strided_slice %110 {offsets = [0, 32], sizes = [16, 32], strides = [1, 1]} : vector<16x64xf32> to vector<16x32xf32>
    %113 = vector.extract_strided_slice %99 {offsets = [0, 64], sizes = [16, 32], strides = [1, 1]} : vector<16x96xf32> to vector<16x32xf32>
    %114 = vector.extract_strided_slice %102 {offsets = [0, 64], sizes = [16, 32], strides = [1, 1]} : vector<16x96xf32> to vector<16x32xf32>
    %115 = arith.mulf %111, %114 : vector<16x32xf32>
    %116 = arith.addf %113, %115 : vector<16x32xf32>
    %117 = math.tanh %116 : vector<16x32xf32>
    %cst_61 = arith.constant 1.000000e+00 : f32
    %118 = vector.broadcast %cst_61 : f32 to vector<16x32xf32>
    %119 = arith.subf %118, %112 : vector<16x32xf32>
    %120 = arith.mulf %119, %117 : vector<16x32xf32>
    %121 = arith.mulf %112, %17 : vector<16x32xf32>
    %122 = arith.addf %120, %121 : vector<16x32xf32>
    %cst_62 = arith.constant dense<0.000000e+00> : vector<16xf32>
    %123 = vector.multi_reduction <add>, %122, %cst_62 [1] : vector<16x32xf32> to vector<16xf32>
    %124 = vector.shape_cast %123 : vector<16xf32> to vector<16x1xf32>
    %cst_63 = arith.constant 3.200000e+01 : f32
    %125 = vector.broadcast %cst_63 : f32 to vector<16x1xf32>
    %126 = arith.divf %124, %125 : vector<16x1xf32>
    %127 = vector.broadcast %126 : vector<16x1xf32> to vector<16x32xf32>
    %128 = arith.subf %122, %127 : vector<16x32xf32>
    %129 = arith.mulf %128, %128 : vector<16x32xf32>
    %cst_64 = arith.constant dense<0.000000e+00> : vector<16xf32>
    %130 = vector.multi_reduction <add>, %129, %cst_64 [1] : vector<16x32xf32> to vector<16xf32>
    %131 = vector.shape_cast %130 : vector<16xf32> to vector<16x1xf32>
    %cst_65 = arith.constant 3.200000e+01 : f32
    %132 = vector.broadcast %cst_65 : f32 to vector<16x1xf32>
    %133 = arith.divf %131, %132 : vector<16x1xf32>
    %134 = vector.broadcast %126 : vector<16x1xf32> to vector<16x32xf32>
    %135 = arith.subf %122, %134 : vector<16x32xf32>
    %cst_66 = arith.constant 9.99999974E-6 : f32
    %136 = vector.broadcast %cst_66 : f32 to vector<16x1xf32>
    %137 = arith.addf %133, %136 : vector<16x1xf32>
    %138 = math.rsqrt %137 : vector<16x1xf32>
    %139 = vector.broadcast %138 : vector<16x1xf32> to vector<16x32xf32>
    %140 = arith.mulf %135, %139 : vector<16x32xf32>
    %141 = vector.broadcast %12 : vector<1x32xf32> to vector<16x32xf32>
    %142 = arith.mulf %140, %141 : vector<16x32xf32>
    %143 = vector.broadcast %13 : vector<1x32xf32> to vector<16x32xf32>
    %144 = arith.addf %142, %143 : vector<16x32xf32>
    %cst_67 = arith.constant dense<0.000000e+00> : vector<16x64xf32>
    %145 = tpu.matmul %144, %6, %cst_67 {dimension_numbers = #tpu.dot_dimension_numbers<[1], [0], [0], [1], [0, 0, 1, 1], [], []>} : vector<16x32xf32>, vector<32x64xf32>, vector<16x64xf32> -> vector<16x64xf32>
    %146 = vector.broadcast %7 : vector<1x64xf32> to vector<16x64xf32>
    %147 = arith.addf %145, %146 : vector<16x64xf32>
    %cst_68 = arith.constant 0.000000e+00 : f32
    %148 = vector.broadcast %cst_68 : f32 to vector<16x64xf32>
    %149 = arith.maximumf %147, %148 : vector<16x64xf32>
    %cst_69 = arith.constant dense<0.000000e+00> : vector<16x32xf32>
    %150 = tpu.matmul %149, %8, %cst_69 {dimension_numbers = #tpu.dot_dimension_numbers<[1], [0], [0], [1], [0, 0, 1, 1], [], []>} : vector<16x64xf32>, vector<64x32xf32>, vector<16x32xf32> -> vector<16x32xf32>
    %151 = arith.addf %122, %150 : vector<16x32xf32>
    %152 = vector.broadcast %9 : vector<1x32xf32> to vector<16x32xf32>
    %153 = arith.addf %151, %152 : vector<16x32xf32>
    %cst_70 = arith.constant dense<0.000000e+00> : vector<16xf32>
    %154 = vector.multi_reduction <add>, %153, %cst_70 [1] : vector<16x32xf32> to vector<16xf32>
    %155 = vector.shape_cast %154 : vector<16xf32> to vector<16x1xf32>
    %cst_71 = arith.constant 3.200000e+01 : f32
    %156 = vector.broadcast %cst_71 : f32 to vector<16x1xf32>
    %157 = arith.divf %155, %156 : vector<16x1xf32>
    %158 = vector.broadcast %157 : vector<16x1xf32> to vector<16x32xf32>
    %159 = arith.subf %153, %158 : vector<16x32xf32>
    %160 = arith.mulf %159, %159 : vector<16x32xf32>
    %cst_72 = arith.constant dense<0.000000e+00> : vector<16xf32>
    %161 = vector.multi_reduction <add>, %160, %cst_72 [1] : vector<16x32xf32> to vector<16xf32>
    %162 = vector.shape_cast %161 : vector<16xf32> to vector<16x1xf32>
    %cst_73 = arith.constant 3.200000e+01 : f32
    %163 = vector.broadcast %cst_73 : f32 to vector<16x1xf32>
    %164 = arith.divf %162, %163 : vector<16x1xf32>
    %165 = vector.broadcast %157 : vector<16x1xf32> to vector<16x32xf32>
    %166 = arith.subf %153, %165 : vector<16x32xf32>
    %cst_74 = arith.constant 9.99999974E-6 : f32
    %167 = vector.broadcast %cst_74 : f32 to vector<16x1xf32>
    %168 = arith.addf %164, %167 : vector<16x1xf32>
    %169 = math.rsqrt %168 : vector<16x1xf32>
    %170 = vector.broadcast %169 : vector<16x1xf32> to vector<16x32xf32>
    %171 = arith.mulf %166, %170 : vector<16x32xf32>
    %172 = vector.broadcast %10 : vector<1x32xf32> to vector<16x32xf32>
    %173 = arith.mulf %171, %172 : vector<16x32xf32>
    %174 = vector.broadcast %11 : vector<1x32xf32> to vector<16x32xf32>
    %175 = arith.addf %173, %174 : vector<16x32xf32>
    %cst_75 = arith.constant dense<0.000000e+00> : vector<16x32xf32>
    %176 = tpu.matmul %175, %0, %cst_75 {dimension_numbers = #tpu.dot_dimension_numbers<[1], [0], [0], [1], [0, 0, 1, 1], [], []>} : vector<16x32xf32>, vector<32x32xf32>, vector<16x32xf32> -> vector<16x32xf32>
    %177 = vector.broadcast %1 : vector<1x32xf32> to vector<16x32xf32>
    %178 = arith.addf %176, %177 : vector<16x32xf32>
    %179 = vector.shape_cast %178 : vector<16x32xf32> to vector<2x8x32xf32>
    %cst_76 = arith.constant dense<0.000000e+00> : vector<2x8x128xf32>
    %180 = tpu.matmul %179, %48, %cst_76 {dimension_numbers = #tpu.dot_dimension_numbers<[2], [2], [1], [1], [0, 0, 0, 1, 1, 1], [0], [0]>} : vector<2x8x32xf32>, vector<2x128x32xf32>, vector<2x8x128xf32> -> vector<2x8x128xf32>
    %cst_77 = arith.constant dense<0xFF800000> : vector<2x128xf32>
    %181 = vector.multi_reduction <maximumf>, %180, %cst_77 [1] : vector<2x8x128xf32> to vector<2x128xf32>
    %182 = vector.shape_cast %181 : vector<2x128xf32> to vector<2x1x128xf32>
    %183 = vector.broadcast %182 : vector<2x1x128xf32> to vector<2x8x128xf32>
    %184 = arith.subf %180, %183 : vector<2x8x128xf32>
    %185 = math.exp %184 : vector<2x8x128xf32>
    %cst_78 = arith.constant dense<0.000000e+00> : vector<2x128xf32>
    %186 = vector.multi_reduction <add>, %185, %cst_78 [1] : vector<2x8x128xf32> to vector<2x128xf32>
    %187 = vector.shape_cast %186 : vector<2x128xf32> to vector<2x1x128xf32>
    %188 = tpu.reciprocal %187 {approx = true} : vector<2x1x128xf32> -> vector<2x1x128xf32>
    %189 = vector.broadcast %188 : vector<2x1x128xf32> to vector<2x8x128xf32>
    %190 = arith.mulf %185, %189 : vector<2x8x128xf32>
    %cst_79 = arith.constant 9.99999993E-9 : f32
    %191 = vector.broadcast %cst_79 : f32 to vector<2x8x128xf32>
    %192 = arith.addf %190, %191 : vector<2x8x128xf32>
    %cst_80 = arith.constant dense<0.000000e+00> : vector<2x8xf32>
    %193 = vector.multi_reduction <add>, %192, %cst_80 [2] : vector<2x8x128xf32> to vector<2x8xf32>
    %194 = vector.shape_cast %193 : vector<2x8xf32> to vector<2x8x1xf32>
    %195 = tpu.reciprocal %194 {approx = true} : vector<2x8x1xf32> -> vector<2x8x1xf32>
    %196 = vector.broadcast %195 : vector<2x8x1xf32> to vector<2x8x128xf32>
    %197 = arith.mulf %192, %196 : vector<2x8x128xf32>
    %cst_81 = arith.constant dense<0.000000e+00> : vector<2x8x32xf32>
    %198 = tpu.matmul %197, %50, %cst_81 {dimension_numbers = #tpu.dot_dimension_numbers<[2], [1], [1], [2], [0, 0, 0, 1, 1, 2], [0], [0]>} : vector<2x8x128xf32>, vector<2x128x32xf32>, vector<2x8x32xf32> -> vector<2x8x32xf32>
    %199 = vector.shape_cast %198 : vector<2x8x32xf32> to vector<16x32xf32>
    %cst_82 = arith.constant dense<0.000000e+00> : vector<16x96xf32>
    %200 = tpu.matmul %199, %2, %cst_82 {dimension_numbers = #tpu.dot_dimension_numbers<[1], [0], [0], [1], [0, 0, 1, 1], [], []>} : vector<16x32xf32>, vector<32x96xf32>, vector<16x96xf32> -> vector<16x96xf32>
    %201 = vector.broadcast %4 : vector<1x96xf32> to vector<16x96xf32>
    %202 = arith.addf %200, %201 : vector<16x96xf32>
    %cst_83 = arith.constant dense<0.000000e+00> : vector<16x96xf32>
    %203 = tpu.matmul %153, %3, %cst_83 {dimension_numbers = #tpu.dot_dimension_numbers<[1], [0], [0], [1], [0, 0, 1, 1], [], []>} : vector<16x32xf32>, vector<32x96xf32>, vector<16x96xf32> -> vector<16x96xf32>
    %204 = vector.broadcast %5 : vector<1x96xf32> to vector<16x96xf32>
    %205 = arith.addf %203, %204 : vector<16x96xf32>
    %206 = vector.extract_strided_slice %202 {offsets = [0, 0], sizes = [16, 64], strides = [1, 1]} : vector<16x96xf32> to vector<16x64xf32>
    %207 = vector.extract_strided_slice %205 {offsets = [0, 0], sizes = [16, 64], strides = [1, 1]} : vector<16x96xf32> to vector<16x64xf32>
    %208 = arith.addf %206, %207 : vector<16x64xf32>
    %209 = arith.negf %208 : vector<16x64xf32>
    %210 = math.exp %209 : vector<16x64xf32>
    %cst_84 = arith.constant 1.000000e+00 : f32
    %211 = vector.broadcast %cst_84 : f32 to vector<16x64xf32>
    %212 = arith.addf %211, %210 : vector<16x64xf32>
    %213 = arith.divf %211, %212 : vector<16x64xf32>
    %214 = vector.extract_strided_slice %213 {offsets = [0, 0], sizes = [16, 32], strides = [1, 1]} : vector<16x64xf32> to vector<16x32xf32>
    %215 = vector.extract_strided_slice %213 {offsets = [0, 32], sizes = [16, 32], strides = [1, 1]} : vector<16x64xf32> to vector<16x32xf32>
    %216 = vector.extract_strided_slice %202 {offsets = [0, 64], sizes = [16, 32], strides = [1, 1]} : vector<16x96xf32> to vector<16x32xf32>
    %217 = vector.extract_strided_slice %205 {offsets = [0, 64], sizes = [16, 32], strides = [1, 1]} : vector<16x96xf32> to vector<16x32xf32>
    %218 = arith.mulf %214, %217 : vector<16x32xf32>
    %219 = arith.addf %216, %218 : vector<16x32xf32>
    %220 = math.tanh %219 : vector<16x32xf32>
    %cst_85 = arith.constant 1.000000e+00 : f32
    %221 = vector.broadcast %cst_85 : f32 to vector<16x32xf32>
    %222 = arith.subf %221, %215 : vector<16x32xf32>
    %223 = arith.mulf %222, %220 : vector<16x32xf32>
    %224 = arith.mulf %215, %153 : vector<16x32xf32>
    %225 = arith.addf %223, %224 : vector<16x32xf32>
    %cst_86 = arith.constant dense<0.000000e+00> : vector<16xf32>
    %226 = vector.multi_reduction <add>, %225, %cst_86 [1] : vector<16x32xf32> to vector<16xf32>
    %227 = vector.shape_cast %226 : vector<16xf32> to vector<16x1xf32>
    %cst_87 = arith.constant 3.200000e+01 : f32
    %228 = vector.broadcast %cst_87 : f32 to vector<16x1xf32>
    %229 = arith.divf %227, %228 : vector<16x1xf32>
    %230 = vector.broadcast %229 : vector<16x1xf32> to vector<16x32xf32>
    %231 = arith.subf %225, %230 : vector<16x32xf32>
    %232 = arith.mulf %231, %231 : vector<16x32xf32>
    %cst_88 = arith.constant dense<0.000000e+00> : vector<16xf32>
    %233 = vector.multi_reduction <add>, %232, %cst_88 [1] : vector<16x32xf32> to vector<16xf32>
    %234 = vector.shape_cast %233 : vector<16xf32> to vector<16x1xf32>
    %cst_89 = arith.constant 3.200000e+01 : f32
    %235 = vector.broadcast %cst_89 : f32 to vector<16x1xf32>
    %236 = arith.divf %234, %235 : vector<16x1xf32>
    %237 = vector.broadcast %229 : vector<16x1xf32> to vector<16x32xf32>
    %238 = arith.subf %225, %237 : vector<16x32xf32>
    %cst_90 = arith.constant 9.99999974E-6 : f32
    %239 = vector.broadcast %cst_90 : f32 to vector<16x1xf32>
    %240 = arith.addf %236, %239 : vector<16x1xf32>
    %241 = math.rsqrt %240 : vector<16x1xf32>
    %242 = vector.broadcast %241 : vector<16x1xf32> to vector<16x32xf32>
    %243 = arith.mulf %238, %242 : vector<16x32xf32>
    %244 = vector.broadcast %12 : vector<1x32xf32> to vector<16x32xf32>
    %245 = arith.mulf %243, %244 : vector<16x32xf32>
    %246 = vector.broadcast %13 : vector<1x32xf32> to vector<16x32xf32>
    %247 = arith.addf %245, %246 : vector<16x32xf32>
    %cst_91 = arith.constant dense<0.000000e+00> : vector<16x64xf32>
    %248 = tpu.matmul %247, %6, %cst_91 {dimension_numbers = #tpu.dot_dimension_numbers<[1], [0], [0], [1], [0, 0, 1, 1], [], []>} : vector<16x32xf32>, vector<32x64xf32>, vector<16x64xf32> -> vector<16x64xf32>
    %249 = vector.broadcast %7 : vector<1x64xf32> to vector<16x64xf32>
    %250 = arith.addf %248, %249 : vector<16x64xf32>
    %cst_92 = arith.constant 0.000000e+00 : f32
    %251 = vector.broadcast %cst_92 : f32 to vector<16x64xf32>
    %252 = arith.maximumf %250, %251 : vector<16x64xf32>
    %cst_93 = arith.constant dense<0.000000e+00> : vector<16x32xf32>
    %253 = tpu.matmul %252, %8, %cst_93 {dimension_numbers = #tpu.dot_dimension_numbers<[1], [0], [0], [1], [0, 0, 1, 1], [], []>} : vector<16x64xf32>, vector<64x32xf32>, vector<16x32xf32> -> vector<16x32xf32>
    %254 = arith.addf %225, %253 : vector<16x32xf32>
    %255 = vector.broadcast %9 : vector<1x32xf32> to vector<16x32xf32>
    %256 = arith.addf %254, %255 : vector<16x32xf32>
    %cst_94 = arith.constant dense<0.000000e+00> : vector<16xf32>
    %257 = vector.multi_reduction <add>, %256, %cst_94 [1] : vector<16x32xf32> to vector<16xf32>
    %258 = vector.shape_cast %257 : vector<16xf32> to vector<16x1xf32>
    %cst_95 = arith.constant 3.200000e+01 : f32
    %259 = vector.broadcast %cst_95 : f32 to vector<16x1xf32>
    %260 = arith.divf %258, %259 : vector<16x1xf32>
    %261 = vector.broadcast %260 : vector<16x1xf32> to vector<16x32xf32>
    %262 = arith.subf %256, %261 : vector<16x32xf32>
    %263 = arith.mulf %262, %262 : vector<16x32xf32>
    %cst_96 = arith.constant dense<0.000000e+00> : vector<16xf32>
    %264 = vector.multi_reduction <add>, %263, %cst_96 [1] : vector<16x32xf32> to vector<16xf32>
    %265 = vector.shape_cast %264 : vector<16xf32> to vector<16x1xf32>
    %cst_97 = arith.constant 3.200000e+01 : f32
    %266 = vector.broadcast %cst_97 : f32 to vector<16x1xf32>
    %267 = arith.divf %265, %266 : vector<16x1xf32>
    %268 = vector.broadcast %260 : vector<16x1xf32> to vector<16x32xf32>
    %269 = arith.subf %256, %268 : vector<16x32xf32>
    %cst_98 = arith.constant 9.99999974E-6 : f32
    %270 = vector.broadcast %cst_98 : f32 to vector<16x1xf32>
    %271 = arith.addf %267, %270 : vector<16x1xf32>
    %272 = math.rsqrt %271 : vector<16x1xf32>
    %273 = vector.broadcast %272 : vector<16x1xf32> to vector<16x32xf32>
    %274 = arith.mulf %269, %273 : vector<16x32xf32>
    %275 = vector.broadcast %10 : vector<1x32xf32> to vector<16x32xf32>
    %276 = arith.mulf %274, %275 : vector<16x32xf32>
    %277 = vector.broadcast %11 : vector<1x32xf32> to vector<16x32xf32>
    %278 = arith.addf %276, %277 : vector<16x32xf32>
    %cst_99 = arith.constant dense<0.000000e+00> : vector<16x32xf32>
    %279 = tpu.matmul %278, %0, %cst_99 {dimension_numbers = #tpu.dot_dimension_numbers<[1], [0], [0], [1], [0, 0, 1, 1], [], []>} : vector<16x32xf32>, vector<32x32xf32>, vector<16x32xf32> -> vector<16x32xf32>
    %280 = vector.broadcast %1 : vector<1x32xf32> to vector<16x32xf32>
    %281 = arith.addf %279, %280 : vector<16x32xf32>
    %282 = vector.shape_cast %281 : vector<16x32xf32> to vector<2x8x32xf32>
    %cst_100 = arith.constant dense<0.000000e+00> : vector<2x8x128xf32>
    %283 = tpu.matmul %282, %48, %cst_100 {dimension_numbers = #tpu.dot_dimension_numbers<[2], [2], [1], [1], [0, 0, 0, 1, 1, 1], [0], [0]>} : vector<2x8x32xf32>, vector<2x128x32xf32>, vector<2x8x128xf32> -> vector<2x8x128xf32>
    %cst_101 = arith.constant dense<0xFF800000> : vector<2x128xf32>
    %284 = vector.multi_reduction <maximumf>, %283, %cst_101 [1] : vector<2x8x128xf32> to vector<2x128xf32>
    %285 = vector.shape_cast %284 : vector<2x128xf32> to vector<2x1x128xf32>
    %286 = vector.broadcast %285 : vector<2x1x128xf32> to vector<2x8x128xf32>
    %287 = arith.subf %283, %286 : vector<2x8x128xf32>
    %288 = math.exp %287 : vector<2x8x128xf32>
    %cst_102 = arith.constant dense<0.000000e+00> : vector<2x128xf32>
    %289 = vector.multi_reduction <add>, %288, %cst_102 [1] : vector<2x8x128xf32> to vector<2x128xf32>
    %290 = vector.shape_cast %289 : vector<2x128xf32> to vector<2x1x128xf32>
    %291 = tpu.reciprocal %290 {approx = true} : vector<2x1x128xf32> -> vector<2x1x128xf32>
    %292 = vector.broadcast %291 : vector<2x1x128xf32> to vector<2x8x128xf32>
    %293 = arith.mulf %288, %292 : vector<2x8x128xf32>
    %cst_103 = arith.constant 9.99999993E-9 : f32
    %294 = vector.broadcast %cst_103 : f32 to vector<2x8x128xf32>
    %295 = arith.addf %293, %294 : vector<2x8x128xf32>
    %cst_104 = arith.constant dense<0.000000e+00> : vector<2x8xf32>
    %296 = vector.multi_reduction <add>, %295, %cst_104 [2] : vector<2x8x128xf32> to vector<2x8xf32>
    %297 = vector.shape_cast %296 : vector<2x8xf32> to vector<2x8x1xf32>
    %298 = tpu.reciprocal %297 {approx = true} : vector<2x8x1xf32> -> vector<2x8x1xf32>
    %299 = vector.broadcast %298 : vector<2x8x1xf32> to vector<2x8x128xf32>
    %300 = arith.mulf %295, %299 : vector<2x8x128xf32>
    %cst_105 = arith.constant dense<0.000000e+00> : vector<2x8x32xf32>
    %301 = tpu.matmul %300, %50, %cst_105 {dimension_numbers = #tpu.dot_dimension_numbers<[2], [1], [1], [2], [0, 0, 0, 1, 1, 2], [0], [0]>} : vector<2x8x128xf32>, vector<2x128x32xf32>, vector<2x8x32xf32> -> vector<2x8x32xf32>
    %302 = vector.shape_cast %301 : vector<2x8x32xf32> to vector<16x32xf32>
    %cst_106 = arith.constant dense<0.000000e+00> : vector<16x96xf32>
    %303 = tpu.matmul %302, %2, %cst_106 {dimension_numbers = #tpu.dot_dimension_numbers<[1], [0], [0], [1], [0, 0, 1, 1], [], []>} : vector<16x32xf32>, vector<32x96xf32>, vector<16x96xf32> -> vector<16x96xf32>
    %304 = vector.broadcast %4 : vector<1x96xf32> to vector<16x96xf32>
    %305 = arith.addf %303, %304 : vector<16x96xf32>
    %cst_107 = arith.constant dense<0.000000e+00> : vector<16x96xf32>
    %306 = tpu.matmul %256, %3, %cst_107 {dimension_numbers = #tpu.dot_dimension_numbers<[1], [0], [0], [1], [0, 0, 1, 1], [], []>} : vector<16x32xf32>, vector<32x96xf32>, vector<16x96xf32> -> vector<16x96xf32>
    %307 = vector.broadcast %5 : vector<1x96xf32> to vector<16x96xf32>
    %308 = arith.addf %306, %307 : vector<16x96xf32>
    %309 = vector.extract_strided_slice %305 {offsets = [0, 0], sizes = [16, 64], strides = [1, 1]} : vector<16x96xf32> to vector<16x64xf32>
    %310 = vector.extract_strided_slice %308 {offsets = [0, 0], sizes = [16, 64], strides = [1, 1]} : vector<16x96xf32> to vector<16x64xf32>
    %311 = arith.addf %309, %310 : vector<16x64xf32>
    %312 = arith.negf %311 : vector<16x64xf32>
    %313 = math.exp %312 : vector<16x64xf32>
    %cst_108 = arith.constant 1.000000e+00 : f32
    %314 = vector.broadcast %cst_108 : f32 to vector<16x64xf32>
    %315 = arith.addf %314, %313 : vector<16x64xf32>
    %316 = arith.divf %314, %315 : vector<16x64xf32>
    %317 = vector.extract_strided_slice %316 {offsets = [0, 0], sizes = [16, 32], strides = [1, 1]} : vector<16x64xf32> to vector<16x32xf32>
    %318 = vector.extract_strided_slice %316 {offsets = [0, 32], sizes = [16, 32], strides = [1, 1]} : vector<16x64xf32> to vector<16x32xf32>
    %319 = vector.extract_strided_slice %305 {offsets = [0, 64], sizes = [16, 32], strides = [1, 1]} : vector<16x96xf32> to vector<16x32xf32>
    %320 = vector.extract_strided_slice %308 {offsets = [0, 64], sizes = [16, 32], strides = [1, 1]} : vector<16x96xf32> to vector<16x32xf32>
    %321 = arith.mulf %317, %320 : vector<16x32xf32>
    %322 = arith.addf %319, %321 : vector<16x32xf32>
    %323 = math.tanh %322 : vector<16x32xf32>
    %cst_109 = arith.constant 1.000000e+00 : f32
    %324 = vector.broadcast %cst_109 : f32 to vector<16x32xf32>
    %325 = arith.subf %324, %318 : vector<16x32xf32>
    %326 = arith.mulf %325, %323 : vector<16x32xf32>
    %327 = arith.mulf %318, %256 : vector<16x32xf32>
    %328 = arith.addf %326, %327 : vector<16x32xf32>
    %cst_110 = arith.constant dense<0.000000e+00> : vector<16xf32>
    %329 = vector.multi_reduction <add>, %328, %cst_110 [1] : vector<16x32xf32> to vector<16xf32>
    %330 = vector.shape_cast %329 : vector<16xf32> to vector<16x1xf32>
    %cst_111 = arith.constant 3.200000e+01 : f32
    %331 = vector.broadcast %cst_111 : f32 to vector<16x1xf32>
    %332 = arith.divf %330, %331 : vector<16x1xf32>
    %333 = vector.broadcast %332 : vector<16x1xf32> to vector<16x32xf32>
    %334 = arith.subf %328, %333 : vector<16x32xf32>
    %335 = arith.mulf %334, %334 : vector<16x32xf32>
    %cst_112 = arith.constant dense<0.000000e+00> : vector<16xf32>
    %336 = vector.multi_reduction <add>, %335, %cst_112 [1] : vector<16x32xf32> to vector<16xf32>
    %337 = vector.shape_cast %336 : vector<16xf32> to vector<16x1xf32>
    %cst_113 = arith.constant 3.200000e+01 : f32
    %338 = vector.broadcast %cst_113 : f32 to vector<16x1xf32>
    %339 = arith.divf %337, %338 : vector<16x1xf32>
    %340 = vector.broadcast %332 : vector<16x1xf32> to vector<16x32xf32>
    %341 = arith.subf %328, %340 : vector<16x32xf32>
    %cst_114 = arith.constant 9.99999974E-6 : f32
    %342 = vector.broadcast %cst_114 : f32 to vector<16x1xf32>
    %343 = arith.addf %339, %342 : vector<16x1xf32>
    %344 = math.rsqrt %343 : vector<16x1xf32>
    %345 = vector.broadcast %344 : vector<16x1xf32> to vector<16x32xf32>
    %346 = arith.mulf %341, %345 : vector<16x32xf32>
    %347 = vector.broadcast %12 : vector<1x32xf32> to vector<16x32xf32>
    %348 = arith.mulf %346, %347 : vector<16x32xf32>
    %349 = vector.broadcast %13 : vector<1x32xf32> to vector<16x32xf32>
    %350 = arith.addf %348, %349 : vector<16x32xf32>
    %cst_115 = arith.constant dense<0.000000e+00> : vector<16x64xf32>
    %351 = tpu.matmul %350, %6, %cst_115 {dimension_numbers = #tpu.dot_dimension_numbers<[1], [0], [0], [1], [0, 0, 1, 1], [], []>} : vector<16x32xf32>, vector<32x64xf32>, vector<16x64xf32> -> vector<16x64xf32>
    %352 = vector.broadcast %7 : vector<1x64xf32> to vector<16x64xf32>
    %353 = arith.addf %351, %352 : vector<16x64xf32>
    %cst_116 = arith.constant 0.000000e+00 : f32
    %354 = vector.broadcast %cst_116 : f32 to vector<16x64xf32>
    %355 = arith.maximumf %353, %354 : vector<16x64xf32>
    %cst_117 = arith.constant dense<0.000000e+00> : vector<16x32xf32>
    %356 = tpu.matmul %355, %8, %cst_117 {dimension_numbers = #tpu.dot_dimension_numbers<[1], [0], [0], [1], [0, 0, 1, 1], [], []>} : vector<16x64xf32>, vector<64x32xf32>, vector<16x32xf32> -> vector<16x32xf32>
    %357 = arith.addf %328, %356 : vector<16x32xf32>
    %358 = vector.broadcast %9 : vector<1x32xf32> to vector<16x32xf32>
    %359 = arith.addf %357, %358 : vector<16x32xf32>
    %360 = vector.shape_cast %359 : vector<16x32xf32> to vector<2x8x32xf32>
    %c0_118 = arith.constant 0 : index
    %c0_119 = arith.constant 0 : index
    %c0_120 = arith.constant 0 : index
    %361 = vector.load %arg21[%c0_118, %c0_119, %c0_120] : memref<2x8x32xf32, #tpu.memory_space<vmem>>, vector<2x8x32xf32>
    tpu.vector_store %arg21[%c0_118, %c0_119, %c0_120], %360 {strides = array<i32>} : memref<2x8x32xf32, #tpu.memory_space<vmem>>, vector<2x8x32xf32>,
    return
  }
  func.func @transform_0(%arg0: i32) -> (i32, i32, i32) {
    %c0_i32 = arith.constant 0 : i32
    %c0_i32_0 = arith.constant 0 : i32
    %c0_i32_1 = arith.constant 0 : i32
    return %arg0, %c0_i32, %c0_i32_0 : i32, i32, i32
  }
  func.func @transform_1(%arg0: i32) -> (i32, i32, i32) {
    %c0_i32 = arith.constant 0 : i32
    %c0_i32_0 = arith.constant 0 : i32
    %c0_i32_1 = arith.constant 0 : i32
    return %arg0, %c0_i32, %c0_i32_0 : i32, i32, i32
  }
  func.func @transform_2(%arg0: i32) -> (i32, i32) {
    %c0_i32 = arith.constant 0 : i32
    %c0_i32_0 = arith.constant 0 : i32
    %c0_i32_1 = arith.constant 0 : i32
    return %c0_i32, %c0_i32_0 : i32, i32
  }
  func.func @transform_3(%arg0: i32) -> (i32, i32) {
    %c0_i32 = arith.constant 0 : i32
    %c0_i32_0 = arith.constant 0 : i32
    %c0_i32_1 = arith.constant 0 : i32
    return %c0_i32, %c0_i32_0 : i32, i32
  }
  func.func @transform_4(%arg0: i32) -> (i32, i32) {
    %c0_i32 = arith.constant 0 : i32
    %c0_i32_0 = arith.constant 0 : i32
    %c0_i32_1 = arith.constant 0 : i32
    return %c0_i32, %c0_i32_0 : i32, i32
  }
  func.func @transform_5(%arg0: i32) -> (i32, i32) {
    %c0_i32 = arith.constant 0 : i32
    %c0_i32_0 = arith.constant 0 : i32
    %c0_i32_1 = arith.constant 0 : i32
    return %c0_i32, %c0_i32_0 : i32, i32
  }
  func.func @transform_6(%arg0: i32) -> (i32, i32) {
    %c0_i32 = arith.constant 0 : i32
    %c0_i32_0 = arith.constant 0 : i32
    %c0_i32_1 = arith.constant 0 : i32
    return %c0_i32, %c0_i32_0 : i32, i32
  }
  func.func @transform_7(%arg0: i32) -> (i32, i32) {
    %c0_i32 = arith.constant 0 : i32
    %c0_i32_0 = arith.constant 0 : i32
    %c0_i32_1 = arith.constant 0 : i32
    return %c0_i32, %c0_i32_0 : i32, i32
  }
  func.func @transform_8(%arg0: i32) -> (i32, i32) {
    %c0_i32 = arith.constant 0 : i32
    %c0_i32_0 = arith.constant 0 : i32
    %c0_i32_1 = arith.constant 0 : i32
    return %c0_i32, %c0_i32_0 : i32, i32
  }
  func.func @transform_9(%arg0: i32) -> (i32, i32) {
    %c0_i32 = arith.constant 0 : i32
    %c0_i32_0 = arith.constant 0 : i32
    %c0_i32_1 = arith.constant 0 : i32
    return %c0_i32, %c0_i32_0 : i32, i32
  }
  func.func @transform_10(%arg0: i32) -> (i32, i32) {
    %c0_i32 = arith.constant 0 : i32
    %c0_i32_0 = arith.constant 0 : i32
    %c0_i32_1 = arith.constant 0 : i32
    return %c0_i32, %c0_i32_0 : i32, i32
  }
  func.func @transform_11(%arg0: i32) -> (i32, i32) {
    %c0_i32 = arith.constant 0 : i32
    %c0_i32_0 = arith.constant 0 : i32
    %c0_i32_1 = arith.constant 0 : i32
    return %c0_i32, %c0_i32_0 : i32, i32
  }
  func.func @transform_12(%arg0: i32) -> (i32, i32) {
    %c0_i32 = arith.constant 0 : i32
    %c0_i32_0 = arith.constant 0 : i32
    %c0_i32_1 = arith.constant 0 : i32
    return %c0_i32, %c0_i32_0 : i32, i32
  }
  func.func @transform_13(%arg0: i32) -> (i32, i32) {
    %c0_i32 = arith.constant 0 : i32
    %c0_i32_0 = arith.constant 0 : i32
    %c0_i32_1 = arith.constant 0 : i32
    return %c0_i32, %c0_i32_0 : i32, i32
  }
  func.func @transform_14(%arg0: i32) -> (i32, i32) {
    %c0_i32 = arith.constant 0 : i32
    %c0_i32_0 = arith.constant 0 : i32
    %c0_i32_1 = arith.constant 0 : i32
    return %c0_i32, %c0_i32_0 : i32, i32
  }
  func.func @transform_15(%arg0: i32) -> (i32, i32) {
    %c0_i32 = arith.constant 0 : i32
    %c0_i32_0 = arith.constant 0 : i32
    %c0_i32_1 = arith.constant 0 : i32
    return %c0_i32, %c0_i32_0 : i32, i32
  }
  func.func @transform_16(%arg0: i32) -> (i32, i32) {
    %c0_i32 = arith.constant 0 : i32
    %c0_i32_0 = arith.constant 0 : i32
    %c0_i32_1 = arith.constant 0 : i32
    return %c0_i32, %c0_i32_0 : i32, i32
  }
  func.func @transform_17(%arg0: i32) -> (i32, i32) {
    %c0_i32 = arith.constant 0 : i32
    %c0_i32_0 = arith.constant 0 : i32
    %c0_i32_1 = arith.constant 0 : i32
    return %c0_i32, %c0_i32_0 : i32, i32
  }
  func.func @transform_18(%arg0: i32) -> (i32, i32) {
    %c0_i32 = arith.constant 0 : i32
    %c0_i32_0 = arith.constant 0 : i32
    %c0_i32_1 = arith.constant 0 : i32
    return %c0_i32, %c0_i32_0 : i32, i32
  }
  func.func @transform_19(%arg0: i32) -> (i32, i32) {
    %c0_i32 = arith.constant 0 : i32
    %c0_i32_0 = arith.constant 0 : i32
    %c0_i32_1 = arith.constant 0 : i32
    return %c0_i32, %c0_i32_0 : i32, i32
  }
  func.func @transform_20(%arg0: i32) -> (i32, i32, i32) {
    %c0_i32 = arith.constant 0 : i32
    %c0_i32_0 = arith.constant 0 : i32
    %c0_i32_1 = arith.constant 0 : i32
    return %arg0, %c0_i32, %c0_i32_0 : i32, i32, i32
  }
}

</mosaic_0001>

<bundles_post_ra>
// kernel: tpu_custom_call.1
= control target key start
LH: loop header
LB: loop body
LE: loop exit
PB: predicated region body
PF: predicated region fallthrough
CT: control target
= control target key end

     0   :  { %s6327_s0 = inlined_call_operand.vmem [shape: f32[4,128,32], index: 0, kind: input, shape index: {}]   ;;  %s6328_s1 = inlined_call_operand.vmem [shape: f32[4,8,32], index: 1, kind: input, shape index: {}]   ;;  %s6329_s2 = inlined_call_operand.vmem [shape: f32[32,32], index: 2, kind: input, shape index: {}]   ;;  %s6330_s3 = inlined_call_operand.vmem [shape: f32[1,32], index: 3, kind: input, shape index: {}]   ;;  %s6331_s4 = inlined_call_operand.vmem [shape: f32[32,64], index: 4, kind: input, shape index: {}]   ;;  %s6332_s5 = inlined_call_operand.vmem [shape: f32[1,64], index: 5, kind: input, shape index: {}]   ;;  %s6333_s6 = inlined_call_operand.vmem [shape: f32[32,96], index: 6, kind: input, shape index: {}]   ;;  %s6334_s7 = inlined_call_operand.vmem [shape: f32[32,96], index: 7, kind: input, shape index: {}]   ;;  %s6335_s8 = inlined_call_operand.vmem [shape: f32[1,96], index: 8, kind: input, shape index: {}]   ;;  %s6336_s9 = inlined_call_operand.vmem [shape: f32[1,96], index: 9, kind: input, shape index: {}]   ;;  %s6337_s10 = inlined_call_operand.vmem [shape: f32[32,64], index: 10, kind: input, shape index: {}]   ;;  %s6338_s11 = inlined_call_operand.vmem [shape: f32[1,64], index: 11, kind: input, shape index: {}]   ;;  %s6339_s12 = inlined_call_operand.vmem [shape: f32[64,32], index: 12, kind: input, shape index: {}]   ;;  %s6340_s13 = inlined_call_operand.vmem [shape: f32[1,32], index: 13, kind: input, shape index: {}]   ;;  %s6341_s14 = inlined_call_operand.vmem [shape: f32[1,32], index: 14, kind: input, shape index: {}]   ;;  %s6342_s15 = inlined_call_operand.vmem [shape: f32[1,32], index: 15, kind: input, shape index: {}]   ;;  %s6343_s16 = inlined_call_operand.vmem [shape: f32[1,32], index: 16, kind: input, shape index: {}]   ;;  %s6344_s17 = inlined_call_operand.vmem [shape: f32[1,32], index: 17, kind: input, shape index: {}]   ;;  %s6345_s18 = inlined_call_operand.vmem [shape: f32[1,32], index: 18, kind: input, shape index: {}]   ;;  %s6346_s19 = inlined_call_operand.vmem [shape: f32[1,32], index: 19, kind: input, shape index: {}]   ;;  %s6347_s20 = inlined_call_operand.hbm [shape: f32[4,8,32], index: 20, kind: output, shape index: {}]  }
   0x1   :  { %6424 = sst [smem:[#allocation58_spill]] %s6327_s0 }
   0x2   :  { %6425 = sst [smem:[#allocation59_spill]] %s6328_s1 }
   0x3   :  { %6426 = sst [smem:[#allocation60_spill]] %s6329_s2 }
   0x4   :  { %6427 = sst [smem:[#allocation61_spill]] %s6330_s3 }
   0x5   :  { %6428 = sst [smem:[#allocation62_spill]] %s6331_s4 }
   0x6   :  { %6429 = sst [smem:[#allocation63_spill]] %s6332_s5 }
   0x7   :  { %6430 = sst [smem:[#allocation64_spill]] %s6333_s6 }
   0x8   :  { %6431 = sst [smem:[#allocation65_spill]] %s6334_s7 }
   0x9   :  { %6432 = sst [smem:[#allocation66_spill]] %s6340_s13 }
   0xa   :  { %25 = vsyncpa [#allocation3], 0 }
   0xb   :  { %27 = vsyncpa [#allocation3 + $0x1], 0  ;;  %s4240_s1 = smov 0   ;;  %s4242_s22 = smov 0  }
   0xc   :  { %s4244_s23 = smov 0   ;;  %s4246_s24 = smov 0  }
   0xd LB: > { %6433 = sst [smem:[#allocation5_spill]] %s4115_s1  ;;  %s4261_s2 = sadd.s32 4294967295, %s4127_s24   ;;  %s4127_s24 = sphi %s4246_s24, %s6575_s24   ;;  %s4123_s23 = sphi %s4244_s23, %s6577_s23   ;;  %s4119_s22 = sphi %s4242_s22, %s6579_s22   ;;  %s4115_s1 = sphi %s4240_s1, %s6578_s1  }
   0xe   : > { %6434 = sst [smem:[#allocation6_spill]] %s4123_s23  ;;  %s3547_s25 = sadd.s32 4294967294, %s4127_s24  }
   0xf   : > { %s4265_s3 = sadd.s32 1, %s4127_s24   ;;  %s470_s26 = sadd.s32 1, %s4123_s23 }
  0x10   : > { %6435 = sst [smem:[#allocation7_spill]] %s4265_s3  ;;  %s467_s27 = ssub.s32 %s4127_s24, %s4265_s3 }
  0x11   : > { %p480_p0 = scmp.ne.s32.totalorder %s4123_s23, %s4119_s22  ;;  %p468_p1 = scmp.eq.s32.totalorder %s467_s27, 0 }
  0x12   : > { %p481_p2 = scmp.eq.s32.totalorder %s4261_s2, 1  ;;  %p486_p3 = scmp.ne.s32.totalorder %s4119_s22, %s4115_s1 }
  0x13   : > { %p487_p4 = scmp.eq.s32.totalorder %s3547_s25, 1  ;;  %p3550_p7 = scmp.ge.s32.totalorder %s4127_s24, 1 }
  0x14   : > { %s4276_s28 = scalar_select %p468_p1, %s4123_s23, %s470_s26  }
  0x15   : > { %p4278_p5 = por %p481_p2, %p480_p0  ;;  %p4282_p6 = por %p487_p4, %p486_p3 }
  0x16   : > { %6436 = sst [smem:[#allocation8_spill]] %s4276_s28  ;;  %p578_p8 = scmp.lt.s32.totalorder %s4127_s24, 3 }
  0x17   : > { %s6438_s29 = scalar_select %p4282_p6, 1, 0 }
  0x18   : > { %p579_p9 = pnand %p3550_p7, %p578_p8 }
  0x19   : > { %6439 = sst [smem:[#allocation9_spill]] %s6438_s29 }
  0x1a   : > { %582 = sbr.rel (%p579_p9) target bundleno = 8106 (0x1faa), region = 100 }
  0x1f   : > { %s3552_s30 = sshll.u32 %s4261_s2, 1  ;;  %vm725_vm0 = vcmask 261120   ;;  %s6440_s26 = sld [smem:[#allocation58_spill]]  ;;  %v4129_v14 = vmov 32.0  }
  0x20   : > { %p643_p10 = scmp.lt.s32.totalorder %s3552_s30, 3  ;;  %3871 = vrcp.f32 %v4129_v14  ;;  %s6441_s25 = sld [smem:[#allocation62_spill]] }
  0x21   : > { %s6461_s5 = sld [smem:[#allocation63_spill]]  ;;  %s6419_s1 = smov 32  }
  0x22   : > { %s6581_s30 = smov (!%p643_p10, %s3552_s30), 3  ;;  %s6489_s7 = sld [smem:[#allocation65_spill]] }
  0x23   : > { %s3732_s0 = sshll.u32 %s6581_s30, 7  ;;  %s3556_s29 = sshll.u32 %s6581_s30, 3 }
  0x24   : > { %s6399_s30 = smov 96   ;;  %s6516_s6 = sld [smem:[#allocation64_spill]] }
  0x25   : > { %s4295_s27 = scalar_lea.vmem %s6440_s26, %s3732_s0  ;;  %s6456_s0 = sld [smem:[#allocation59_spill]] }
  0x26   : > { %v691_v0 = vld [vmem:[%s4295_s27 + $0x10] sm:$0xff]  ;;  %v689_v1 = vld [vmem:[%s4295_s27] sm:$0xff]  ;;  %v690_v6 = vld [vmem:[%s4295_s27 + $0x8] sm:$0xff]  ;;  %v3872_v15 = vpop.eup %3871  ;;  %s6462_s26 = sld [smem:[#allocation60_spill]]  ;;  %s6518_s23 = smov 96  }
  0x27   : > { %v4300_v2 = vld [vmem:[%s4295_s27 + $0x20] sm:$0xff]  ;;  %v732_v3 = vsel %vm725_vm0, %v691_v0, 0.0  ;;  %v726_v4 = vsel %vm725_vm0, %v689_v1, 0.0  ;;  %v692_v7 = vld [vmem:[%s4295_s27 + $0x18] sm:$0xff]  ;;  %v694_v8 = vld [vmem:[%s4295_s27 + $0x28] sm:$0xff]  ;;  %v729_v9 = vsel %vm725_vm0, %v690_v6, 0.0  ;;  %vm827_vm1 = vweird.f32 %v3872_v15 }
  0x28   : > { %v738_v5 = vsel %vm725_vm0, %v4300_v2, 0.0  ;;  %733 = vadd.xlane.f32.xlu1 %v732_v3  ;;  %727 = vadd.xlane.f32.xlu0 %v726_v4  ;;  %v735_v10 = vsel %vm725_vm0, %v692_v7, 0.0  ;;  %v741_v11 = vsel %vm725_vm0, %v694_v8, 0.0  ;;  %v695_v12 = vld [vmem:[%s4295_s27 + $0x30] sm:$0xff]  ;;  %v823_v16 = vmul.f32 32.0, %v3872_v15  ;;  %v4330_v36 = vld [vmem:[%s4295_s27 + $0x48] sm:$0xff] }
  0x29   : > { %739 = vadd.xlane.f32.xlu2 %v738_v5  ;;  %v744_v13 = vsel %vm725_vm0, %v695_v12, 0.0  ;;  %v4335_v39 = vld [vmem:[%s4295_s27 + $0x38] sm:$0xff]  ;;  %v753_v41 = vsel %vm725_vm0, %v4330_v36, 0.0  ;;  %v4356_v50 = vld [vmem:[%s4295_s27 + $0x40] sm:$0xff]  ;;  %v4370_v58 = vld [vmem:[%s4295_s27 + $0x50] sm:$0xff]  ;;  %s6520_s13 = sld [smem:[#allocation66_spill]] }
  0x2a   : > { %v824_v17 = vsub.f32 1.0, %v823_v16  ;;  %v747_v44 = vsel %vm725_vm0, %v4335_v39, 0.0  ;;  %v750_v54 = vsel %vm725_vm0, %v4356_v50, 0.0  ;;  %v4367_v57 = vld [vmem:[%s4295_s27 + $0x60] sm:$0xff]  ;;  %v756_v62 = vsel %vm725_vm0, %v4370_v58, 0.0  ;;  %v4390_v4 = vld [vmem:[%s4295_s27 + $0x68] sm:$0xff] }
  0x2b   : > { %v762_v60 = vsel %vm725_vm0, %v4367_v57, 0.0  ;;  %v765_v5 = vsel %vm725_vm0, %v4390_v4, 0.0  ;;  %s5007_s21 = scalar_lea.vmem %s6456_s0, %s3556_s29  ;;  %s6491_s0 = sld [smem:[#allocation61_spill]] }
  0x2c   : > { %v825_v18 = vmul.f32 %v3872_v15, %v824_v17 }
  0x2e   : > { %v826_v19 = vadd.f32 %v3872_v15, %v825_v18 }
  0x30   : > { %730 = vadd.xlane.f32.xlu0 %v729_v9  ;;  %736 = vadd.xlane.f32.xlu1 %v735_v10  ;;  %v4314_v20 = vsel %vm827_vm1, %v3872_v15, %v826_v19  ;;  %v1507_v9 = vld [vmem:[%s6441_s25] sm:$0xff] }
  0x31   : > { %742 = vadd.xlane.f32.xlu2 %v741_v11 }
  0x38   : > { %745 = vadd.xlane.f32.xlu1 %v744_v13 }
  0x9b   : > { %v734_v21 = vpop.xlane.xlu1 %733  ;;  %v728_v22 = vpop.xlane.xlu0 %727 }
  0x9c   : > { %v831_v23 = vmul.f32 %v4314_v20, %v734_v21  ;;  %v829_v24 = vmul.f32 %v4314_v20, %v728_v22  ;;  %v740_v25 = vpop.xlane.xlu2 %739 }
  0x9d   : > { %v833_v49 = vmul.f32 %v4314_v20, %v740_v25 }
  0x9e   : > { %v4318_v26 = vsub.f32 %v691_v0, %v831_v23  ;;  %v4320_v27 = vsub.f32 %v689_v1, %v829_v24  ;;  %v4384_v1 = vld [vmem:[%s4295_s27 + $0x58] sm:$0xff] }
  0x9f   : > { %v4361_v53 = vsub.f32 %v4300_v2, %v833_v49  ;;  %v759_v3 = vsel %vm725_vm0, %v4384_v1, 0.0 }
  0xa0   : > { %v895_v28 = vmul.f32 %v4318_v26, %v4318_v26  ;;  %v893_v29 = vmul.f32 %v4320_v27, %v4320_v27 }
  0xa1   : > { %v897_v59 = vmul.f32 %v4361_v53, %v4361_v53 }
  0xa2   : > { %v931_v30 = vsel %vm725_vm0, %v895_v28, 0.0  ;;  %v925_v31 = vsel %vm725_vm0, %v893_v29, 0.0 }
  0xa3   : > { %932 = vadd.xlane.f32.xlu1 %v931_v30  ;;  %926 = vadd.xlane.f32.xlu0 %v925_v31  ;;  %v731_v32 = vpop.xlane.xlu0 %730  ;;  %v737_v33 = vpop.xlane.xlu1 %736  ;;  %v937_v63 = vsel %vm725_vm0, %v897_v59, 0.0 }
  0xa4   : > { %v830_v34 = vmul.f32 %v4314_v20, %v731_v32  ;;  %v743_v35 = vpop.xlane.xlu2 %742  ;;  %v832_v37 = vmul.f32 %v4314_v20, %v737_v33 }
  0xa5   : > { %v834_v38 = vmul.f32 %v4314_v20, %v743_v35 }
  0xa6   : > { %v4337_v40 = vsub.f32 %v690_v6, %v830_v34  ;;  %v4343_v43 = vsub.f32 %v692_v7, %v832_v37  ;;  %v1510_v6 = vld [vmem:[%s6441_s25 + $0x18] sm:$0xff]  ;;  %v1509_v7 = vld [vmem:[%s6441_s25 + $0x10] sm:$0xff] }
  0xa7   : > { %v4341_v42 = vsub.f32 %v694_v8, %v834_v38  ;;  %1623 = vmatpush.msra.mxu0 %v1510_v6  ;;  %v1508_v8 = vld [vmem:[%s6441_s25 + $0x8] sm:$0xff] }
  0xa8   : > { %v894_v45 = vmul.f32 %v4337_v40, %v4337_v40  ;;  %v896_v48 = vmul.f32 %v4343_v43, %v4343_v43 }
  0xa9   : > { %v898_v47 = vmul.f32 %v4341_v42, %v4341_v42  ;;  %1624 = vmatpush.msra.mxu0 %v1509_v7 }
  0xaa   : > { %v928_v46 = vsel %vm725_vm0, %v894_v45, 0.0  ;;  %v934_v52 = vsel %vm725_vm0, %v896_v48, 0.0 }
  0xab   : > { %754 = vadd.xlane.f32.xlu1 %v753_v41  ;;  %748 = vadd.xlane.f32.xlu0 %v747_v44  ;;  %v940_v51 = vsel %vm725_vm0, %v898_v47, 0.0  ;;  %v746_v55 = vpop.xlane.xlu1 %745  ;;  %v4439_v47 = vld [vmem:[%s4295_s27 + $0x70] sm:$0xff] }
  0xac   : > { %929 = vadd.xlane.f32.xlu2 %v928_v46  ;;  %v835_v56 = vmul.f32 %v4314_v20, %v746_v55  ;;  %1625 = vmatpush.msra.mxu0 %v1508_v8  ;;  %v4436_v46 = vld [vmem:[%s4295_s27 + $0x80] sm:$0xff]  ;;  %v768_v59 = vsel %vm725_vm0, %v4439_v47, 0.0 }
  0xae   : > { %v4376_v61 = vsub.f32 %v695_v12, %v835_v56  ;;  %1626 = vmatpush.msra.mxu0 %v1507_v9  ;;  %v774_v56 = vsel %vm725_vm0, %v4436_v46, 0.0 }
  0xb0   : > { %v899_v0 = vmul.f32 %v4376_v61, %v4376_v61 }
  0xb2   : > { %v943_v2 = vsel %vm725_vm0, %v899_v0, 0.0 }
  0xb3   : > { %941 = vadd.xlane.f32.xlu1 %v940_v51  ;;  %935 = vadd.xlane.f32.xlu0 %v934_v52 }
  0xb4   : > { %751 = vadd.xlane.f32.xlu2 %v750_v54 }
  0xbb   : > { %763 = vadd.xlane.f32.xlu1 %v762_v60  ;;  %757 = vadd.xlane.f32.xlu0 %v756_v62 }
  0xbc   : > { %938 = vadd.xlane.f32.xlu2 %v937_v63 }
  0xc3   : > { %944 = vadd.xlane.f32.xlu0 %v943_v2 }
  0xc4   : > { %760 = vadd.xlane.f32.xlu2 %v759_v3 }
  0xcb   : > { %766 = vadd.xlane.f32.xlu0 %v765_v5 }
 0x116   : > { %v933_v10 = vpop.xlane.xlu1 %932  ;;  %v927_v11 = vpop.xlane.xlu0 %926 }
 0x117   : > { %v1023_v12 = vmul.f32 %v933_v10, %v4314_v20  ;;  %v1021_v13 = vmul.f32 %v927_v11, %v4314_v20  ;;  %v4468_v10 = vld [vmem:[%s6342_s15] ss:$0 sm:$0xff] }
 0x119   : > { %v4408_v14 = vadd.f32 1e-05, %v1023_v12  ;;  %v1053_v15 = vadd.f32 1e-05, %v1021_v13 }
 0x11b   : > { %3873 = vrsqrt.f32 %v4408_v14  ;;  %vm1091_vm3 = vweird.f32 %v1053_v15  ;;  %vm1111_vm5 = vweird.f32 %v4408_v14 }
 0x11c   : > { %3875 = vrsqrt.f32 %v1053_v15 }
 0x11e   : > { %v755_v16 = vpop.xlane.xlu1 %754  ;;  %v749_v17 = vpop.xlane.xlu0 %748 }
 0x11f   : > { %v838_v18 = vmul.f32 %v4314_v20, %v755_v16  ;;  %v930_v19 = vpop.xlane.xlu2 %929  ;;  %v836_v21 = vmul.f32 %v4314_v20, %v749_v17 }
 0x120   : > { %v1022_v22 = vmul.f32 %v930_v19, %v4314_v20 }
 0x121   : > { %v4414_v23 = vpop.eup %3873  ;;  %v4417_v24 = vsub.f32 %v4330_v36, %v838_v18  ;;  %v4420_v25 = vsub.f32 %v4335_v39, %v836_v21 }
 0x122   : > { %v3876_v28 = vpop.eup %3875  ;;  %v4422_v29 = vadd.f32 1e-05, %v1022_v22  ;;  %v1106_v30 = vmul.f32 %v4414_v23, %v4408_v14  ;;  %vm1112_vm6 = vweird.f32 %v4414_v23  ;;  %v4483_v22 = vld [vmem:[%s4295_s27 + $0x78] sm:$0xff] }
 0x123   : > { %v1086_v31 = vmul.f32 %v3876_v28, %v1053_v15  ;;  %v902_v32 = vmul.f32 %v4417_v24, %v4417_v24  ;;  %v900_v33 = vmul.f32 %v4420_v25, %v4420_v25  ;;  %vm1092_vm2 = vweird.f32 %v3876_v28  ;;  %vm4495_vm9 = vmor %vm1111_vm5, %vm1112_vm6 }
 0x124   : > { %3877 = vrsqrt.f32 %v4422_v29  ;;  %v1107_v39 = vmul.f32 %v4414_v23, %v1106_v30  ;;  %vm1093_vm4 = vmor %vm1091_vm3, %vm1092_vm2  ;;  %vm1101_vm8 = vweird.f32 %v4422_v29  ;;  %v771_v14 = vsel %vm725_vm0, %v4483_v22, 0.0 }
 0x125   : > { %v1087_v34 = vmul.f32 %v3876_v28, %v1086_v31  ;;  %v952_v35 = vsel %vm725_vm0, %v902_v32, 0.0  ;;  %v946_v36 = vsel %vm725_vm0, %v900_v33, 0.0 }
 0x126   : > { %v942_v37 = vpop.xlane.xlu1 %941  ;;  %953 = vadd.xlane.f32.xlu0 %v952_v35  ;;  %947 = vadd.xlane.f32.xlu2 %v946_v36  ;;  %v936_v38 = vpop.xlane.xlu0 %935  ;;  %v1108_v60 = vmul.f32 0.5, %v1107_v39 }
 0x127   : > { %v1088_v41 = vmul.f32 0.5, %v1087_v34  ;;  %v752_v44 = vpop.xlane.xlu2 %751  ;;  %v1024_v45 = vmul.f32 %v936_v38, %v4314_v20  ;;  %v1026_v54 = vmul.f32 %v942_v37, %v4314_v20 }
 0x128   : > { %v837_v48 = vmul.f32 %v4314_v20, %v752_v44  ;;  %v1109_v11 = vsub.f32 1.5, %v1108_v60 }
 0x129   : > { %v1089_v49 = vsub.f32 1.5, %v1088_v41  ;;  %v4442_v51 = vadd.f32 1e-05, %v1024_v45  ;;  %v4461_v5 = vadd.f32 1e-05, %v1026_v54 }
 0x12a   : > { %v3878_v52 = vpop.eup %3877  ;;  %v4446_v55 = vsub.f32 %v4356_v50, %v837_v48  ;;  %v4459_v50 = vld [vmem:[%s6341_s14] ss:$0 sm:$0xff]  ;;  %v1110_v32 = vmul.f32 %v4414_v23, %v1109_v11 }
 0x12b   : > { %v1090_v62 = vmul.f32 %v3876_v28, %v1089_v49  ;;  %v1096_v63 = vmul.f32 %v3878_v52, %v4422_v29  ;;  %3879 = vrsqrt.f32 %v4442_v51  ;;  %vm1102_vm7 = vweird.f32 %v3878_v52  ;;  %v4515_v49 = vld [vmem:[%s4295_s27 + $0x98] sm:$0xff] }
 0x12c   : > { %v901_v0 = vmul.f32 %v4446_v55, %v4446_v55  ;;  %3881 = vrsqrt.f32 %v4461_v5  ;;  %vm1103_vm10 = vmor %vm1101_vm8, %vm1102_vm7  ;;  %v1114_v54 = vsel %vm4495_vm9, %v4414_v23, %v1110_v32  ;;  %vm1121_vm11 = vweird.f32 %v4442_v51 }
 0x12d   : > { %v1097_v2 = vmul.f32 %v3878_v52, %v1096_v63  ;;  %v1094_v3 = vsel %vm1093_vm4, %v3876_v28, %v1090_v62  ;;  %v4529_v62 = vld [vmem:[%s4295_s27 + $0x88] sm:$0xff]  ;;  %vm1141_vm2 = vweird.f32 %v4461_v5 }
 0x12e   : > { %v764_v6 = vpop.xlane.xlu1 %763  ;;  %775 = vadd.xlane.f32.xlu0 %v774_v56  ;;  %v949_v7 = vsel %vm725_vm0, %v901_v0, 0.0  ;;  %769 = vadd.xlane.f32.xlu2 %v768_v59  ;;  %v758_v8 = vpop.xlane.xlu0 %757  ;;  %v1405_v9 = vmul.f32 %v1094_v3, %v4320_v27  ;;  %v1407_v3 = vmul.f32 %v1114_v54, %v4318_v26  ;;  %v777_v26 = vsel %vm725_vm0, %v4529_v62, 0.0 }
 0x12f   : > { %v1098_v12 = vmul.f32 0.5, %v1097_v2  ;;  %v841_v13 = vmul.f32 %v4314_v20, %v764_v6  ;;  %950 = vadd.xlane.f32.xlu1 %v949_v7  ;;  %v939_v15 = vpop.xlane.xlu2 %938  ;;  %v839_v16 = vmul.f32 %v4314_v20, %v758_v8  ;;  %v783_v2 = vsel %vm725_vm0, %v4515_v49, 0.0 }
 0x130   : > { %v1025_v27 = vmul.f32 %v939_v15, %v4314_v20  ;;  %v1440_v17 = vmul.f32 %v4459_v50, %v1405_v9 }
 0x131   : > { %v1099_v18 = vsub.f32 1.5, %v1098_v12  ;;  %v4477_v19 = vsub.f32 %v4367_v57, %v841_v13  ;;  %v4480_v21 = vsub.f32 %v4370_v58, %v839_v16  ;;  %v4485_v28 = vpop.eup %3879  ;;  %v1442_v13 = vmul.f32 %v4459_v50, %v1407_v3  ;;  %v4564_v57 = vld [vmem:[%s4295_s27 + $0x90] sm:$0xff] }
 0x132   : > { %v4489_v30 = vadd.f32 1e-05, %v1025_v27  ;;  %v1475_v31 = vadd.f32 %v4468_v10, %v1440_v17  ;;  %v1116_v33 = vmul.f32 %v4485_v28, %v4442_v51  ;;  %vm1122_vm12 = vweird.f32 %v4485_v28 }
 0x133   : > { %v1100_v58 = vmul.f32 %v3878_v52, %v1099_v18  ;;  %v905_v29 = vmul.f32 %v4477_v19, %v4477_v19  ;;  %v903_v34 = vmul.f32 %v4480_v21, %v4480_v21  ;;  %vm4543_vm13 = vmor %vm1121_vm11, %vm1122_vm12 }
 0x134   : > { %3883 = vrsqrt.f32 %v4489_v30  ;;  %3557 = vmatmul.msk.f32.vlgmr.msra.gmra.mxu0 %vm725_vm0, %v1475_v31  ;;  %v1117_v35 = vmul.f32 %v4485_v28, %v1116_v33  ;;  %vm1131_vm14 = vweird.f32 %v4489_v30 }
 0x135   : > { %v961_v36 = vsel %vm725_vm0, %v905_v29, 0.0  ;;  %v1104_v37 = vsel %vm1103_vm10, %v3878_v52, %v1100_v58  ;;  %v955_v38 = vsel %vm725_vm0, %v903_v34, 0.0  ;;  %v4520_v52 = vpop.eup %3881  ;;  %v1477_v58 = vadd.f32 %v4468_v10, %v1442_v13 }
 0x136   : > { %962 = vadd.xlane.f32.xlu0 %v961_v36  ;;  %v945_v39 = vpop.xlane.xlu0 %944  ;;  %v1406_v41 = vmul.f32 %v1104_v37, %v4337_v40  ;;  %v1118_v44 = vmul.f32 0.5, %v1117_v35  ;;  %956 = vadd.xlane.f32.xlu2 %v955_v38  ;;  %v1136_v51 = vmul.f32 %v4520_v52, %v4461_v5  ;;  %vm1142_vm3 = vweird.f32 %v4520_v52  ;;  %v4579_v38 = vld [vmem:[%s4295_s27 + $0xa0] sm:$0xff] }
 0x137   : > { %772 = vadd.xlane.f32.xlu1 %v771_v14  ;;  %v761_v45 = vpop.xlane.xlu2 %760  ;;  %v1027_v48 = vmul.f32 %v945_v39, %v4314_v20  ;;  %vm1143_vm4 = vmor %vm1141_vm2, %vm1142_vm3 }
 0x138   : > { %v840_v56 = vmul.f32 %v4314_v20, %v761_v45  ;;  %v1441_v59 = vmul.f32 %v4459_v50, %v1406_v41  ;;  %v1119_v60 = vsub.f32 1.5, %v1118_v44  ;;  %v1137_v15 = vmul.f32 %v4520_v52, %v1136_v51 }
 0x139   : > { %v4526_v40 = vadd.f32 1e-05, %v1027_v48  ;;  %v786_v48 = vsel %vm725_vm0, %v4579_v38, 0.0 }
 0x13a   : > { %v3884_v63 = vpop.eup %3883  ;;  %v4532_v0 = vsub.f32 %v4384_v1, %v840_v56  ;;  %v1476_v23 = vadd.f32 %v4468_v10, %v1441_v59  ;;  %v1120_v6 = vmul.f32 %v4485_v28, %v1119_v60  ;;  %v1138_v29 = vmul.f32 0.5, %v1137_v15 }
 0x13b   : > { %v1126_v7 = vmul.f32 %v3884_v63, %v4489_v30  ;;  %3885 = vrsqrt.f32 %v4526_v40  ;;  %vm1132_vm15 = vweird.f32 %v3884_v63  ;;  %vm1151_vm5 = vweird.f32 %v4526_v40 }
 0x13c   : > { %3558 = vmatmul.msk.f32.gmra.mxu0 %vm725_vm0, %v1476_v23  ;;  %v904_v1 = vmul.f32 %v4532_v0, %v4532_v0  ;;  %v1124_v17 = vsel %vm4543_vm13, %v4485_v28, %v1120_v6  ;;  %vm1133_vm1 = vmor %vm1131_vm14, %vm1132_vm15  ;;  %v1139_v36 = vsub.f32 1.5, %v1138_v29 }
 0x13d   : > { %v1127_v9 = vmul.f32 %v3884_v63, %v1126_v7  ;;  %v1408_v33 = vmul.f32 %v1124_v17, %v4343_v43 }
 0x13e   : > { %784 = vadd.xlane.f32.xlu0 %v783_v2  ;;  %v958_v11 = vsel %vm725_vm0, %v904_v1, 0.0  ;;  %v767_v12 = vpop.xlane.xlu0 %766  ;;  %778 = vadd.xlane.f32.xlu2 %v777_v26  ;;  %v1140_v44 = vmul.f32 %v4520_v52, %v1139_v36 }
 0x13f   : > { %v1128_v16 = vmul.f32 0.5, %v1127_v9  ;;  %959 = vadd.xlane.f32.xlu1 %v958_v11  ;;  %v842_v27 = vmul.f32 %v4314_v20, %v767_v12  ;;  %v1443_v35 = vmul.f32 %v4459_v50, %v1408_v33 }
 0x140   : > { %v1144_v56 = vsel %vm1143_vm4, %v4520_v52, %v1140_v44 }
 0x141   : > { %v3886_v18 = vpop.eup %3885  ;;  %v1129_v31 = vsub.f32 1.5, %v1128_v16  ;;  %v4561_v32 = vsub.f32 %v4390_v4, %v842_v27  ;;  %v780_v4 = vsel %vm725_vm0, %v4564_v57, 0.0  ;;  %v1478_v39 = vadd.f32 %v4468_v10, %v1443_v35 }
 0x142   : > { %v1146_v34 = vmul.f32 %v3886_v18, %v4526_v40  ;;  %vm1152_vm6 = vweird.f32 %v3886_v18  ;;  %v1410_v59 = vmul.f32 %v1144_v56, %v4341_v42 }
 0x143   : > { %v1130_v14 = vmul.f32 %v3884_v63, %v1129_v31  ;;  %v906_v28 = vmul.f32 %v4561_v32, %v4561_v32  ;;  %vm1153_vm7 = vmor %vm1151_vm5, %vm1152_vm6 }
 0x144   : > { %3559 = vmatmul.msk.f32.gmra.mxu0 %vm725_vm0, %v1477_v58  ;;  %v1147_v43 = vmul.f32 %v3886_v18, %v1146_v34 }
 0x145   : > { %v964_v30 = vsel %vm725_vm0, %v906_v28, 0.0  ;;  %v1134_v37 = vsel %vm1133_vm1, %v3884_v63, %v1130_v14  ;;  %v1445_v63 = vmul.f32 %v4459_v50, %v1410_v59 }
 0x146   : > { %965 = vadd.xlane.f32.xlu2 %v964_v30  ;;  %v1409_v41 = vmul.f32 %v1134_v37, %v4361_v53  ;;  %v1148_v45 = vmul.f32 0.5, %v1147_v43 }
 0x147   : > { %781 = vadd.xlane.f32.xlu1 %v780_v4  ;;  %v1480_v2 = vadd.f32 %v4468_v10, %v1445_v63 }
 0x148   : > { %v1444_v54 = vmul.f32 %v4459_v50, %v1409_v41  ;;  %v1149_v5 = vsub.f32 1.5, %v1148_v45  ;;  %v4634_v41 = vld [vmem:[%s4295_s27 + $0xb8] sm:$0xff] }
 0x14a   : > { %v1479_v53 = vadd.f32 %v4468_v10, %v1444_v54  ;;  %v1150_v60 = vmul.f32 %v3886_v18, %v1149_v5 }
 0x14c   : > { %3560 = vmatmul.msk.f32.gmra.mxu0 %vm725_vm0, %v1478_v39  ;;  %v1154_v23 = vsel %vm1153_vm7, %v3886_v18, %v1150_v60  ;;  %v4631_v39 = vld [vmem:[%s4295_s27 + $0xa8] sm:$0xff]  ;;  %v795_v60 = vsel %vm725_vm0, %v4634_v41, 0.0 }
 0x14d   : > { %v1411_v3 = vmul.f32 %v1154_v23, %v4376_v61  ;;  %v789_v59 = vsel %vm725_vm0, %v4631_v39, 0.0 }
 0x14e   : > { %787 = vadd.xlane.f32.xlu2 %v786_v48 }
 0x14f   : > { %v1446_v52 = vmul.f32 %v4459_v50, %v1411_v3 }
 0x151   : > { %v1481_v40 = vadd.f32 %v4468_v10, %v1446_v52 }
 0x154   : > { %3561 = vmatmul.msk.f32.gmra.mxu0 %vm725_vm0, %v1479_v53 }
 0x15c   : > { %3562 = vmatmul.msk.f32.gmra.mxu0 %vm725_vm0, %v1480_v2 }
 0x164   : > { %3563 = vmatmul.msk.f32.gmra.mxu0 %vm725_vm0, %v1481_v40 }
 0x199   : > { %v948_v42 = vpop.xlane.xlu2 %947  ;;  %v954_v51 = vpop.xlane.xlu0 %953 }
 0x19a   : > { %v1028_v6 = vmul.f32 %v948_v42, %v4314_v20  ;;  %v1030_v7 = vmul.f32 %v954_v51, %v4314_v20 }
 0x19c   : > { %v1060_v8 = vadd.f32 1e-05, %v1028_v6  ;;  %v4602_v1 = vadd.f32 1e-05, %v1030_v7 }
 0x19e   : > { %3887 = vrsqrt.f32 %v1060_v8  ;;  %vm1161_vm8 = vweird.f32 %v1060_v8  ;;  %vm1181_vm11 = vweird.f32 %v4602_v1 }
 0x19f   : > { %3889 = vrsqrt.f32 %v4602_v1 }
 0x1a1   : > { %v770_v61 = vpop.xlane.xlu2 %769  ;;  %v776_v26 = vpop.xlane.xlu0 %775 }
 0x1a2   : > { %v951_v9 = vpop.xlane.xlu1 %950  ;;  %v843_v11 = vmul.f32 %v4314_v20, %v770_v61  ;;  %v845_v12 = vmul.f32 %v4314_v20, %v776_v26 }
 0x1a3   : > { %v1029_v13 = vmul.f32 %v951_v9, %v4314_v20 }
 0x1a4   : > { %v3888_v15 = vpop.eup %3887  ;;  %v4609_v16 = vsub.f32 %v4439_v47, %v843_v11  ;;  %v4612_v27 = vsub.f32 %v4436_v46, %v845_v12 }
 0x1a5   : > { %v4614_v17 = vpop.eup %3889  ;;  %v1156_v18 = vmul.f32 %v3888_v15, %v1060_v8  ;;  %v4616_v31 = vadd.f32 1e-05, %v1029_v13  ;;  %vm1162_vm9 = vweird.f32 %v3888_v15  ;;  %v4669_v13 = vld [vmem:[%s4295_s27 + $0xb0] sm:$0xff] }
 0x1a6   : > { %v907_v58 = vmul.f32 %v4609_v16, %v4609_v16  ;;  %v909_v33 = vmul.f32 %v4612_v27, %v4612_v27  ;;  %v1176_v14 = vmul.f32 %v4614_v17, %v4602_v1  ;;  %vm4636_vm10 = vmor %vm1161_vm8, %vm1162_vm9  ;;  %vm1182_vm13 = vweird.f32 %v4614_v17 }
 0x1a7   : > { %v1157_v29 = vmul.f32 %v3888_v15, %v1156_v18  ;;  %3891 = vrsqrt.f32 %v4616_v31  ;;  %vm1171_vm14 = vweird.f32 %v4616_v31  ;;  %vm4692_vm1 = vmor %vm1181_vm11, %vm1182_vm13 }
 0x1a8   : > { %v967_v46 = vsel %vm725_vm0, %v907_v58, 0.0  ;;  %v973_v47 = vsel %vm725_vm0, %v909_v33, 0.0  ;;  %v1177_v36 = vmul.f32 %v4614_v17, %v1176_v14 }
 0x1a9   : > { %v1158_v34 = vmul.f32 0.5, %v1157_v29  ;;  %968 = vadd.xlane.f32.xlu1 %v967_v46  ;;  %974 = vadd.xlane.f32.xlu2 %v973_v47  ;;  %v963_v28 = vpop.xlane.xlu0 %962  ;;  %v957_v30 = vpop.xlane.xlu2 %956 }
 0x1aa   : > { %v773_v4 = vpop.xlane.xlu1 %772  ;;  %v1031_v37 = vmul.f32 %v957_v30, %v4314_v20  ;;  %v1033_v53 = vmul.f32 %v963_v28, %v4314_v20  ;;  %v1178_v63 = vmul.f32 0.5, %v1177_v36 }
 0x1ab   : > { %v1159_v35 = vsub.f32 1.5, %v1158_v34  ;;  %v844_v43 = vmul.f32 %v4314_v20, %v773_v4 }
 0x1ac   : > { %v4643_v5 = vadd.f32 1e-05, %v1031_v37  ;;  %v4658_v51 = vadd.f32 1e-05, %v1033_v53  ;;  %v1179_v61 = vsub.f32 1.5, %v1178_v63 }
 0x1ad   : > { %v3892_v44 = vpop.eup %3891  ;;  %v1160_v45 = vmul.f32 %v3888_v15, %v1159_v35  ;;  %v4641_v54 = vsub.f32 %v4483_v22, %v844_v43 }
 0x1ae   : > { %v1166_v56 = vmul.f32 %v3892_v44, %v4616_v31  ;;  %3893 = vrsqrt.f32 %v4643_v5  ;;  %vm1172_vm12 = vweird.f32 %v3892_v44  ;;  %v1180_v14 = vmul.f32 %v4614_v17, %v1179_v61 }
 0x1af   : > { %v908_v23 = vmul.f32 %v4641_v54, %v4641_v54  ;;  %v1164_v2 = vsel %vm4636_vm10, %v3888_v15, %v1160_v45  ;;  %3895 = vrsqrt.f32 %v4658_v51  ;;  %vm1173_vm15 = vmor %vm1171_vm14, %vm1172_vm12  ;;  %v792_v31 = vsel %vm725_vm0, %v4669_v13, 0.0 }
 0x1b0   : > { %v1167_v22 = vmul.f32 %v3892_v44, %v1166_v56  ;;  %v1412_v40 = vmul.f32 %v1164_v2, %v4420_v25  ;;  %v1184_v37 = vsel %vm4692_vm1, %v4614_v17, %v1180_v14  ;;  %vm1191_vm2 = vweird.f32 %v4643_v5 }
 0x1b1   : > { %v970_v3 = vsel %vm725_vm0, %v908_v23, 0.0  ;;  %790 = vadd.xlane.f32.xlu1 %v789_v59  ;;  %796 = vadd.xlane.f32.xlu2 %v795_v60  ;;  %v785_v52 = vpop.xlane.xlu0 %784  ;;  %v779_v7 = vpop.xlane.xlu2 %778  ;;  %v4723_v23 = vld [vmem:[%s4295_s27 + $0xd0] sm:$0xff]  ;;  %vm1211_vm8 = vweird.f32 %v4658_v51 }
 0x1b2   : > { %v1168_v42 = vmul.f32 0.5, %v1167_v22  ;;  %971 = vadd.xlane.f32.xlu0 %v970_v3  ;;  %v960_v6 = vpop.xlane.xlu1 %959  ;;  %v848_v8 = vmul.f32 %v4314_v20, %v785_v52  ;;  %v846_v9 = vmul.f32 %v4314_v20, %v779_v7  ;;  %v1447_v11 = vmul.f32 %v4459_v50, %v1412_v40 }
 0x1b3   : > { %v1032_v26 = vmul.f32 %v960_v6, %v4314_v20  ;;  %v1414_v3 = vmul.f32 %v1184_v37, %v4417_v24  ;;  %v804_v24 = vsel %vm725_vm0, %v4723_v23, 0.0 }
 0x1b4   : > { %v1169_v12 = vsub.f32 1.5, %v1168_v42  ;;  %v4666_v25 = vsub.f32 %v4515_v49, %v848_v8  ;;  %v4671_v15 = vpop.eup %3893  ;;  %v4678_v58 = vsub.f32 %v4529_v62, %v846_v9  ;;  %v1482_v49 = vadd.f32 %v4468_v10, %v1447_v11  ;;  %v4747_v11 = vld [vmem:[%s4295_s27 + $0xc8] sm:$0xff] }
 0x1b5   : > { %v4675_v18 = vadd.f32 1e-05, %v1032_v26  ;;  %v1186_v29 = vmul.f32 %v4671_v15, %v4643_v5  ;;  %v4712_v56 = vpop.eup %3895  ;;  %vm1192_vm3 = vweird.f32 %v4671_v15  ;;  %v1449_v61 = vmul.f32 %v4459_v50, %v1414_v3 }
 0x1b6   : > { %v1170_v33 = vmul.f32 %v3892_v44, %v1169_v12  ;;  %v910_v62 = vmul.f32 %v4678_v58, %v4678_v58  ;;  %3564 = vmatmul.msk.f32.gmra.mxu0 %vm725_vm0, %v1482_v49  ;;  %v912_v28 = vmul.f32 %v4666_v25, %v4666_v25  ;;  %v1206_v52 = vmul.f32 %v4712_v56, %v4658_v51  ;;  %vm4735_vm4 = vmor %vm1191_vm2, %vm1192_vm3 }
 0x1b7   : > { %3897 = vrsqrt.f32 %v4675_v18  ;;  %v1187_v34 = vmul.f32 %v4671_v15, %v1186_v29  ;;  %vm1201_vm5 = vweird.f32 %v4675_v18  ;;  %v1484_v14 = vadd.f32 %v4468_v10, %v1449_v61 }
 0x1b8   : > { %v1174_v47 = vsel %vm1173_vm15, %v3892_v44, %v1170_v33  ;;  %v976_v4 = vsel %vm725_vm0, %v910_v62, 0.0  ;;  %v982_v43 = vsel %vm725_vm0, %v912_v28, 0.0  ;;  %v1207_v26 = vmul.f32 %v4712_v56, %v1206_v52 }
 0x1b9   : > { %v1413_v30 = vmul.f32 %v1174_v47, %v4446_v55  ;;  %v1188_v35 = vmul.f32 0.5, %v1187_v34  ;;  %977 = vadd.xlane.f32.xlu1 %v976_v4  ;;  %v966_v36 = vpop.xlane.xlu2 %965  ;;  %983 = vadd.xlane.f32.xlu2 %v982_v43  ;;  %v4710_v55 = vld [vmem:[%s4295_s27 + $0xc0] sm:$0xff]  ;;  %vm1212_vm9 = vweird.f32 %v4712_v56 }
 0x1ba   : > { %793 = vadd.xlane.f32.xlu0 %v792_v31  ;;  %v782_v1 = vpop.xlane.xlu1 %781  ;;  %v1034_v45 = vmul.f32 %v966_v36, %v4314_v20  ;;  %v798_v2 = vsel %vm725_vm0, %v4710_v55, 0.0  ;;  %v801_v31 = vsel %vm725_vm0, %v4747_v11, 0.0  ;;  %v1208_v46 = vmul.f32 0.5, %v1207_v26  ;;  %vm1213_vm10 = vmor %vm1211_vm8, %vm1212_vm9 }
 0x1bb   : > { %v847_v44 = vmul.f32 %v4314_v20, %v782_v1  ;;  %v1448_v48 = vmul.f32 %v4459_v50, %v1413_v30  ;;  %v1189_v53 = vsub.f32 1.5, %v1188_v35 }
 0x1bc   : > { %v4719_v17 = vadd.f32 1e-05, %v1034_v45  ;;  %v1209_v28 = vsub.f32 1.5, %v1208_v46 }
 0x1bd   : > { %v3898_v59 = vpop.eup %3897  ;;  %v4717_v60 = vsub.f32 %v4564_v57, %v847_v44  ;;  %v1483_v63 = vadd.f32 %v4468_v10, %v1448_v48  ;;  %v1190_v5 = vmul.f32 %v4671_v15, %v1189_v53 }
 0x1be   : > { %v1196_v22 = vmul.f32 %v3898_v59, %v4675_v18  ;;  %3899 = vrsqrt.f32 %v4719_v17  ;;  %vm1202_vm6 = vweird.f32 %v3898_v59  ;;  %v1210_v36 = vmul.f32 %v4712_v56, %v1209_v28 }
 0x1bf   : > { %v911_v57 = vmul.f32 %v4717_v60, %v4717_v60  ;;  %3565 = vmatmul.msk.f32.gmra.mxu0 %vm725_vm0, %v1483_v63  ;;  %v1194_v12 = vsel %vm4735_vm4, %v4671_v15, %v1190_v5  ;;  %vm1203_vm7 = vmor %vm1201_vm5, %vm1202_vm6  ;;  %vm1221_vm11 = vweird.f32 %v4719_v17 }
 0x1c0   : > { %v1197_v42 = vmul.f32 %v3898_v59, %v1196_v22  ;;  %v1415_v62 = vmul.f32 %v1194_v12, %v4480_v21  ;;  %v4767_v21 = vld [vmem:[%s4295_s27 + $0xd8] sm:$0xff]  ;;  %v1214_v51 = vsel %vm1213_vm10, %v4712_v56, %v1210_v36  ;;  %v4826_v36 = vld [vmem:[%s4295_s27 + $0xf0] sm:$0xff] }
 0x1c1   : > { %v979_v6 = vsel %vm725_vm0, %v911_v57, 0.0  ;;  %799 = vadd.xlane.f32.xlu1 %v798_v2  ;;  %v788_v8 = vpop.xlane.xlu2 %787  ;;  %805 = vadd.xlane.f32.xlu2 %v804_v24  ;;  %v807_v37 = vsel %vm725_vm0, %v4767_v21, 0.0  ;;  %v1417_v48 = vmul.f32 %v1214_v51, %v4477_v19 }
 0x1c2   : > { %v1198_v7 = vmul.f32 0.5, %v1197_v42  ;;  %980 = vadd.xlane.f32.xlu0 %v979_v6  ;;  %v849_v9 = vmul.f32 %v4314_v20, %v788_v8  ;;  %v1450_v18 = vmul.f32 %v4459_v50, %v1415_v62 }
 0x1c4   : > { %v1199_v33 = vsub.f32 1.5, %v1198_v7  ;;  %v3900_v29 = vpop.eup %3899  ;;  %v4754_v49 = vsub.f32 %v4579_v38, %v849_v9  ;;  %v1485_v35 = vadd.f32 %v4468_v10, %v1450_v18 }
 0x1c5   : > { %v1216_v15 = vmul.f32 %v3900_v29, %v4719_v17  ;;  %vm1222_vm12 = vweird.f32 %v3900_v29 }
 0x1c6   : > { %v1200_v47 = vmul.f32 %v3898_v59, %v1199_v33  ;;  %v913_v34 = vmul.f32 %v4754_v49, %v4754_v49  ;;  %vm1223_vm13 = vmor %vm1221_vm11, %vm1222_vm12 }
 0x1c7   : > { %3566 = vmatmul.msk.f32.gmra.mxu0 %vm725_vm0, %v1484_v14  ;;  %v1217_v30 = vmul.f32 %v3900_v29, %v1216_v15 }
 0x1c8   : > { %v985_v38 = vsel %vm725_vm0, %v913_v34, 0.0  ;;  %v1204_v4 = vsel %vm1203_vm7, %v3898_v59, %v1200_v47  ;;  %v1452_v59 = vmul.f32 %v4459_v50, %v1417_v48 }
 0x1c9   : > { %986 = vadd.xlane.f32.xlu1 %v985_v38  ;;  %v1416_v1 = vmul.f32 %v1204_v4, %v4532_v0  ;;  %v1218_v43 = vmul.f32 0.5, %v1217_v30  ;;  %v4817_v38 = vpop.f32.mrf.mxu0 }
 0x1ca   : > { %802 = vadd.xlane.f32.xlu0 %v801_v31  ;;  %v1487_v22 = vadd.f32 %v4468_v10, %v1452_v59 }
 0x1cb   : > { %v1451_v44 = vmul.f32 %v4459_v50, %v1416_v1  ;;  %v1219_v45 = vsub.f32 1.5, %v1218_v43  ;;  %v4823_v1 = vld [vmem:[%s4295_s27 + $0xe0] sm:$0xff] }
 0x1cc   : > { %v810_v48 = vsel %vm725_vm0, %v4823_v1, 0.0 }
 0x1cd   : > { %v1486_v0 = vadd.f32 %v4468_v10, %v1451_v44  ;;  %v1220_v53 = vmul.f32 %v3900_v29, %v1219_v45 }
 0x1cf   : > { %3567 = vmatmul.msk.f32.gmra.mxu0 %vm725_vm0, %v1485_v35  ;;  %v1224_v63 = vsel %vm1223_vm13, %v3900_v29, %v1220_v53  ;;  %v816_v53 = vsel %vm725_vm0, %v4826_v36, 0.0 }
 0x1d0   : > { %v1418_v2 = vmul.f32 %v1224_v63, %v4561_v32 }
 0x1d1   : > { %808 = vadd.xlane.f32.xlu1 %v807_v37 }
 0x1d2   : > { %v1453_v56 = vmul.f32 %v4459_v50, %v1418_v2 }
 0x1d4   : > { %v1488_v17 = vadd.f32 %v4468_v10, %v1453_v56 }
 0x1d7   : > { %3568 = vmatmul.msk.f32.gmra.mxu0 %vm725_vm0, %v1486_v0 }
 0x1df   : > { %3569 = vmatmul.msk.f32.gmra.mxu0 %vm725_vm0, %v1487_v22 }
 0x1e7   : > { %3570 = vmatmul.msk.f32.gmra.mxu0 %vm725_vm0, %v1488_v17 }
 0x21c   : > { %v969_v19 = vpop.xlane.xlu1 %968  ;;  %v975_v3 = vpop.xlane.xlu2 %974 }
 0x21d   : > { %v1035_v5 = vmul.f32 %v969_v19, %v4314_v20  ;;  %v1037_v52 = vmul.f32 %v975_v3, %v4314_v20 }
 0x21f   : > { %v1067_v57 = vadd.f32 1e-05, %v1035_v5  ;;  %v4792_v40 = vadd.f32 1e-05, %v1037_v52 }
 0x221   : > { %3901 = vrsqrt.f32 %v1067_v57  ;;  %vm1231_vm14 = vweird.f32 %v1067_v57  ;;  %vm1251_vm3 = vweird.f32 %v4792_v40 }
 0x222   : > { %3903 = vrsqrt.f32 %v4792_v40 }
 0x224   : > { %v791_v32 = vpop.xlane.xlu1 %790  ;;  %v797_v42 = vpop.xlane.xlu2 %796 }
 0x225   : > { %v850_v24 = vmul.f32 %v4314_v20, %v791_v32  ;;  %v852_v6 = vmul.f32 %v4314_v20, %v797_v42  ;;  %v972_v7 = vpop.xlane.xlu0 %971 }
 0x226   : > { %v1036_v8 = vmul.f32 %v972_v7, %v4314_v20 }
 0x227   : > { %v3902_v61 = vpop.eup %3901  ;;  %v4799_v26 = vsub.f32 %v4631_v39, %v850_v24  ;;  %v4802_v9 = vsub.f32 %v4634_v41, %v852_v6 }
 0x228   : > { %v4804_v12 = vpop.eup %3903  ;;  %v1226_v33 = vmul.f32 %v3902_v61, %v1067_v57  ;;  %v4806_v29 = vadd.f32 1e-05, %v1036_v8  ;;  %vm1232_vm15 = vweird.f32 %v3902_v61  ;;  %v4852_v8 = vld [vmem:[%s4295_s27 + $0xe8] sm:$0xff] }
 0x229   : > { %v914_v14 = vmul.f32 %v4799_v26, %v4799_v26  ;;  %v916_v31 = vmul.f32 %v4802_v9, %v4802_v9  ;;  %v1246_v46 = vmul.f32 %v4804_v12, %v4792_v40  ;;  %vm1233_vm1 = vmor %vm1231_vm14, %vm1232_vm15  ;;  %vm1252_vm4 = vweird.f32 %v4804_v12 }
 0x22a   : > { %v1227_v62 = vmul.f32 %v3902_v61, %v1226_v33  ;;  %3905 = vrsqrt.f32 %v4806_v29  ;;  %v4856_v33 = vpop.f32.mrf.mxu0  ;;  %vm1241_vm5 = vweird.f32 %v4806_v29  ;;  %vm4877_vm7 = vmor %vm1251_vm3, %vm1252_vm4 }
 0x22b   : > { %v988_v39 = vsel %vm725_vm0, %v914_v14, 0.0  ;;  %v994_v41 = vsel %vm725_vm0, %v916_v31, 0.0  ;;  %v1247_v28 = vmul.f32 %v4804_v12, %v1246_v46 }
 0x22c   : > { %v1228_v47 = vmul.f32 0.5, %v1227_v62  ;;  %989 = vadd.xlane.f32.xlu0 %v988_v39  ;;  %995 = vadd.xlane.f32.xlu1 %v994_v41  ;;  %v978_v15 = vpop.xlane.xlu1 %977  ;;  %v984_v30 = vpop.xlane.xlu2 %983 }
 0x22d   : > { %v794_v34 = vpop.xlane.xlu0 %793  ;;  %v1038_v4 = vmul.f32 %v978_v15, %v4314_v20  ;;  %v1040_v0 = vmul.f32 %v984_v30, %v4314_v20  ;;  %v1248_v63 = vmul.f32 0.5, %v1247_v28 }
 0x22e   : > { %v1229_v18 = vsub.f32 1.5, %v1228_v47  ;;  %v851_v35 = vmul.f32 %v4314_v20, %v794_v34 }
 0x22f   : > { %v4828_v44 = vadd.f32 1e-05, %v1038_v4  ;;  %v4844_v19 = vadd.f32 1e-05, %v1040_v0  ;;  %v1249_v52 = vsub.f32 1.5, %v1248_v63 }
 0x230   : > { %v3906_v43 = vpop.eup %3905  ;;  %v1230_v37 = vmul.f32 %v3902_v61, %v1229_v18  ;;  %v4831_v51 = vsub.f32 %v4669_v13, %v851_v35 }
 0x231   : > { %v1236_v45 = vmul.f32 %v3906_v43, %v4806_v29  ;;  %3907 = vrsqrt.f32 %v4828_v44  ;;  %vm1242_vm2 = vweird.f32 %v3906_v43  ;;  %v1250_v40 = vmul.f32 %v4804_v12, %v1249_v52 }
 0x232   : > { %v1234_v59 = vsel %vm1233_vm1, %v3902_v61, %v1230_v37  ;;  %v915_v22 = vmul.f32 %v4831_v51, %v4831_v51  ;;  %3909 = vrsqrt.f32 %v4844_v19  ;;  %vm1243_vm6 = vmor %vm1241_vm5, %vm1242_vm2  ;;  %v813_v29 = vsel %vm725_vm0, %v4852_v8, 0.0 }
 0x233   : > { %v1237_v2 = vmul.f32 %v3906_v43, %v1236_v45  ;;  %v1419_v13 = vmul.f32 %v1234_v59, %v4609_v16  ;;  %v1254_v37 = vsel %vm4877_vm7, %v4804_v12, %v1250_v40  ;;  %v4896_v59 = vld [vmem:[%s4295_s27 + $0xf8] sm:$0xff]  ;;  %vm1261_vm8 = vweird.f32 %v4828_v44  ;;  %s6421_s27 = smov 64  }
 0x234   : > { %811 = vadd.xlane.f32.xlu0 %v810_v48  ;;  %817 = vadd.xlane.f32.xlu1 %v816_v53  ;;  %v991_v56 = vsel %vm725_vm0, %v915_v22, 0.0  ;;  %v800_v3 = vpop.xlane.xlu1 %799  ;;  %v806_v32 = vpop.xlane.xlu2 %805  ;;  %v1421_v12 = vmul.f32 %v1254_v37, %v4612_v27  ;;  %vm1281_vm14 = vweird.f32 %v4844_v19 }
 0x235   : > { %v1238_v17 = vmul.f32 0.5, %v1237_v2  ;;  %992 = vadd.xlane.f32.xlu2 %v991_v56  ;;  %v1454_v5 = vmul.f32 %v4459_v50, %v1419_v13  ;;  %v853_v57 = vmul.f32 %v4314_v20, %v800_v3  ;;  %v981_v42 = vpop.xlane.xlu0 %980  ;;  %v855_v16 = vmul.f32 %v4314_v20, %v806_v32  ;;  %v4905_v13 = vpop.f32.mrf.mxu0 }
 0x236   : > { %v1039_v6 = vmul.f32 %v981_v42, %v4314_v20  ;;  %v1456_v32 = vmul.f32 %v4459_v50, %v1421_v12 }
 0x237   : > { %v1239_v24 = vsub.f32 1.5, %v1238_v17  ;;  %v1489_v7 = vadd.f32 %v4468_v10, %v1454_v5  ;;  %v4854_v61 = vpop.eup %3907  ;;  %v4862_v14 = vsub.f32 %v4710_v55, %v853_v57  ;;  %v4868_v46 = vsub.f32 %v4723_v23, %v855_v16 }
 0x238   : > { %v1256_v62 = vmul.f32 %v4854_v61, %v4828_v44  ;;  %v1071_v39 = vadd.f32 1e-05, %v1039_v6  ;;  %v4891_v45 = vpop.eup %3909  ;;  %vm1262_vm9 = vweird.f32 %v4854_v61  ;;  %v819_v44 = vsel %vm725_vm0, %v4896_v59, 0.0 }
 0x239   : > { %v1240_v31 = vmul.f32 %v3906_v43, %v1239_v24  ;;  %3571 = vmatmul.msk.f32.gmra.mxu0 %vm725_vm0, %v1489_v7  ;;  %v917_v55 = vmul.f32 %v4862_v14, %v4862_v14  ;;  %v919_v15 = vmul.f32 %v4868_v46, %v4868_v46  ;;  %v1276_v17 = vmul.f32 %v4891_v45, %v4844_v19  ;;  %vm4912_vm10 = vmor %vm1261_vm8, %vm1262_vm9 }
 0x23a   : > { %v1257_v23 = vmul.f32 %v4854_v61, %v1256_v62  ;;  %3911 = vrsqrt.f32 %v1071_v39  ;;  %vm1271_vm11 = vweird.f32 %v1071_v39  ;;  %v1491_v40 = vadd.f32 %v4468_v10, %v1456_v32 }
 0x23b   : > { %v1244_v47 = vsel %vm1243_vm6, %v3906_v43, %v1240_v31  ;;  %v997_v34 = vsel %vm725_vm0, %v917_v55, 0.0  ;;  %v1003_v4 = vsel %vm725_vm0, %v919_v15, 0.0  ;;  %v1277_v24 = vmul.f32 %v4891_v45, %v1276_v17 }
 0x23c   : > { %v1258_v18 = vmul.f32 0.5, %v1257_v23  ;;  %998 = vadd.xlane.f32.xlu0 %v997_v34  ;;  %v987_v28 = vpop.xlane.xlu1 %986  ;;  %v1420_v30 = vmul.f32 %v1244_v47, %v4641_v54  ;;  %1004 = vadd.xlane.f32.xlu1 %v1003_v4  ;;  %vm1282_vm15 = vweird.f32 %v4891_v45 }
 0x23d   : > { %814 = vadd.xlane.f32.xlu2 %v813_v29  ;;  %v1041_v35 = vmul.f32 %v987_v28, %v4314_v20  ;;  %v803_v43 = vpop.xlane.xlu0 %802  ;;  %v1278_v29 = vmul.f32 0.5, %v1277_v24  ;;  %v4934_v23 = vpop.f32.mrf.mxu0  ;;  %vm1283_vm1 = vmor %vm1281_vm14, %vm1282_vm15 }
 0x23e   : > { %v1259_v0 = vsub.f32 1.5, %v1258_v18  ;;  %v854_v48 = vmul.f32 %v4314_v20, %v803_v43  ;;  %v1455_v53 = vmul.f32 %v4459_v50, %v1420_v30 }
 0x23f   : > { %v1073_v54 = vadd.f32 1e-05, %v1041_v35  ;;  %v1279_v15 = vsub.f32 1.5, %v1278_v29 }
 0x240   : > { %v4901_v63 = vsub.f32 %v4747_v11, %v854_v48  ;;  %v1490_v22 = vadd.f32 %v4468_v10, %v1455_v53  ;;  %v3912_v2 = vpop.eup %3911  ;;  %v1260_v56 = vmul.f32 %v4854_v61, %v1259_v0 }
 0x241   : > { %3913 = vrsqrt.f32 %v1073_v54  ;;  %v1266_v11 = vmul.f32 %v3912_v2, %v1071_v39  ;;  %vm1272_vm12 = vweird.f32 %v3912_v2  ;;  %v1280_v4 = vmul.f32 %v4891_v45, %v1279_v15 }
 0x242   : > { %3572 = vmatmul.msk.f32.gmra.mxu0 %vm725_vm0, %v1490_v22  ;;  %v918_v27 = vmul.f32 %v4901_v63, %v4901_v63  ;;  %v1264_v42 = vsel %vm4912_vm10, %v4854_v61, %v1260_v56  ;;  %vm1273_vm13 = vmor %vm1271_vm11, %vm1272_vm12  ;;  %vm1291_vm2 = vweird.f32 %v1073_v54 }
 0x243   : > { %v1267_v5 = vmul.f32 %v3912_v2, %v1266_v11  ;;  %v1422_v55 = vmul.f32 %v1264_v42, %v4678_v58  ;;  %v1284_v37 = vsel %vm1283_vm1, %v4891_v45, %v1280_v4 }
 0x244   : > { %820 = vadd.xlane.f32.xlu0 %v819_v44  ;;  %v809_v52 = vpop.xlane.xlu1 %808  ;;  %v1000_v57 = vsel %vm725_vm0, %v918_v27, 0.0  ;;  %v1424_v48 = vmul.f32 %v1284_v37, %v4666_v25 }
 0x245   : > { %v856_v16 = vmul.f32 %v4314_v20, %v809_v52  ;;  %1001 = vadd.xlane.f32.xlu2 %v1000_v57  ;;  %v1268_v6 = vmul.f32 0.5, %v1267_v5  ;;  %v4945_v43 = vpop.f32.mrf.mxu0 }
 0x246   : > { %v1459_v53 = vmul.f32 %v4459_v50, %v1424_v48 }
 0x247   : > { %v3914_v7 = vpop.eup %3913  ;;  %v4927_v31 = vsub.f32 %v4767_v21, %v856_v16  ;;  %v1269_v62 = vsub.f32 1.5, %v1268_v6  ;;  %v1457_v21 = vmul.f32 %v4459_v50, %v1422_v55 }
 0x248   : > { %v1286_v41 = vmul.f32 %v3914_v7, %v1073_v54  ;;  %vm1292_vm3 = vweird.f32 %v3914_v7 }
 0x249   : > { %v920_v61 = vmul.f32 %v4927_v31, %v4927_v31  ;;  %v1270_v47 = vmul.f32 %v3912_v2, %v1269_v62  ;;  %v1492_v58 = vadd.f32 %v4468_v10, %v1457_v21  ;;  %vm1293_vm4 = vmor %vm1291_vm2, %vm1292_vm3 }
 0x24a   : > { %3573 = vmatmul.msk.f32.gmra.mxu0 %vm725_vm0, %v1491_v40  ;;  %v1287_v18 = vmul.f32 %v3914_v7, %v1286_v41 }
 0x24b   : > { %v1006_v39 = vsel %vm725_vm0, %v920_v61, 0.0  ;;  %v1274_v34 = vsel %vm1273_vm13, %v3912_v2, %v1270_v47  ;;  %v1494_v2 = vadd.f32 %v4468_v10, %v1459_v53 }
 0x24c   : > { %v1423_v28 = vmul.f32 %v1274_v34, %v4717_v60  ;;  %v1288_v30 = vmul.f32 0.5, %v1287_v18 }
 0x24d   : > { %1007 = vadd.xlane.f32.xlu2 %v1006_v39  ;;  %v4952_v12 = vpop.f32.mrf.mxu0 }
 0x24e   : > { %v1458_v35 = vmul.f32 %v4459_v50, %v1423_v28  ;;  %v1289_v0 = vsub.f32 1.5, %v1288_v30 }
 0x250   : > { %v1493_v19 = vadd.f32 %v4468_v10, %v1458_v35  ;;  %v1290_v60 = vmul.f32 %v3914_v7, %v1289_v0 }
 0x252   : > { %3574 = vmatmul.msk.f32.gmra.mxu0 %vm725_vm0, %v1492_v58  ;;  %v1294_v22 = vsel %vm1293_vm4, %v3914_v7, %v1290_v60 }
 0x253   : > { %v1425_v45 = vmul.f32 %v1294_v22, %v4754_v49 }
 0x255   : > { %v1460_v54 = vmul.f32 %v4459_v50, %v1425_v45  ;;  %v4959_v25 = vpop.f32.mrf.mxu0 }
 0x257   : > { %v1495_v56 = vadd.f32 %v4468_v10, %v1460_v54 }
 0x25a   : > { %3575 = vmatmul.msk.f32.gmra.mxu0 %vm725_vm0, %v1493_v19  ;;  %v5013_v19 = vld [vmem:[%s5007_s21 + $0x8] sm:$0xff] }
 0x25d   : > { %v4962_v17 = vpop.f32.mrf.mxu0 }
 0x262   : > { %3576 = vmatmul.msk.f32.gmra.mxu0 %vm725_vm0, %v1494_v2 }
 0x265   : > { %v4964_v44 = vpop.f32.mrf.mxu0 }
 0x26a   : > { %3577 = vmatmul.msk.f32.gmra.mxu0 %vm725_vm0, %v1495_v56 }
 0x26d   : > { %v4966_v3 = vpop.f32.mrf.mxu0 }
 0x275   : > { %v4968_v11 = vpop.f32.mrf.mxu0 }
 0x27d   : > { %v4970_v27 = vpop.f32.mrf.mxu0 }
 0x285   : > { %v4976_v32 = vpop.f32.mrf.mxu0 }
 0x29f   : > { %v996_v49 = vpop.xlane.xlu1 %995  ;;  %v990_v5 = vpop.xlane.xlu0 %989 }
 0x2a0   : > { %v1044_v50 = vmul.f32 %v996_v49, %v4314_v20  ;;  %v1042_v10 = vmul.f32 %v990_v5, %v4314_v20  ;;  %v1727_v5 = vsel %vm725_vm0, %v5013_v19, 0.0 }
 0x2a2   : > { %v4974_v52 = vadd.f32 1e-05, %v1044_v50  ;;  %v1074_v57 = vadd.f32 1e-05, %v1042_v10 }
 0x2a4   : > { %3915 = vrsqrt.f32 %v4974_v52  ;;  %vm1301_vm5 = vweird.f32 %v1074_v57  ;;  %vm1321_vm8 = vweird.f32 %v4974_v52 }
 0x2a5   : > { %3917 = vrsqrt.f32 %v1074_v57 }
 0x2a7   : > { %v818_v42 = vpop.xlane.xlu1 %817  ;;  %v812_v24 = vpop.xlane.xlu0 %811 }
 0x2a8   : > { %v859_v16 = vmul.f32 %v4314_v20, %v818_v42  ;;  %v993_v6 = vpop.xlane.xlu2 %992  ;;  %v857_v7 = vmul.f32 %v4314_v20, %v812_v24 }
 0x2a9   : > { %v1043_v62 = vmul.f32 %v993_v6, %v4314_v20 }
 0x2aa   : > { %v4982_v40 = vpop.eup %3915  ;;  %v4985_v55 = vsub.f32 %v4826_v36, %v859_v16  ;;  %v4988_v29 = vsub.f32 %v4823_v1, %v857_v7  ;;  %v5000_v36 = vpop.f32.mrf.mxu0 }
 0x2ab   : > { %v3918_v41 = vpop.eup %3917  ;;  %v4990_v61 = vadd.f32 1e-05, %v1043_v62  ;;  %v1316_v47 = vmul.f32 %v4982_v40, %v4974_v52  ;;  %vm1322_vm9 = vweird.f32 %v4982_v40  ;;  %v5079_v52 = vld [vmem:[%s6461_s5] ss:$0 sm:$0xff]  ;;  %s6551_s5 = smov 64  }
 0x2ac   : > { %v1296_v39 = vmul.f32 %v3918_v41, %v1074_v57  ;;  %v923_v21 = vmul.f32 %v4985_v55, %v4985_v55  ;;  %v921_v15 = vmul.f32 %v4988_v29, %v4988_v29  ;;  %vm1302_vm6 = vweird.f32 %v3918_v41  ;;  %vm5066_vm12 = vmor %vm1321_vm8, %vm1322_vm9 }
 0x2ad   : > { %3919 = vrsqrt.f32 %v4990_v61  ;;  %v1317_v58 = vmul.f32 %v4982_v40, %v1316_v47  ;;  %vm5015_vm7 = vmor %vm1301_vm5, %vm1302_vm6  ;;  %vm1311_vm11 = vweird.f32 %v4990_v61 }
 0x2ae   : > { %v1297_v1 = vmul.f32 %v3918_v41, %v1296_v39  ;;  %v1015_v34 = vsel %vm725_vm0, %v923_v21, 0.0  ;;  %v1009_v18 = vsel %vm725_vm0, %v921_v15, 0.0  ;;  %v5043_v39 = vld [vmem:[%s6341_s14] ss:$0 sm:$0xff] }
 0x2af   : > { %1016 = vadd.xlane.f32.xlu2 %v1015_v34  ;;  %1010 = vadd.xlane.f32.xlu0 %v1009_v18  ;;  %v999_v30 = vpop.xlane.xlu0 %998  ;;  %v1005_v35 = vpop.xlane.xlu1 %1004  ;;  %v1318_v54 = vmul.f32 0.5, %v1317_v58  ;;  %v5058_v58 = vld [vmem:[%s6342_s15] ss:$0 sm:$0xff] }
 0x2b0   : > { %v1298_v28 = vmul.f32 0.5, %v1297_v1  ;;  %v815_v4 = vpop.xlane.xlu2 %814  ;;  %v1045_v0 = vmul.f32 %v999_v30, %v4314_v20  ;;  %v1047_v22 = vmul.f32 %v1005_v35, %v4314_v20  ;;  %v5048_v1 = vld [vmem:[%s5007_s21] sm:$0xff] }
 0x2b1   : > { %v858_v37 = vmul.f32 %v4314_v20, %v815_v4  ;;  %v1319_v6 = vsub.f32 1.5, %v1318_v54 }
 0x2b2   : > { %v1299_v48 = vsub.f32 1.5, %v1298_v28  ;;  %v5023_v45 = vadd.f32 1e-05, %v1045_v0  ;;  %v5033_v42 = vadd.f32 1e-05, %v1047_v22 }
 0x2b3   : > { %v3920_v60 = vpop.eup %3919  ;;  %v5021_v2 = vsub.f32 %v4852_v8, %v858_v37  ;;  %v1320_v4 = vmul.f32 %v4982_v40, %v1319_v6  ;;  %v1724_v37 = vsel %vm725_vm0, %v5048_v1, 0.0 }
 0x2b4   : > { %v1300_v56 = vmul.f32 %v3918_v41, %v1299_v48  ;;  %v1306_v49 = vmul.f32 %v3920_v60, %v4990_v61  ;;  %3921 = vrsqrt.f32 %v5023_v45  ;;  %vm1312_vm10 = vweird.f32 %v3920_v60 }
 0x2b5   : > { %v922_v50 = vmul.f32 %v5021_v2, %v5021_v2  ;;  %3923 = vrsqrt.f32 %v5033_v42  ;;  %vm1313_vm13 = vmor %vm1311_vm11, %vm1312_vm10  ;;  %vm1331_vm14 = vweird.f32 %v5023_v45  ;;  %vm1351_vm5 = vweird.f32 %v5033_v42 }
 0x2b6   : > { %v1304_v10 = vsel %vm5015_vm7, %v3918_v41, %v1300_v56  ;;  %v1307_v57 = vmul.f32 %v3920_v60, %v1306_v49  ;;  %v1670_v8 = vpop.f32.mrf.mxu0  ;;  %v1324_v56 = vsel %vm5066_vm12, %v4982_v40, %v1320_v4 }
 0x2b7   : > { %v1012_v24 = vsel %vm725_vm0, %v922_v50, 0.0  ;;  %1728 = vadd.xlane.f32.xlu2 %v1727_v5  ;;  %v1426_v16 = vmul.f32 %v1304_v10, %v4799_v26  ;;  %v821_v62 = vpop.xlane.xlu0 %820 }
 0x2b8   : > { %v1308_v7 = vmul.f32 0.5, %v1307_v57  ;;  %1013 = vadd.xlane.f32.xlu1 %v1012_v24  ;;  %v1002_v47 = vpop.xlane.xlu2 %1001  ;;  %v860_v41 = vmul.f32 %v4314_v20, %v821_v62 }
 0x2b9   : > { %v1461_v21 = vmul.f32 %v5043_v39, %v1426_v16  ;;  %v1046_v26 = vmul.f32 %v1002_v47, %v4314_v20  ;;  %v1428_v16 = vmul.f32 %v1324_v56, %v4802_v9 }
 0x2ba   : > { %v1309_v15 = vsub.f32 1.5, %v1308_v7  ;;  %v3922_v34 = vpop.eup %3921  ;;  %v5053_v18 = vsub.f32 %v4896_v59, %v860_v41  ;;  %v5101_v41 = vadd.f32 %v5079_v52, %v1670_v8 }
 0x2bb   : > { %v1496_v28 = vadd.f32 %v5058_v58, %v1461_v21  ;;  %v1326_v59 = vmul.f32 %v3922_v34, %v5023_v45  ;;  %v1078_v35 = vadd.f32 1e-05, %v1046_v26  ;;  %vm1332_vm15 = vweird.f32 %v3922_v34 }
 0x2bc   : > { %v1310_v30 = vmul.f32 %v3920_v60, %v1309_v15  ;;  %v924_v0 = vmul.f32 %v5053_v18, %v5053_v18  ;;  %vm1333_vm1 = vmor %vm1331_vm14, %vm1332_vm15  ;;  %v1463_v9 = vmul.f32 %v5043_v39, %v1428_v16 }
 0x2bd   : > { %3578 = vmatmul.msk.f32.gmra.mxu0 %vm725_vm0, %v1496_v28  ;;  %v1327_v53 = vmul.f32 %v3922_v34, %v1326_v59  ;;  %3925 = vrsqrt.f32 %v1078_v35  ;;  %v5110_v28 = vadd.f32 %v5079_v52, %v5000_v36  ;;  %vm1341_vm2 = vweird.f32 %v1078_v35 }
 0x2be   : > { %v1314_v48 = vsel %vm1313_vm13, %v3920_v60, %v1310_v30  ;;  %v1018_v22 = vsel %vm725_vm0, %v924_v0, 0.0  ;;  %v5086_v60 = vpop.eup %3923  ;;  %v1498_v30 = vadd.f32 %v5058_v58, %v1463_v9 }
 0x2bf   : > { %v1427_v54 = vmul.f32 %v1314_v48, %v4831_v51  ;;  %v1328_v49 = vmul.f32 0.5, %v1327_v53  ;;  %v1673_v5 = vpop.f32.mrf.mxu0  ;;  %1019 = vadd.xlane.f32.xlu0 %v1018_v22  ;;  %v1346_v7 = vmul.f32 %v5086_v60, %v5033_v42  ;;  %v5129_v22 = vadd.f32 %v5079_v52, %v4970_v27 }
 0x2c0   : > { %1725 = vadd.xlane.f32.xlu1 %v1724_v37  ;;  %v5089_v50 = vadd.f32 %v5079_v52, %v1673_v5  ;;  %v1008_v10 = vpop.xlane.xlu2 %1007  ;;  %vm1352_vm6 = vweird.f32 %v5086_v60 }
 0x2c1   : > { %v1462_v57 = vmul.f32 %v5043_v39, %v1427_v54  ;;  %v1329_v24 = vsub.f32 1.5, %v1328_v49  ;;  %v1048_v51 = vmul.f32 %v1008_v10, %v4314_v20  ;;  %v1347_v15 = vmul.f32 %v5086_v60, %v1346_v7  ;;  %vm1353_vm7 = vmor %vm1351_vm5, %vm1352_vm6 }
 0x2c2   : > { %3591 = vmatpush.xpose.msk.msra.mxu2 %vm725_vm0, %v5089_v50  ;;  %v5140_v10 = vadd.f32 %v5079_v52, %v4968_v11 }
 0x2c3   : > { %v1497_v40 = vadd.f32 %v5058_v58, %v1462_v57  ;;  %v3926_v6 = vpop.eup %3925  ;;  %v1330_v62 = vmul.f32 %v3922_v34, %v1329_v24  ;;  %v1080_v47 = vadd.f32 1e-05, %v1048_v51  ;;  %v1348_v37 = vmul.f32 0.5, %v1347_v15 }
 0x2c4   : > { %v1336_v45 = vmul.f32 %v3926_v6, %v1078_v35  ;;  %vm1342_vm3 = vweird.f32 %v3926_v6  ;;  %v5149_v57 = vadd.f32 %v5079_v52, %v4966_v3 }
 0x2c5   : > { %3579 = vmatmul.msk.f32.gmra.mxu0 %vm725_vm0, %v1497_v40  ;;  %3927 = vrsqrt.f32 %v1080_v47  ;;  %v1334_v26 = vsel %vm1333_vm1, %v3922_v34, %v1330_v62  ;;  %v5118_v34 = vadd.f32 %v5079_v52, %v4976_v32  ;;  %vm1343_vm4 = vmor %vm1341_vm2, %vm1342_vm3  ;;  %v1349_v48 = vsub.f32 1.5, %v1348_v37 }
 0x2c6   : > { %v1337_v21 = vmul.f32 %v3926_v6, %v1336_v45  ;;  %3592 = vmatpush.xpose.msk.msra.mxu2 %vm725_vm0, %v5101_v41  ;;  %v1429_v8 = vmul.f32 %v1334_v26, %v4862_v14  ;;  %v3784_v14 = vpack.i.bf16 %v5101_v41, %v5089_v50  ;;  %vm1361_vm8 = vweird.f32 %v1080_v47 }
 0x2c7   : > { %v1350_v49 = vmul.f32 %v5086_v60, %v1349_v48  ;;  %v5157_v40 = vadd.f32 %v5079_v52, %v4964_v44  ;;  %v5195_v62 = vadd.f32 %v5079_v52, %v4934_v23  ;;  %v5213_v23 = vadd.f32 %v5079_v52, %v4817_v38  ;;  %v5236_v38 = vld [vmem:[%s6462_s26 + $0x8] sm:$0xff] }
 0x2c8   : > { %v1338_v4 = vmul.f32 0.5, %v1337_v21  ;;  %v1464_v35 = vmul.f32 %v5043_v39, %v1429_v8  ;;  %v5242_v21 = vld [vmem:[%s6462_s26] sm:$0xff] }
 0x2c9   : > { %v1354_v27 = vsel %vm1353_vm7, %v5086_v60, %v1350_v49 }
 0x2ca   : > { %v1339_v61 = vsub.f32 1.5, %v1338_v4  ;;  %3593 = vmatpush.xpose.msk.msra.mxu2 %vm725_vm0, %v5110_v28  ;;  %v1499_v56 = vadd.f32 %v5058_v58, %v1464_v35  ;;  %v1431_v11 = vmul.f32 %v1354_v27, %v4868_v46  ;;  %v5165_v46 = vadd.f32 %v5079_v52, %v4962_v17 }
 0x2cb   : > { %v3928_v59 = vpop.eup %3927  ;;  %v5181_v17 = vadd.f32 %v5079_v52, %v4952_v12  ;;  %v5201_v12 = vadd.f32 %v5079_v52, %v4905_v13  ;;  %v5222_v13 = vld [vmem:[%s6462_s26 + $0x18] sm:$0xff] }
 0x2cc   : > { %v1340_v0 = vmul.f32 %v3926_v6, %v1339_v61  ;;  %v1356_v36 = vmul.f32 %v3928_v59, %v1080_v47  ;;  %vm1362_vm9 = vweird.f32 %v3928_v59  ;;  %v1466_v3 = vmul.f32 %v5043_v39, %v1431_v11  ;;  %v5217_v47 = vpop.f32.mrf.mxu0  ;;  %1799 = vmatpush.msra.mxu1 %v5222_v13 }
 0x2cd   : > { %3580 = vmatmul.msk.f32.gmra.mxu0 %vm725_vm0, %v1498_v30  ;;  %vm1363_vm10 = vmor %vm1361_vm8, %vm1362_vm9 }
 0x2ce   : > { %3594 = vmatpush.xpose.msk.msra.mxu2 %vm725_vm0, %v5118_v34  ;;  %v1344_v53 = vsel %vm1343_vm4, %v3926_v6, %v1340_v0  ;;  %v1357_v32 = vmul.f32 %v3928_v59, %v1356_v36  ;;  %v1501_v44 = vadd.f32 %v5058_v58, %v1466_v3  ;;  %v5173_v6 = vadd.f32 %v5079_v52, %v4959_v25 }
 0x2cf   : > { %3785 = vrot.lane.b32.xlu2 %v3784_v14, %s6399_s30  ;;  %v1430_v54 = vmul.f32 %v1344_v53, %v4901_v63  ;;  %v5188_v25 = vadd.f32 %v5079_v52, %v4945_v43  ;;  %v5207_v43 = vadd.f32 %v5079_v52, %v4856_v33  ;;  %v5228_v33 = vld [vmem:[%s6462_s26 + $0x10] sm:$0xff] }
 0x2d0   : > { %v1358_v5 = vmul.f32 0.5, %v1357_v32  ;;  %1800 = vmatpush.msra.mxu1 %v5228_v33 }
 0x2d1   : > { %v1465_v63 = vmul.f32 %v5043_v39, %v1430_v54 }
 0x2d2   : > { %3595 = vmatpush.xpose.msk.msra.mxu2 %vm725_vm0, %v5129_v22  ;;  %v1359_v42 = vsub.f32 1.5, %v1358_v5  ;;  %1801 = vmatpush.msra.mxu1 %v5236_v38 }
 0x2d3   : > { %v1500_v24 = vadd.f32 %v5058_v58, %v1465_v63 }
 0x2d4   : > { %v1360_v51 = vmul.f32 %v3928_v59, %v1359_v42  ;;  %v5230_v45 = vpop.f32.mrf.mxu0  ;;  %1802 = vmatpush.msra.mxu1 %v5242_v21 }
 0x2d5   : > { %3581 = vmatmul.msk.f32.gmra.mxu0 %vm725_vm0, %v1499_v56 }
 0x2d6   : > { %3596 = vmatpush.xpose.msk.msra.mxu2 %vm725_vm0, %v5140_v10  ;;  %v1364_v60 = vsel %vm1363_vm10, %v3928_v59, %v1360_v51 }
 0x2d7   : > { %v1432_v16 = vmul.f32 %v1364_v60, %v4927_v31 }
 0x2d9   : > { %v1467_v7 = vmul.f32 %v5043_v39, %v1432_v16 }
 0x2da   : > { %3597 = vmatpush.xpose.msk.msra.mxu2 %vm725_vm0, %v5149_v57 }
 0x2db   : > { %v1502_v31 = vadd.f32 %v5058_v58, %v1467_v7 }
 0x2dc   : > { %v5245_v9 = vpop.f32.mrf.mxu0 }
 0x2dd   : > { %3582 = vmatmul.msk.f32.gmra.mxu0 %vm725_vm0, %v1500_v24 }
 0x2de   : > { %3598 = vmatpush.xpose.msk.msra.mxu2 %vm725_vm0, %v5157_v40 }
 0x2e2   : > { %3599 = vmatpush.xpose.msk.msra.mxu2 %vm725_vm0, %v5165_v46 }
 0x2e4   : > { %v5249_v59 = vpop.f32.mrf.mxu0 }
 0x2e5   : > { %3583 = vmatmul.msk.f32.gmra.mxu0 %vm725_vm0, %v1501_v44 }
 0x2e6   : > { %3600 = vmatpush.xpose.msk.msra.mxu2 %vm725_vm0, %v5173_v6 }
 0x2ea   : > { %3601 = vmatpush.xpose.msk.msra.mxu2 %vm725_vm0, %v5181_v17 }
 0x2ec   : > { %v5262_v27 = vpop.f32.mrf.mxu0 }
 0x2ed   : > { %3584 = vmatmul.msk.f32.gmra.mxu0 %vm725_vm0, %v1502_v31 }
 0x2ee   : > { %3602 = vmatpush.xpose.msk.msra.mxu2 %vm725_vm0, %v5188_v25 }
 0x2f2   : > { %3603 = vmatpush.xpose.msk.msra.mxu2 %vm725_vm0, %v5195_v62 }
 0x2f6   : > { %3604 = vmatpush.xpose.msk.msra.mxu2 %vm725_vm0, %v5201_v12 }
 0x2fa   : > { %3605 = vmatpush.xpose.msk.msra.mxu2 %vm725_vm0, %v5207_v43 }
 0x2fe   : > { %3606 = vmatpush.xpose.msk.msra.mxu2 %vm725_vm0, %v5213_v23 }
 0x322   : > { %v1017_v15 = vpop.xlane.xlu2 %1016  ;;  %v1011_v26 = vpop.xlane.xlu0 %1010 }
 0x323   : > { %v1051_v4 = vmul.f32 %v1017_v15, %v4314_v20  ;;  %v1049_v8 = vmul.f32 %v1011_v26, %v4314_v20 }
 0x325   : > { %v1083_v61 = vadd.f32 1e-05, %v1051_v4  ;;  %v1081_v30 = vadd.f32 1e-05, %v1049_v8 }
 0x327   : > { %3929 = vrsqrt.f32 %v1083_v61  ;;  %vm1371_vm11 = vweird.f32 %v1081_v30  ;;  %vm1391_vm14 = vweird.f32 %v1083_v61 }
 0x328   : > { %3931 = vrsqrt.f32 %v1081_v30 }
 0x32a   : > { %v1729_v37 = vpop.xlane.xlu2 %1728 }
 0x32b   : > { %v1014_v0 = vpop.xlane.xlu1 %1013  ;;  %v1731_v36 = vmul.f32 %v1729_v37, %v4314_v20 }
 0x32c   : > { %v1050_v14 = vmul.f32 %v1014_v0, %v4314_v20 }
 0x32d   : > { %v5253_v35 = vpop.eup %3929  ;;  %v5256_v48 = vsub.f32 %v5013_v19, %v1731_v36 }
 0x32e   : > { %v3932_v53 = vpop.eup %3931  ;;  %v1082_v32 = vadd.f32 1e-05, %v1050_v14  ;;  %v1386_v54 = vmul.f32 %v5253_v35, %v1083_v61  ;;  %vm1392_vm15 = vweird.f32 %v5253_v35 }
 0x32f   : > { %v1366_v56 = vmul.f32 %v3932_v53, %v1081_v30  ;;  %v1735_v49 = vmul.f32 %v5256_v48, %v5256_v48  ;;  %vm1372_vm12 = vweird.f32 %v3932_v53  ;;  %vm5287_vm2 = vmor %vm1391_vm14, %vm1392_vm15 }
 0x330   : > { %3933 = vrsqrt.f32 %v1082_v32  ;;  %v1387_v11 = vmul.f32 %v5253_v35, %v1386_v54  ;;  %vm1373_vm13 = vmor %vm1371_vm11, %vm1372_vm12  ;;  %vm1381_vm3 = vweird.f32 %v1082_v32 }
 0x331   : > { %v1367_v5 = vmul.f32 %v3932_v53, %v1366_v56  ;;  %v1739_v63 = vsel %vm725_vm0, %v1735_v49, 0.0 }
 0x332   : > { %1740 = vadd.xlane.f32.xlu1 %v1739_v63  ;;  %v3786_v42 = vpop.permute.xlu2 %3785  ;;  %v1020_v60 = vpop.xlane.xlu0 %1019  ;;  %v1388_v8 = vmul.f32 0.5, %v1387_v11 }
 0x333   : > { %v1368_v24 = vmul.f32 0.5, %v1367_v5  ;;  %v1726_v51 = vpop.xlane.xlu1 %1725  ;;  %v5265_v3 = vunpack.i.l.bf16 %v3786_v42  ;;  %v1052_v44 = vmul.f32 %v1020_v60, %v4314_v20  ;;  %v5269_v31 = vunpack.i.h.bf16 %v3786_v42 }
 0x334   : > { %v1730_v16 = vmul.f32 %v1726_v51, %v4314_v20  ;;  %v1389_v5 = vsub.f32 1.5, %v1388_v8 }
 0x335   : > { %6463 = vst [vmem:[#allocation10_spill] sm:$0xff] %v5265_v3  ;;  %v1369_v7 = vsub.f32 1.5, %v1368_v24  ;;  %2044 = vmatpush.msrb.mxu1 %v5265_v3  ;;  %v1084_v4 = vadd.f32 1e-05, %v1052_v44 }
 0x336   : > { %6464 = vst [vmem:[#allocation11_spill] sm:$0xff] %v5269_v31  ;;  %v3934_v15 = vpop.eup %3933  ;;  %v5274_v26 = vsub.f32 %v5048_v1, %v1730_v16  ;;  %v1390_v51 = vmul.f32 %v5253_v35, %v1389_v5 }
 0x337   : > { %v1370_v37 = vmul.f32 %v3932_v53, %v1369_v7  ;;  %v1376_v0 = vmul.f32 %v3934_v15, %v1082_v32  ;;  %2045 = vmatpush.msrb.mxu1 %v5269_v31  ;;  %3935 = vrsqrt.f32 %v1084_v4  ;;  %vm1382_vm1 = vweird.f32 %v3934_v15 }
 0x338   : > { %v1734_v36 = vmul.f32 %v5274_v26, %v5274_v26  ;;  %vm1383_vm4 = vmor %vm1381_vm3, %vm1382_vm1  ;;  %vm1401_vm5 = vweird.f32 %v1084_v4 }
 0x339   : > { %v1374_v14 = vsel %vm1373_vm13, %v3932_v53, %v1370_v37  ;;  %v1377_v54 = vmul.f32 %v3934_v15, %v1376_v0  ;;  %v1394_v37 = vsel %vm5287_vm2, %v5253_v35, %v1390_v51  ;;  %v3779_v35 = vpack.i.bf16 %v5118_v34, %v5110_v28 }
 0x33a   : > { %v1433_v56 = vmul.f32 %v1374_v14, %v4988_v29  ;;  %v5280_v49 = vpop.f32.mrf.mxu0  ;;  %v1736_v30 = vsel %vm725_vm0, %v1734_v36, 0.0  ;;  %v1435_v32 = vmul.f32 %v1394_v37, %v4985_v55 }
 0x33b   : > { %v1378_v63 = vmul.f32 0.5, %v1377_v54  ;;  %1737 = vadd.xlane.f32.xlu0 %v1736_v30 }
 0x33c   : > { %v1468_v42 = vmul.f32 %v5043_v39, %v1433_v56  ;;  %v1470_v56 = vmul.f32 %v5043_v39, %v1435_v32 }
 0x33d   : > { %v1379_v11 = vsub.f32 1.5, %v1378_v63  ;;  %v3936_v24 = vpop.eup %3935 }
 0x33e   : > { %v1503_v53 = vadd.f32 %v5058_v58, %v1468_v42  ;;  %v1396_v16 = vmul.f32 %v3936_v24, %v1084_v4  ;;  %vm1402_vm6 = vweird.f32 %v3936_v24  ;;  %v1505_v4 = vadd.f32 %v5058_v58, %v1470_v56 }
 0x33f   : > { %v1380_v60 = vmul.f32 %v3934_v15, %v1379_v11  ;;  %vm1403_vm7 = vmor %vm1401_vm5, %vm1402_vm6 }
 0x340   : > { %3585 = vmatmul.msk.f32.gmra.mxu0 %vm725_vm0, %v1503_v53  ;;  %v1397_v44 = vmul.f32 %v3936_v24, %v1396_v16 }
 0x341   : > { %v1384_v61 = vsel %vm1383_vm4, %v3934_v15, %v1380_v60 }
 0x342   : > { %v1434_v7 = vmul.f32 %v1384_v61, %v5021_v2  ;;  %v5293_v8 = vpop.f32.mrf.mxu0  ;;  %v1398_v0 = vmul.f32 0.5, %v1397_v44 }
 0x344   : > { %v1469_v36 = vmul.f32 %v5043_v39, %v1434_v7  ;;  %v1399_v14 = vsub.f32 1.5, %v1398_v0 }
 0x346   : > { %v1504_v54 = vadd.f32 %v5058_v58, %v1469_v36  ;;  %v1400_v15 = vmul.f32 %v3936_v24, %v1399_v14 }
 0x348   : > { %3586 = vmatmul.msk.f32.gmra.mxu0 %vm725_vm0, %v1504_v54  ;;  %v1404_v30 = vsel %vm1403_vm7, %v3936_v24, %v1400_v15 }
 0x349   : > { %v1436_v5 = vmul.f32 %v1404_v30, %v5053_v18 }
 0x34a   : > { %v5302_v2 = vpop.f32.mrf.mxu0 }
 0x34b   : > { %v1471_v63 = vmul.f32 %v5043_v39, %v1436_v5 }
 0x34d   : > { %v1506_v42 = vadd.f32 %v5058_v58, %v1471_v63 }
 0x34f   : > { %3780 = vrot.lane.b32.xlu0 %v3779_v35, %s6399_s30 }
 0x350   : > { %3587 = vmatmul.msk.f32.gmra.mxu0 %vm725_vm0, %v1505_v4 }
 0x352   : > { %v5311_v55 = vpop.f32.mrf.mxu0 }
 0x358   : > { %3588 = vmatmul.msk.f32.gmra.mxu0 %vm725_vm0, %v1506_v42 }
 0x35a   : > { %v1703_v11 = vpop.f32.mrf.mxu0 }
 0x35b   : > { %v5317_v24 = vadd.f32 %v5079_v52, %v1703_v11 }
 0x35d   : > { %6467 = vst [vmem:[#allocation12_spill] sm:$0xff] %v5317_v24  ;;  %v3789_v18 = vpack.i.bf16 %v5317_v24, %v5181_v17 }
 0x35f   : > { %3790 = vrot.lane.b32.xlu2 %v3789_v18, %s6399_s30 }
 0x362   : > { %v1706_v53 = vpop.f32.mrf.mxu0 }
 0x363   : > { %v5323_v51 = vadd.f32 %v5079_v52, %v1706_v53 }
 0x365   : > { %6468 = vst [vmem:[#allocation13_spill] sm:$0xff] %v5323_v51  ;;  %v3794_v39 = vpack.i.bf16 %v5323_v51, %v5173_v6 }
 0x367   : > { %3795 = vrot.lane.b32.xlu0 %v3794_v39, %s6399_s30 }
 0x36a   : > { %v1709_v58 = vpop.f32.mrf.mxu0 }
 0x36b   : > { %v5329_v29 = vadd.f32 %v5079_v52, %v1709_v58 }
 0x36d   : > { %6469 = vst [vmem:[#allocation14_spill] sm:$0xff] %v5329_v29  ;;  %v3799_v60 = vpack.i.bf16 %v5329_v29, %v5165_v46 }
 0x36f   : > { %3800 = vrot.lane.b32.xlu1 %v3799_v60, %s6399_s30 }
 0x3a5   : > { %v1741_v16 = vpop.xlane.xlu1 %1740 }
 0x3a6   : > { %v1743_v61 = vmul.f32 %v1741_v16, %v4314_v20 }
 0x3a8   : > { %v1745_v44 = vadd.f32 1e-05, %v1743_v61 }
 0x3aa   : > { %3937 = vrsqrt.f32 %v1745_v44  ;;  %vm1762_vm8 = vweird.f32 %v1745_v44 }
 0x3ae   : > { %v1738_v7 = vpop.xlane.xlu0 %1737 }
 0x3af   : > { %v1742_v37 = vmul.f32 %v1738_v7, %v4314_v20 }
 0x3b0   : > { %v3938_v0 = vpop.eup %3937 }
 0x3b1   : > { %v1744_v36 = vadd.f32 1e-05, %v1742_v37  ;;  %v1757_v14 = vmul.f32 %v3938_v0, %v1745_v44  ;;  %vm1763_vm9 = vweird.f32 %v3938_v0  ;;  %v5355_v37 = vld [vmem:[%s6343_s16] ss:$0 sm:$0xff] }
 0x3b2   : > { %vm5341_vm11 = vmor %vm1762_vm8, %vm1763_vm9  ;;  %6475 = vst [vmem:[#allocation18_spill] sm:$0xff] %v5355_v37 }
 0x3b3   : > { %3939 = vrsqrt.f32 %v1744_v36  ;;  %v1758_v32 = vmul.f32 %v3938_v0, %v1757_v14  ;;  %vm1752_vm12 = vweird.f32 %v1744_v36 }
 0x3b5   : > { %v1759_v15 = vmul.f32 0.5, %v1758_v32 }
 0x3b7   : > { %v1760_v5 = vsub.f32 1.5, %v1759_v15 }
 0x3b9   : > { %v3940_v54 = vpop.eup %3939  ;;  %v1761_v53 = vmul.f32 %v3938_v0, %v1760_v5 }
 0x3ba   : > { %v1747_v56 = vmul.f32 %v3940_v54, %v1744_v36  ;;  %vm1753_vm10 = vweird.f32 %v3940_v54 }
 0x3bb   : > { %vm1754_vm13 = vmor %vm1752_vm12, %vm1753_vm10  ;;  %v1765_v36 = vsel %vm5341_vm11, %v3938_v0, %v1761_v53  ;;  %v5377_v0 = vadd.f32 %v5079_v52, %v5311_v55  ;;  %v5393_v55 = vadd.f32 %v5079_v52, %v5293_v8 }
 0x3bc   : > { %v1748_v30 = vmul.f32 %v3940_v54, %v1747_v56  ;;  %v1767_v56 = vmul.f32 %v1765_v36, %v5256_v48 }
 0x3bd   : > { %v1712_v35 = vpop.f32.mrf.mxu0  ;;  %6478 = vst [vmem:[#allocation21_spill] sm:$0xff] %v5377_v0  ;;  %v3834_v39 = vpack.i.bf16 %v5393_v55, %v5201_v12 }
 0x3be   : > { %v1749_v4 = vmul.f32 0.5, %v1748_v30  ;;  %v5337_v63 = vadd.f32 %v5079_v52, %v1712_v35  ;;  %v1772_v35 = vmul.f32 %v5355_v37, %v1767_v56  ;;  %6480 = vst [vmem:[#allocation23_spill] sm:$0xff] %v5393_v55 }
 0x3c0   : > { %6470 = vst [vmem:[#allocation15_spill] sm:$0xff] %v5337_v63  ;;  %v1750_v42 = vsub.f32 1.5, %v1749_v4  ;;  %v3804_v11 = vpack.i.bf16 %v5337_v63, %v5157_v40  ;;  %v3824_v4 = vpack.i.bf16 %v5377_v0, %v5188_v25 }
 0x3c1   : > { %v3781_v18 = vpop.permute.xlu0 %3780 }
 0x3c2   : > { %v1751_v58 = vmul.f32 %v3940_v54, %v1750_v42  ;;  %v5345_v60 = vunpack.i.l.bf16 %v3781_v18  ;;  %3805 = vrot.lane.b32.xlu2 %v3804_v11, %s6399_s30  ;;  %v5348_v61 = vunpack.i.h.bf16 %v3781_v18  ;;  %v5397_v11 = vadd.f32 %v5079_v52, %v5302_v2 }
 0x3c3   : > { %v5415_v2 = vadd.f32 %v5079_v52, %v5280_v49 }
 0x3c4   : > { %6473 = vst [vmem:[#allocation16_spill] sm:$0xff] %v5345_v60  ;;  %v1755_v16 = vsel %vm1754_vm13, %v3940_v54, %v1751_v58  ;;  %2046 = vmatpush.msrb.mxu1 %v5345_v60  ;;  %v5367_v54 = vld [vmem:[%s6344_s17] ss:$0 sm:$0xff]  ;;  %v3829_v58 = vpack.i.bf16 %v5397_v11, %v5195_v62  ;;  %vm2392_vm13 = vcmask 523264  }
 0x3c5   : > { %6474 = vst [vmem:[#allocation17_spill] sm:$0xff] %v5348_v61  ;;  %v1715_v44 = vpop.f32.mrf.mxu0  ;;  %v1766_v7 = vmul.f32 %v1755_v16, %v5274_v26  ;;  %v1777_v42 = vadd.f32 %v5367_v54, %v1772_v35  ;;  %v3839_v16 = vpack.i.bf16 %v5415_v2, %v5207_v43 }
 0x3c6   : > { %v5360_v14 = vadd.f32 %v5079_v52, %v1715_v44  ;;  %2047 = vmatpush.msrb.mxu1 %v5348_v61  ;;  %6477 = vst [vmem:[#allocation20_spill] sm:$0xff] %v5367_v54  ;;  %v5426_v44 = vadd.f32 %v5079_v52, %v5262_v27  ;;  %v5443_v27 = vadd.f32 %v5079_v52, %v5245_v9 }
 0x3c7   : > { %v1771_v32 = vmul.f32 %v5355_v37, %v1766_v7  ;;  %6481 = vst [vmem:[#allocation24_spill] sm:$0xff] %v5397_v11  ;;  %v5437_v7 = vadd.f32 %v5079_v52, %v5249_v59  ;;  %v5458_v59 = vadd.f32 %v5079_v52, %v5217_v47  ;;  %v5488_v47 = vld [vmem:[%s6489_s7 + $0x10] sm:$0xff] }
 0x3c8   : > { %6476 = vst [vmem:[#allocation19_spill] sm:$0xff] %v5360_v14  ;;  %v3809_v26 = vpack.i.bf16 %v5360_v14, %v5149_v57  ;;  %v3844_v49 = vpack.i.bf16 %v5426_v44, %v5213_v23 }
 0x3c9   : > { %v1776_v15 = vadd.f32 %v5367_v54, %v1771_v32  ;;  %6483 = vst [vmem:[#allocation26_spill] sm:$0xff] %v5415_v2  ;;  %v3849_v36 = vpack.i.bf16 %v5443_v27, %v5437_v7  ;;  %v5452_v32 = vadd.f32 %v5079_v52, %v5230_v45  ;;  %v5494_v45 = vld [vmem:[%s6489_s7 + $0x8] sm:$0xff] }
 0x3ca   : > { %3810 = vrot.lane.b32.xlu0 %v3809_v26, %s6399_s30  ;;  %6484 = vst [vmem:[#allocation27_spill] sm:$0xff] %v5426_v44  ;;  %v5496_v26 = vpop.permute.xlu2 %3790 }
 0x3cb   : > { %3589 = vmatmul.msk.f32.vlgmr.msra.gmra.mxu1 %vm725_vm0, %v1776_v15  ;;  %6485 = vst [vmem:[#allocation28_spill] sm:$0xff] %v5437_v7  ;;  %v3854_v9 = vpack.i.bf16 %v5458_v59, %v5452_v32  ;;  %v5502_v15 = vld [vmem:[%s6489_s7] sm:$0xff] }
 0x3cc   : > { %6486 = vst [vmem:[#allocation29_spill] sm:$0xff] %v5443_v27 }
 0x3cd   : > { %v1718_v30 = vpop.f32.mrf.mxu0  ;;  %6487 = vst [vmem:[#allocation30_spill] sm:$0xff] %v5452_v32 }
 0x3ce   : > { %v5381_v5 = vadd.f32 %v5079_v52, %v1718_v30  ;;  %6488 = vst [vmem:[#allocation31_spill] sm:$0xff] %v5458_v59 }
 0x3cf   : > { %6490 = vst [vmem:[#allocation32_spill] sm:$0xff] %v5502_v15 }
 0x3d0   : > { %6479 = vst [vmem:[#allocation22_spill] sm:$0xff] %v5381_v5  ;;  %v3814_v48 = vpack.i.bf16 %v5381_v5, %v5140_v10 }
 0x3d2   : > { %3825 = vrot.lane.b32.xlu0 %v3824_v4, %s6399_s30  ;;  %3815 = vrot.lane.b32.xlu2 %v3814_v48, %s6399_s30  ;;  %v5510_v48 = vld [vmem:[%s6491_s0] ss:$0 sm:$0xff] }
 0x3d3   : > { %3590 = vmatmul.msk.f32.gmra.mxu1 %vm725_vm0, %v1777_v42  ;;  %6492 = vst [vmem:[#allocation33_spill] sm:$0xff] %v5510_v48 }
 0x3d5   : > { %v1721_v18 = vpop.f32.mrf.mxu0 }
 0x3d6   : > { %v5400_v53 = vadd.f32 %v5079_v52, %v1721_v18  ;;  %v5482_v52 = vld [vmem:[%s6489_s7 + $0x18] sm:$0xff] }
 0x3d8   : > { %6482 = vst [vmem:[#allocation25_spill] sm:$0xff] %v5400_v53  ;;  %3608 = vmatpush.xpose.msk.msra.mxu3 %vm725_vm0, %v5400_v53  ;;  %v3819_v8 = vpack.i.bf16 %v5400_v53, %v5129_v22 }
 0x3d9   : > { %v5505_v30 = vpop.permute.xlu0 %3795 }
 0x3da   : > { %3835 = vrot.lane.b32.xlu0 %v3834_v39, %s6399_s30  ;;  %3830 = vrot.lane.b32.xlu2 %v3829_v58, %s6399_s30 }
 0x3db   : > { %3820 = vrot.lane.b32.xlu1 %v3819_v8, %s6399_s30 }
 0x3dc   : > { %3609 = vmatpush.xpose.msk.msra.mxu3 %vm725_vm0, %v5381_v5 }
 0x3e0   : > { %3610 = vmatpush.xpose.msk.msra.mxu3 %vm725_vm0, %v5360_v14 }
 0x3e1   : > { %v3801_v4 = vpop.permute.xlu1 %3800 }
 0x3e2   : > { %3840 = vrot.lane.b32.xlu2 %v3839_v16, %s6399_s30 }
 0x3e4   : > { %3611 = vmatpush.xpose.msk.msra.mxu3 %vm725_vm0, %v5337_v63 }
 0x3e8   : > { %3612 = vmatpush.xpose.msk.msra.mxu3 %vm725_vm0, %v5329_v29 }
 0x3ea   : > { %3845 = vrot.lane.b32.xlu2 %v3844_v49, %s6399_s30 }
 0x3ec   : > { %3613 = vmatpush.xpose.msk.msra.mxu3 %vm725_vm0, %v5323_v51 }
 0x3f0   : > { %3614 = vmatpush.xpose.msk.msra.mxu3 %vm725_vm0, %v5317_v24 }
 0x3f2   : > { %3850 = vrot.lane.b32.xlu2 %v3849_v36, %s6399_s30 }
 0x3f4   : > { %3615 = vmatpush.xpose.msk.msra.mxu3 %vm725_vm0, %v5377_v0 }
 0x3f8   : > { %3616 = vmatpush.xpose.msk.msra.mxu3 %vm725_vm0, %v5397_v11 }
 0x3fa   : > { %3855 = vrot.lane.b32.xlu2 %v3854_v9, %s6399_s30 }
 0x3fc   : > { %3617 = vmatpush.xpose.msk.msra.mxu3 %vm725_vm0, %v5393_v55 }
 0x400   : > { %3618 = vmatpush.xpose.msk.msra.mxu3 %vm725_vm0, %v5415_v2 }
 0x404   : > { %3619 = vmatpush.xpose.msk.msra.mxu3 %vm725_vm0, %v5426_v44 }
 0x408   : > { %3620 = vmatpush.xpose.msk.msra.mxu3 %vm725_vm0, %v5437_v7 }
 0x40c   : > { %3621 = vmatpush.xpose.msk.msra.mxu3 %vm725_vm0, %v5443_v27 }
 0x410   : > { %3622 = vmatpush.xpose.msk.msra.mxu3 %vm725_vm0, %v5452_v32 }
 0x414   : > { %3623 = vmatpush.xpose.msk.msra.mxu3 %vm725_vm0, %v5458_v59 }
 0x418   : > { %2185 = vmatpush.msrb.mxu3 %v5482_v52 }
 0x41a   : > { %2186 = vmatpush.msrb.mxu3 %v5488_v47 }
 0x41c   : > { %2187 = vmatpush.msrb.mxu3 %v5494_v45  ;;  %v3806_v56 = vpop.permute.xlu2 %3805 }
 0x41e   : > { %2188 = vmatpush.msrb.mxu3 %v5502_v15 }
 0x42c   : > { %v3816_v35 = vpop.permute.xlu2 %3815 }
 0x42d   : > { %v5518_v49 = vunpack.i.l.bf16 %v3816_v35 }
 0x42f   : > { %6494 = vst [vmem:[#allocation35_spill] sm:$0xff] %v5518_v49 }
 0x434   : > { %v5514_v58 = vpop.permute.xlu2 %3830 }
 0x435   : > { %v5551_v15 = vunpack.i.l.bf16 %v5514_v58 }
 0x437   : > { %6501 = vst [vmem:[#allocation42_spill] sm:$0xff] %v5551_v15 }
 0x43c   : > { %v3811_v18 = vpop.permute.xlu0 %3810 }
 0x43d   : > { %v5522_v54 = vunpack.i.l.bf16 %v3811_v18 }
 0x43f   : > { %6495 = vst [vmem:[#allocation36_spill] sm:$0xff] %v5522_v54 }
 0x444   : > { %v3826_v37 = vpop.permute.xlu0 %3825 }
 0x448   : > { %v1804_v42 = vpop.f32.mrf.mxu1 }
 0x449   : > { %v1805_v39 = vadd.f32 %v5510_v48, %v1804_v42  ;;  %v5526_v42 = vunpack.i.l.bf16 %v3806_v56 }
 0x44b   : > { %3607 = vmatmul.msk.f32.vlgmr.msra.gmra.mxu2 %vm725_vm0, %v1805_v39  ;;  %6496 = vst [vmem:[#allocation37_spill] sm:$0xff] %v5526_v42  ;;  %v5530_v39 = vunpack.i.l.bf16 %v3801_v4 }
 0x44d   : > { %v3821_v8 = vpop.permute.xlu1 %3820  ;;  %6497 = vst [vmem:[#allocation38_spill] sm:$0xff] %v5530_v39 }
 0x44e   : > { %v5516_v16 = vunpack.i.l.bf16 %v3821_v8 }
 0x450   : > { %6493 = vst [vmem:[#allocation34_spill] sm:$0xff] %v5516_v16  ;;  %2048 = vmatpush.msrb.mxu1 %v5516_v16  ;;  %v1807_v36 = vpop.f32.mrf.mxu1 }
 0x451   : > { %v1808_v9 = vadd.f32 %v5510_v48, %v1807_v36  ;;  %v3841_v36 = vpop.permute.xlu2 %3840  ;;  %v5535_v48 = vunpack.i.l.bf16 %v5505_v30 }
 0x452   : > { %2049 = vmatpush.msrb.mxu1 %v5518_v49 }
 0x453   : > { %3624 = vmatmul.msk.f32.vlgmr.msra.gmra.mxu3 %vm725_vm0, %v1808_v9  ;;  %6498 = vst [vmem:[#allocation39_spill] sm:$0xff] %v5535_v48  ;;  %v5540_v9 = vunpack.i.l.bf16 %v5496_v26 }
 0x454   : > { %2050 = vmatpush.msrb.mxu1 %v5522_v54  ;;  %2531 = vmatpush.msra.mxu3 %v5222_v13  ;;  %v5546_v13 = vunpack.i.l.bf16 %v3826_v37 }
 0x455   : > { %6499 = vst [vmem:[#allocation40_spill] sm:$0xff] %v5540_v9 }
 0x456   : > { %2051 = vmatpush.msrb.mxu1 %v5526_v42  ;;  %2532 = vmatpush.msra.mxu3 %v5228_v33  ;;  %6500 = vst [vmem:[#allocation41_spill] sm:$0xff] %v5546_v13  ;;  %v3836_v33 = vpop.permute.xlu0 %3835 }
 0x458   : > { %2052 = vmatpush.msrb.mxu1 %v5530_v39  ;;  %2533 = vmatpush.msra.mxu3 %v5236_v38  ;;  %v5555_v38 = vunpack.i.l.bf16 %v3836_v33 }
 0x45a   : > { %2053 = vmatpush.msrb.mxu1 %v5535_v48  ;;  %2534 = vmatpush.msra.mxu3 %v5242_v21  ;;  %6502 = vst [vmem:[#allocation43_spill] sm:$0xff] %v5555_v38  ;;  %v5559_v21 = vunpack.i.l.bf16 %v3841_v36 }
 0x45b   : > { %3627 = vmatmul.msk.f32.vlgmr.msrb.gmra.mxu3 %vm725_vm0, %v5048_v1  ;;  %v3846_v1 = vpop.permute.xlu2 %3845 }
 0x45c   : > { %2054 = vmatpush.msrb.mxu1 %v5540_v9  ;;  %2632 = vmatpush.msrb.mxu3 %v5265_v3  ;;  %6503 = vst [vmem:[#allocation44_spill] sm:$0xff] %v5559_v21  ;;  %v5565_v3 = vunpack.i.l.bf16 %v3846_v1 }
 0x45e   : > { %2055 = vmatpush.msrb.mxu1 %v5546_v13  ;;  %2633 = vmatpush.msrb.mxu3 %v5269_v31  ;;  %6504 = vst [vmem:[#allocation45_spill] sm:$0xff] %v5565_v3  ;;  %v5569_v31 = vunpack.i.h.bf16 %v3821_v8  ;;  %v5585_v8 = vunpack.i.h.bf16 %v3801_v4  ;;  %v5599_v4 = vunpack.i.h.bf16 %v3826_v37  ;;  %v5612_v37 = vunpack.i.h.bf16 %v3841_v36 }
 0x460   : > { %2056 = vmatpush.msrb.mxu1 %v5551_v15  ;;  %2634 = vmatpush.msrb.mxu3 %v5345_v60  ;;  %v5573_v60 = vunpack.i.h.bf16 %v3816_v35  ;;  %v5590_v35 = vunpack.i.h.bf16 %v5505_v30  ;;  %6507 = vst [vmem:[#allocation48_spill] sm:$0xff] %v5599_v4  ;;  %v5604_v30 = vunpack.i.h.bf16 %v5514_v58 }
 0x461   : > { %6510 = vst [vmem:[#allocation51_spill] sm:$0xff] %v5612_v37 }
 0x462   : > { %2057 = vmatpush.msrb.mxu1 %v5555_v38  ;;  %2635 = vmatpush.msrb.mxu3 %v5348_v61  ;;  %v5577_v61 = vunpack.i.h.bf16 %v3811_v18  ;;  %6505 = vst [vmem:[#allocation46_spill] sm:$0xff] %v5590_v35 }
 0x463   : > { %3628 = vmatmul.msk.f32.gmra.mxu3 %vm725_vm0, %v5013_v19  ;;  %v5581_v19 = vunpack.i.h.bf16 %v3806_v56  ;;  %v5595_v56 = vunpack.i.h.bf16 %v5496_v26  ;;  %v3851_v18 = vpop.permute.xlu2 %3850  ;;  %6508 = vst [vmem:[#allocation49_spill] sm:$0xff] %v5604_v30  ;;  %v5608_v26 = vunpack.i.h.bf16 %v3836_v33 }
 0x464   : > { %2058 = vmatpush.msrb.mxu1 %v5559_v21  ;;  %2636 = vmatpush.msrb.mxu3 %v5516_v16  ;;  %v5619_v58 = vunpack.i.l.bf16 %v3851_v18 }
 0x465   : > { %6506 = vst [vmem:[#allocation47_spill] sm:$0xff] %v5595_v56 }
 0x466   : > { %2059 = vmatpush.msrb.mxu1 %v5565_v3  ;;  %2637 = vmatpush.msrb.mxu3 %v5518_v49  ;;  %6509 = vst [vmem:[#allocation50_spill] sm:$0xff] %v5608_v26 }
 0x467   : > { %6512 = vst [vmem:[#allocation53_spill] sm:$0xff] %v5619_v58 }
 0x468   : > { %2112 = vmatpush.msra.mxu1 %v5569_v31  ;;  %2638 = vmatpush.msrb.mxu3 %v5522_v54 }
 0x46a   : > { %2113 = vmatpush.msra.mxu1 %v5573_v60  ;;  %2639 = vmatpush.msrb.mxu3 %v5526_v42 }
 0x46b   : > { %v3856_v33 = vpop.permute.xlu2 %3855 }
 0x46c   : > { %2114 = vmatpush.msra.mxu1 %v5577_v61  ;;  %2640 = vmatpush.msrb.mxu3 %v5530_v39  ;;  %v5628_v36 = vunpack.i.h.bf16 %v3856_v33 }
 0x46e   : > { %2115 = vmatpush.msra.mxu1 %v5581_v19  ;;  %2641 = vmatpush.msrb.mxu3 %v5535_v48  ;;  %6515 = vst [vmem:[#allocation56_spill] sm:$0xff] %v5628_v36 }
 0x470   : > { %2116 = vmatpush.msra.mxu1 %v5585_v8  ;;  %2642 = vmatpush.msrb.mxu3 %v5540_v9 }
 0x472   : > { %2117 = vmatpush.msra.mxu1 %v5590_v35  ;;  %2643 = vmatpush.msrb.mxu3 %v5546_v13 }
 0x474   : > { %2118 = vmatpush.msra.mxu1 %v5595_v56  ;;  %2644 = vmatpush.msrb.mxu3 %v5551_v15  ;;  %v5616_v15 = vunpack.i.h.bf16 %v3846_v1 }
 0x476   : > { %2119 = vmatpush.msra.mxu1 %v5599_v4  ;;  %2645 = vmatpush.msrb.mxu3 %v5555_v38  ;;  %6511 = vst [vmem:[#allocation52_spill] sm:$0xff] %v5616_v15  ;;  %v5622_v38 = vunpack.i.h.bf16 %v3851_v18 }
 0x478   : > { %2120 = vmatpush.msra.mxu1 %v5604_v30  ;;  %2646 = vmatpush.msrb.mxu3 %v5559_v21  ;;  %6513 = vst [vmem:[#allocation54_spill] sm:$0xff] %v5622_v38  ;;  %v5625_v21 = vunpack.i.l.bf16 %v3856_v33 }
 0x47a   : > { %2121 = vmatpush.msra.mxu1 %v5608_v26  ;;  %2647 = vmatpush.msrb.mxu3 %v5565_v3  ;;  %6514 = vst [vmem:[#allocation55_spill] sm:$0xff] %v5625_v21 }
 0x47c   : > { %2122 = vmatpush.msra.mxu1 %v5612_v37 }
 0x47e   : > { %2123 = vmatpush.msra.mxu1 %v5616_v15 }
 0x480   : > { %2124 = vmatpush.msra.mxu1 %v5619_v58 }
 0x482   : > { %2125 = vmatpush.msra.mxu1 %v5622_v38 }
 0x484   : > { %2126 = vmatpush.msra.mxu1 %v5625_v21 }
 0x486   : > { %2127 = vmatpush.msra.mxu1 %v5628_v36 }
 0x4ce   : > { %v1878_v1 = vpop.f32.mrf.mxu2 }
 0x4cf   : > { %v1952_v3 = vrot.slane %v1878_v1, 4 }
 0x4d1   : > { %v1953_v13 = vmax.f32 %v1878_v1, %v1952_v3 }
 0x4d3   : > { %v1954_v9 = vrot.slane %v1953_v13, 2 }
 0x4d5   : > { %v1955_v48 = vmax.f32 %v1953_v13, %v1954_v9 }
 0x4d6   : > { %v1949_v39 = vpop.f32.mrf.mxu3 }
 0x4d7   : > { %v1956_v18 = vrot.slane %v1955_v48, 1  ;;  %v1958_v42 = vrot.slane %v1949_v39, 4 }
 0x4d9   : > { %v1957_v54 = vmax.f32 %v1955_v48, %v1956_v18  ;;  %v1959_v49 = vmax.f32 %v1949_v39, %v1958_v42  ;;  %v5646_v18 = vld [vmem:[%s6337_s10 + $0x8] sm:$0xff] }
 0x4db   : > { %v1964_v16 = vsub.f32 %v1878_v1, %v1957_v54  ;;  %v1960_v58 = vrot.slane %v1959_v49, 2 }
 0x4dd   : > { %v1966_v15 = vmul.f32 1.442695, %v1964_v16  ;;  %v1961_v38 = vmax.f32 %v1959_v49, %v1960_v58 }
 0x4df   : > { %3941 = vpow2.f32 %v1966_v15  ;;  %v1962_v33 = vrot.slane %v1961_v38, 1 }
 0x4e1   : > { %v1963_v37 = vmax.f32 %v1961_v38, %v1962_v33  ;;  %v5652_v33 = vld [vmem:[%s6337_s10] sm:$0xff] }
 0x4e3   : > { %v1965_v21 = vsub.f32 %v1949_v39, %v1963_v37 }
 0x4e5   : > { %v3942_v26 = vpop.eup %3941  ;;  %v1968_v36 = vmul.f32 1.442695, %v1965_v21 }
 0x4e6   : > { %v1970_v30 = vrot.slane %v3942_v26, 4 }
 0x4e7   : > { %3943 = vpow2.f32 %v1968_v36 }
 0x4e8   : > { %v1971_v3 = vadd.f32 %v3942_v26, %v1970_v30 }
 0x4ea   : > { %v1972_v4 = vrot.slane %v1971_v3, 2 }
 0x4ec   : > { %v1973_v9 = vadd.f32 %v1972_v4, %v1971_v3 }
 0x4ed   : > { %v3944_v13 = vpop.eup %3943 }
 0x4ee   : > { %v1974_v56 = vrot.slane %v1973_v9, 1  ;;  %v1976_v35 = vrot.slane %v3944_v13, 4 }
 0x4f0   : > { %v1975_v48 = vadd.f32 %v1974_v56, %v1973_v9  ;;  %v1977_v42 = vadd.f32 %v3944_v13, %v1976_v35  ;;  %v5635_v35 = vld [vmem:[%s6337_s10 + $0x18] sm:$0xff] }
 0x4f2   : > { %3945 = vrcp.f32 %v1975_v48  ;;  %v1978_v54 = vrot.slane %v1977_v42, 2  ;;  %v5680_v48 = vld [vmem:[%s6516_s6 + $0x10] sm:$0xff] }
 0x4f4   : > { %v1979_v16 = vadd.f32 %v1978_v54, %v1977_v42  ;;  %v5686_v42 = vld [vmem:[%s6516_s6 + $0x8] sm:$0xff]  ;;  %v5694_v54 = vld [vmem:[%s6516_s6] sm:$0xff] }
 0x4f6   : > { %v1980_v49 = vrot.slane %v1979_v16, 1 }
 0x4f8   : > { %v3946_v15 = vpop.eup %3945  ;;  %v1981_v58 = vadd.f32 %v1980_v49, %v1979_v16  ;;  %v5700_v16 = vld [vmem:[%s6339_s12 + $0x38] sm:$0xff]  ;;  %v5706_v49 = vld [vmem:[%s6339_s12 + $0x30] sm:$0xff] }
 0x4f9   : > { %v1984_v38 = vmul.f32 %v3946_v15, %v3942_v26  ;;  %v5640_v26 = vld [vmem:[%s6337_s10 + $0x10] sm:$0xff]  ;;  %v5714_v15 = vld [vmem:[%s6339_s12 + $0x28] sm:$0xff] }
 0x4fa   : > { %3947 = vrcp.f32 %v1981_v58  ;;  %v5720_v58 = vld [vmem:[%s6339_s12 + $0x20] sm:$0xff] }
 0x4fb   : > { %v1986_v39 = vadd.f32 1e-08, %v1984_v38  ;;  %v5728_v38 = vld [vmem:[%s6339_s12 + $0x18] sm:$0xff] }
 0x4fd   : > { %1988 = vadd.xlane.f32.xlu1 %v1986_v39 }
 0x500   : > { %v3948_v21 = vpop.eup %3947 }
 0x501   : > { %v1985_v37 = vmul.f32 %v3948_v21, %v3944_v13  ;;  %v5675_v13 = vld [vmem:[%s6516_s6 + $0x18] sm:$0xff]  ;;  %v5742_v21 = vld [vmem:[%s6339_s12 + $0x8] sm:$0xff] }
 0x502   : > { %2153 = vmatpush.msrb.mxu2 %v5675_v13 }
 0x503   : > { %v1987_v30 = vadd.f32 1e-08, %v1985_v37  ;;  %v5757_v37 = vld [vmem:[%s6339_s12] sm:$0xff] }
 0x504   : > { %2154 = vmatpush.msrb.mxu2 %v5680_v48 }
 0x505   : > { %1990 = vadd.xlane.f32.xlu0 %v1987_v30 }
 0x506   : > { %2155 = vmatpush.msrb.mxu2 %v5686_v42 }
 0x508   : > { %2156 = vmatpush.msrb.mxu2 %v5694_v54 }
 0x50a   : > { %2407 = vmatpush.msra.mxu2 %v5700_v16 }
 0x50c   : > { %2408 = vmatpush.msra.mxu2 %v5706_v49 }
 0x50e   : > { %2409 = vmatpush.msra.mxu2 %v5714_v15 }
 0x510   : > { %2410 = vmatpush.msra.mxu2 %v5720_v58 }
 0x512   : > { %2411 = vmatpush.msra.mxu2 %v5728_v38 }
 0x570   : > { %v1989_v4 = vpop.xlane.xlu1 %1988 }
 0x571   : > { %3949 = vrcp.f32 %v1989_v4  ;;  %v5768_v4 = vld [vmem:[%s6336_s9] ss:$0 sm:$0xff] }
 0x577   : > { %v3950_v36 = vpop.eup %3949 }
 0x578   : > { %v1991_v1 = vpop.xlane.xlu0 %1990  ;;  %v1994_v56 = vmul.f32 %v3950_v36, %v1986_v39  ;;  %v5734_v39 = vld [vmem:[%s6339_s12 + $0x10] sm:$0xff]  ;;  %v2190_v36 = vpop.f32.mrf.mxu3 }
 0x579   : > { %3951 = vrcp.f32 %v1991_v1  ;;  %2412 = vmatpush.msra.mxu2 %v5734_v39 }
 0x57a   : > { %2060 = vmatmul.f32.vlgmr.msrb.gmra.mxu1 %v1994_v56  ;;  %v2191_v56 = vadd.f32 %v5768_v4, %v2190_v36 }
 0x57b   : > { %2379 = vmatpush.msrb.mxu1 %v5635_v35  ;;  %2413 = vmatpush.msra.mxu2 %v5742_v21 }
 0x57c   : > { %2238 = vrot.lane.b32.xlu1 %v2191_v56, %s6421_s27 }
 0x57d   : > { %2380 = vmatpush.msrb.mxu1 %v5640_v26  ;;  %2414 = vmatpush.msra.mxu2 %v5757_v37 }
 0x57f   : > { %v3952_v3 = vpop.eup %3951  ;;  %2381 = vmatpush.msrb.mxu1 %v5646_v18 }
 0x580   : > { %v1995_v9 = vmul.f32 %v3952_v3, %v1987_v30  ;;  %v4035_v3 = vld [vmem:[%s5007_s21] sm:$0xff] }
 0x581   : > { %2382 = vmatpush.msrb.mxu1 %v5652_v33 }
 0x582   : > { %2128 = vmatmul.f32.vlgmr.msra.gmra.mxu1 %v1995_v9  ;;  %v4036_v9 = vld [vmem:[%s5007_s21 + $0x8] sm:$0xff]  ;;  %s639_s21 = sand.u32 1, %s4119_s22  }
 0x583   : > { %3637 = vmatpush.xpose.msk.msra.mxu1 %vm725_vm0, %v5089_v50  ;;  %s3551_s30 = sshll.u32 %s639_s21, 4 }
 0x584   : > { %2270 = vrot.lane.b32.xlu1 %v4035_v3, %s6419_s1 }
 0x587   : > { %3638 = vmatpush.xpose.msk.msra.mxu1 %vm725_vm0, %v5101_v41 }
 0x58b   : > { %3639 = vmatpush.xpose.msk.msra.mxu1 %vm725_vm0, %v5110_v28 }
 0x58c   : > { %2272 = vrot.lane.b32.xlu1 %v4036_v9, %s6419_s1 }
 0x58f   : > { %3640 = vmatpush.xpose.msk.msra.mxu1 %vm725_vm0, %v5118_v34 }
 0x593   : > { %3641 = vmatpush.xpose.msk.msra.mxu1 %vm725_vm0, %v5129_v22 }
 0x597   : > { %3642 = vmatpush.xpose.msk.msra.mxu1 %vm725_vm0, %v5140_v10 }
 0x59b   : > { %3643 = vmatpush.xpose.msk.msra.mxu1 %vm725_vm0, %v5149_v57 }
 0x59f   : > { %3644 = vmatpush.xpose.msk.msra.mxu1 %vm725_vm0, %v5157_v40 }
 0x5a3   : > { %3645 = vmatpush.xpose.msk.msra.mxu1 %vm725_vm0, %v5165_v46 }
 0x5a7   : > { %3646 = vmatpush.xpose.msk.msra.mxu1 %vm725_vm0, %v5173_v6 }
 0x5ab   : > { %3647 = vmatpush.xpose.msk.msra.mxu1 %vm725_vm0, %v5181_v17 }
 0x5af   : > { %3648 = vmatpush.xpose.msk.msra.mxu1 %vm725_vm0, %v5188_v25 }
 0x5b3   : > { %3649 = vmatpush.xpose.msk.msra.mxu1 %vm725_vm0, %v5195_v62 }
 0x5b7   : > { %3650 = vmatpush.xpose.msk.msra.mxu1 %vm725_vm0, %v5201_v12 }
 0x5bb   : > { %3651 = vmatpush.xpose.msk.msra.mxu1 %vm725_vm0, %v5207_v43 }
 0x5bf   : > { %3652 = vmatpush.xpose.msk.msra.mxu1 %vm725_vm0, %v5213_v23 }
 0x5f7   : > { %v2061_v30 = vpop.f32.mrf.mxu1 }
 0x5f8   : > { %3625 = vmatmul.msk.f32.vlgmr.msrb.gmra.mxu2 %vm725_vm0, %v2061_v30  ;;  %v2193_v30 = vpop.f32.mrf.mxu3 }
 0x5f9   : > { %3654 = vmatpush.xpose.msk.msrb.mxu2 %vm725_vm0, %v5400_v53  ;;  %v2194_v36 = vadd.f32 %v5768_v4, %v2193_v30 }
 0x5fb   : > { %2240 = vrot.lane.b32.xlu2 %v2194_v36, %s6421_s27 }
 0x5fd   : > { %3655 = vmatpush.xpose.msk.msrb.mxu2 %vm725_vm0, %v5381_v5 }
 0x5ff   : > { %v2129_v1 = vpop.f32.mrf.mxu1 }
 0x600   : > { %3626 = vmatmul.msk.f32.gmra.mxu2 %vm725_vm0, %v2129_v1  ;;  %v5810_v1 = vld [vmem:[%s6335_s8] ss:$0 sm:$0xff] }
 0x601   : > { %3656 = vmatpush.xpose.msk.msrb.mxu2 %vm725_vm0, %v5360_v14  ;;  %6517 = vst [vmem:[#allocation57_spill] sm:$0xff] %v5810_v1 }
 0x605   : > { %3657 = vmatpush.xpose.msk.msrb.mxu2 %vm725_vm0, %v5337_v63 }
 0x609   : > { %3658 = vmatpush.xpose.msk.msrb.mxu2 %vm725_vm0, %v5329_v29 }
 0x60d   : > { %3659 = vmatpush.xpose.msk.msrb.mxu2 %vm725_vm0, %v5323_v51 }
 0x611   : > { %3660 = vmatpush.xpose.msk.msrb.mxu2 %vm725_vm0, %v5317_v24 }
 0x615   : > { %3661 = vmatpush.xpose.msk.msrb.mxu2 %vm725_vm0, %v5377_v0 }
 0x619   : > { %3662 = vmatpush.xpose.msk.msrb.mxu2 %vm725_vm0, %v5397_v11 }
 0x61d   : > { %3663 = vmatpush.xpose.msk.msrb.mxu2 %vm725_vm0, %v5393_v55 }
 0x621   : > { %3664 = vmatpush.xpose.msk.msrb.mxu2 %vm725_vm0, %v5415_v2 }
 0x625   : > { %3665 = vmatpush.xpose.msk.msrb.mxu2 %vm725_vm0, %v5426_v44 }
 0x629   : > { %3666 = vmatpush.xpose.msk.msrb.mxu2 %vm725_vm0, %v5437_v7 }
 0x62d   : > { %3667 = vmatpush.xpose.msk.msrb.mxu2 %vm725_vm0, %v5443_v27 }
 0x631   : > { %3668 = vmatpush.xpose.msk.msrb.mxu2 %vm725_vm0, %v5452_v32 }
 0x635   : > { %3669 = vmatpush.xpose.msk.msrb.mxu2 %vm725_vm0, %v5458_v59 }
 0x67b   : > { %v2158_v3 = vpop.f32.mrf.mxu2 }
 0x67c   : > { %v2159_v9 = vadd.f32 %v5810_v1, %v2158_v3 }
 0x67e   : > { %v2196_v30 = vadd.f32 %v2191_v56, %v2159_v9 }
 0x680   : > { %v3629_v44 = vmul.f32 -1.442695, %v2196_v30 }
 0x682   : > { %3953 = vpow2.f32 %v3629_v44 }
 0x683   : > { %v2161_v7 = vpop.f32.mrf.mxu2 }
 0x684   : > { %v2162_v27 = vadd.f32 %v5810_v1, %v2161_v7 }
 0x686   : > { %v2197_v2 = vadd.f32 %v2194_v36, %v2162_v27 }
 0x688   : > { %v3954_v55 = vpop.eup %3953  ;;  %v3630_v32 = vmul.f32 -1.442695, %v2197_v2  ;;  %v2239_v2 = vpop.permute.xlu1 %2238 }
 0x689   : > { %v2204_v11 = vadd.f32 1.0, %v3954_v55 }
 0x68a   : > { %3955 = vpow2.f32 %v3630_v32 }
 0x68b   : > { %3957 = vrcp.f32 %v2204_v11  ;;  %v2217_v63 = vand.u32 2147483648, %v2204_v11  ;;  %v2215_v56 = vand.u32 2147483647, %v2204_v11  ;;  %vm2211_vm15 = vweird.f32 %v2204_v11 }
 0x68d   : > { %v2218_v7 = vor.u32 1.1754944e-38, %v2217_v63  ;;  %vm2216_vm2 = vcmp.eq.f32.partialorder %v2215_v56, 8.507059e+37 }
 0x690   : > { %v3956_v59 = vpop.eup %3955 }
 0x691   : > { %v3958_v0 = vpop.eup %3957  ;;  %v2205_v24 = vadd.f32 1.0, %v3956_v59 }
 0x692   : > { %v2207_v51 = vmul.f32 %v3958_v0, %v2204_v11  ;;  %vm2212_vm14 = vweird.f32 %v3958_v0 }
 0x693   : > { %3959 = vrcp.f32 %v2205_v24  ;;  %vm2213_vm1 = vmor %vm2211_vm15, %vm2212_vm14  ;;  %v2232_v59 = vand.u32 2147483648, %v2205_v24  ;;  %vm2226_vm4 = vweird.f32 %v2205_v24 }
 0x694   : > { %v2208_v29 = vsub.f32 1.0, %v2207_v51 }
 0x695   : > { %v2233_v11 = vor.u32 1.1754944e-38, %v2232_v59 }
 0x696   : > { %v2209_v3 = vmul.f32 %v3958_v0, %v2208_v29  ;;  %v2230_v29 = vand.u32 2147483647, %v2205_v24 }
 0x698   : > { %v2210_v44 = vadd.f32 %v3958_v0, %v2209_v3  ;;  %v2241_v3 = vpop.permute.xlu2 %2240  ;;  %vm2231_vm6 = vcmp.eq.f32.partialorder %v2230_v29, 8.507059e+37 }
 0x699   : > { %v3960_v30 = vpop.eup %3959 }
 0x69a   : > { %v2214_v36 = vsel %vm2213_vm1, %v3958_v0, %v2210_v44  ;;  %v2222_v55 = vmul.f32 %v3960_v30, %v2205_v24  ;;  %vm2227_vm3 = vweird.f32 %v3960_v30  ;;  %v2271_v24 = vpop.permute.xlu1 %2270 }
 0x69b   : > { %v2219_v32 = vsel %vm2216_vm2, %v2218_v7, %v2214_v36  ;;  %vm2228_vm5 = vmor %vm2226_vm4, %vm2227_vm3 }
 0x69c   : > { %v2244_v1 = vmul.f32 %v2239_v2, %v2219_v32  ;;  %v2223_v14 = vsub.f32 1.0, %v2222_v55  ;;  %v2258_v55 = vsub.f32 1.0, %v2219_v32 }
 0x69e   : > { %2248 = vrot.lane.b32.xlu2 %v2244_v1, %s6421_s27  ;;  %v2224_v51 = vmul.f32 %v3960_v30, %v2223_v14 }
 0x6a0   : > { %v2225_v5 = vadd.f32 %v3960_v30, %v2224_v51 }
 0x6a2   : > { %v2229_v53 = vsel %vm2228_vm5, %v3960_v30, %v2225_v5  ;;  %v2276_v30 = vmul.f32 %v2271_v24, %v2219_v32 }
 0x6a3   : > { %v2234_v63 = vsel %vm2231_vm6, %v2233_v11, %v2229_v53 }
 0x6a4   : > { %v2245_v0 = vmul.f32 %v2241_v3, %v2234_v63  ;;  %v2259_v59 = vsub.f32 1.0, %v2234_v63 }
 0x6a6   : > { %2250 = vrot.lane.b32.xlu0 %v2245_v0, %s6421_s27  ;;  %s6569_s27 = smov 32  }
 0x6f8   : > { %v2249_v56 = vpop.permute.xlu2 %2248 }
 0x6f9   : > { %v2254_v44 = vadd.f32 %v2249_v56, %v2159_v9  ;;  %v2273_v9 = vpop.permute.xlu1 %2272 }
 0x6fa   : > { %v2277_v29 = vmul.f32 %v2273_v9, %v2234_v63 }
 0x6fb   : > { %3961 = vtanh.f32 %v2254_v44 }
 0x701   : > { %v3962_v7 = vpop.eup %3961 }
 0x702   : > { %2262 = vrot.lane.b32.xlu2 %v3962_v7, %s6518_s23 }
 0x718   : > { %v2251_v14 = vpop.permute.xlu0 %2250 }
 0x719   : > { %v2255_v1 = vadd.f32 %v2251_v14, %v2162_v27 }
 0x71b   : > { %3963 = vtanh.f32 %v2255_v1 }
 0x721   : > { %v3964_v36 = vpop.eup %3963 }
 0x722   : > { %2264 = vrot.lane.b32.xlu2 %v3964_v36, %s6518_s23 }
 0x75c   : > { %v2263_v5 = vpop.permute.xlu2 %2262 }
 0x75d   : > { %v2268_v53 = vmul.f32 %v2263_v5, %v2258_v55  ;;  %v3867_v5 = vld [vmem:[%s6345_s18] ss:$0 sm:$0xff] }
 0x75f   : > { %v5818_v2 = vadd.f32 %v2276_v30, %v2268_v53 }
 0x761   : > { %2282 = vrot.lane.b32.xlu2 %v5818_v2, %s6518_s23 }
 0x77c   : > { %v2265_v51 = vpop.permute.xlu2 %2264 }
 0x77d   : > { %v2269_v3 = vmul.f32 %v2265_v51, %v2259_v59  ;;  %v3868_v51 = vld [vmem:[%s6346_s19] ss:$0 sm:$0xff] }
 0x77f   : > { %v5822_v27 = vadd.f32 %v2277_v29, %v2269_v3 }
 0x781   : > { %2284 = vrot.lane.b32.xlu0 %v5822_v27, %s6518_s23 }
 0x7bb   : > { %v2283_v11 = vpop.permute.xlu2 %2282 }
 0x7bc   : > { %v2288_v0 = vsel %vm725_vm0, %v2283_v11, 0.0 }
 0x7bd   : > { %2289 = vadd.xlane.f32.xlu1 %v2288_v0 }
 0x7f3   : > { %v2285_v32 = vpop.permute.xlu0 %2284 }
 0x7f4   : > { %v2291_v56 = vsel %vm725_vm0, %v2285_v32, 0.0 }
 0x7f5   : > { %2292 = vadd.xlane.f32.xlu2 %v2291_v56 }
 0x80d   : > { %2342 = vrot.lane.b32.xlu2 %v3867_v5, %s6419_s1 }
 0x830   : > { %v2290_v44 = vpop.xlane.xlu1 %2289 }
 0x831   : > { %v2294_v7 = vmul.f32 %v2290_v44, %v4314_v20 }
 0x833   : > { %v2296_v14 = vsub.f32 %v5818_v2, %v2294_v7 }
 0x835   : > { %v2298_v63 = vmul.f32 %v2296_v14, %v2296_v14 }
 0x837   : > { %2302 = vrot.lane.b32.xlu0 %v2298_v63, %s6518_s23 }
 0x868   : > { %v2293_v1 = vpop.xlane.xlu2 %2292 }
 0x869   : > { %v2295_v36 = vmul.f32 %v2293_v1, %v4314_v20 }
 0x86b   : > { %v2297_v24 = vsub.f32 %v5822_v27, %v2295_v36 }
 0x86d   : > { %v2299_v55 = vmul.f32 %v2297_v24, %v2297_v24 }
 0x86f   : > { %2304 = vrot.lane.b32.xlu0 %v2299_v55, %s6518_s23 }
 0x8a9   : > { %v2303_v30 = vpop.permute.xlu0 %2302 }
 0x8aa   : > { %v2308_v53 = vsel %vm725_vm0, %v2303_v30, 0.0 }
 0x8ab   : > { %2309 = vadd.xlane.f32.xlu0 %v2308_v53 }
 0x8e1   : > { %v2305_v9 = vpop.permute.xlu0 %2304 }
 0x8e2   : > { %v2311_v59 = vsel %vm725_vm0, %v2305_v9, 0.0 }
 0x8e3   : > { %2312 = vadd.xlane.f32.xlu1 %v2311_v59 }
 0x8fc   : > { %2349 = vrot.lane.b32.xlu1 %v3868_v51, %s6419_s1 }
 0x91e   : > { %v2310_v29 = vpop.xlane.xlu0 %2309 }
 0x91f   : > { %v2314_v3 = vmul.f32 %v2310_v29, %v4314_v20 }
 0x921   : > { %v2316_v11 = vadd.f32 1e-05, %v2314_v3  ;;  %v5846_v3 = vpop.permute.xlu2 %2342 }
 0x923   : > { %3965 = vrsqrt.f32 %v2316_v11  ;;  %vm2324_vm8 = vweird.f32 %v2316_v11 }
 0x929   : > { %v3966_v0 = vpop.eup %3965 }
 0x92a   : > { %v2319_v32 = vmul.f32 %v3966_v0, %v2316_v11  ;;  %vm2325_vm7 = vweird.f32 %v3966_v0 }
 0x92b   : > { %vm2326_vm9 = vmor %vm2324_vm8, %vm2325_vm7 }
 0x92c   : > { %v2320_v56 = vmul.f32 %v3966_v0, %v2319_v32 }
 0x92e   : > { %v2321_v1 = vmul.f32 0.5, %v2320_v56 }
 0x930   : > { %v2322_v36 = vsub.f32 1.5, %v2321_v1 }
 0x932   : > { %v2323_v5 = vmul.f32 %v3966_v0, %v2322_v36 }
 0x934   : > { %v2327_v9 = vsel %vm2326_vm9, %v3966_v0, %v2323_v5 }
 0x935   : > { %v2338_v29 = vmul.f32 %v2327_v9, %v2296_v14 }
 0x956   : > { %v2313_v44 = vpop.xlane.xlu1 %2312 }
 0x957   : > { %v2315_v7 = vmul.f32 %v2313_v44, %v4314_v20  ;;  %v2345_v44 = vmul.f32 %v5846_v3, %v2338_v29 }
 0x959   : > { %v2317_v63 = vadd.f32 1e-05, %v2315_v7 }
 0x95b   : > { %3967 = vrsqrt.f32 %v2317_v63  ;;  %vm2334_vm11 = vweird.f32 %v2317_v63 }
 0x961   : > { %v3968_v55 = vpop.eup %3967 }
 0x962   : > { %v2329_v30 = vmul.f32 %v3968_v55, %v2317_v63  ;;  %vm2335_vm10 = vweird.f32 %v3968_v55  ;;  %v5865_v63 = vld [vmem:[%s6338_s11] ss:$0 sm:$0xff] }
 0x963   : > { %vm2336_vm12 = vmor %vm2334_vm11, %vm2335_vm10 }
 0x964   : > { %v2330_v53 = vmul.f32 %v3968_v55, %v2329_v30 }
 0x966   : > { %v2331_v59 = vmul.f32 0.5, %v2330_v53  ;;  %v3870_v53 = vld [vmem:[%s6520_s13] ss:$0 sm:$0xff]  ;;  %s641_s13 = scalar_lea.vmem [#allocation2], %s3551_s30  ;;  %s4085_s30 = scalar_lea.hbm %s6347_s20, 32 }
 0x967   : > { %s3470_s29 = sshll.u32 %s641_s13, 4  ;;  %s3471_s29 = int_to_ptr.vmem [resolvable:$true] %s3470_s29 }
 0x968   : > { %v2332_v51 = vsub.f32 1.5, %v2331_v59 }
 0x96a   : > { %v2333_v32 = vmul.f32 %v3968_v55, %v2332_v51 }
 0x96c   : > { %v2337_v56 = vsel %vm2336_vm12, %v3968_v55, %v2333_v32 }
 0x96d   : > { %v2339_v7 = vmul.f32 %v2337_v56, %v2297_v24 }
 0x96e   : > { %v5849_v1 = vpop.permute.xlu1 %2349 }
 0x96f   : > { %v2352_v11 = vadd.f32 %v5849_v1, %v2345_v44  ;;  %v2346_v36 = vmul.f32 %v5846_v3, %v2339_v7 }
 0x971   : > { %2359 = vrot.lane.b32.xlu0 %v2352_v11, %s6518_s23  ;;  %v2353_v0 = vadd.f32 %v5849_v1, %v2346_v36 }
 0x973   : > { %2361 = vrot.lane.b32.xlu2 %v2353_v0, %s6518_s23 }
 0x97b   : > { %2434 = vrot.lane.b32.xlu2 %v3870_v53, %s6419_s1 }
 0x9cd   : > { %v2362_v24 = vpop.permute.xlu2 %2361 }
 0x9d5   : > { %v5881_v59 = vpop.permute.xlu2 %2434 }
 0x9e3   : > { %v2360_v14 = vpop.permute.xlu0 %2359 }
 0x9e4   : > { %3631 = vmatmul.msk.f32.vlgmr.msrb.gmra.mxu1 %vm725_vm0, %v2360_v14 }
 0x9e5   : > { %2690 = vmatpush.msrb.mxu1 %v5675_v13 }
 0x9e7   : > { %2691 = vmatpush.msrb.mxu1 %v5680_v48 }
 0x9e9   : > { %2692 = vmatpush.msrb.mxu1 %v5686_v42 }
 0x9eb   : > { %2693 = vmatpush.msrb.mxu1 %v5694_v54  ;;  %v6519_v54 = vld [vmem:[#allocation32_spill] sm:$0xff] }
 0x9ec   : > { %3632 = vmatmul.msk.f32.gmra.mxu1 %vm725_vm0, %v2362_v24 }
 0xa61   : > { %v2384_v55 = vpop.f32.mrf.mxu1 }
 0xa62   : > { %v2385_v5 = vadd.f32 %v5865_v63, %v2384_v55 }
 0xa64   : > { %v2390_v30 = vmax.f32 %v2385_v5, 0.0 }
 0xa66   : > { %3633 = vmatmul.msk.f32.vlgmr.msra.gmra.mxu2 %vm2392_vm13, %v2390_v30 }
 0xa67   : > { %2717 = vmatpush.msra.mxu2 %v5482_v52 }
 0xa69   : > { %v2387_v13 = vpop.f32.mrf.mxu1  ;;  %2718 = vmatpush.msra.mxu2 %v5488_v47 }
 0xa6a   : > { %v2388_v48 = vadd.f32 %v5865_v63, %v2387_v13 }
 0xa6b   : > { %2719 = vmatpush.msra.mxu2 %v5494_v45 }
 0xa6c   : > { %v2391_v42 = vmax.f32 %v2388_v48, 0.0 }
 0xa6d   : > { %2720 = vmatpush.msra.mxu2 %v6519_v54 }
 0xa6e   : > { %3634 = vmatmul.msk.f32.gmra.mxu2 %vm2392_vm13, %v2391_v42 }
 0xae9   : > { %v2416_v9 = vpop.f32.mrf.mxu2 }
 0xaea   : > { %2424 = vrot.lane.b32.xlu1 %v2416_v9, %s6419_s1  ;;  %v6522_v9 = vld [vmem:[#allocation20_spill] sm:$0xff] }
 0xaf1   : > { %v2419_v52 = vpop.f32.mrf.mxu2 }
 0xaf2   : > { %2426 = vrot.lane.b32.xlu1 %v2419_v52, %s6419_s1 }
 0xb5c   : > { %v2425_v47 = vpop.permute.xlu1 %2424 }
 0xb5d   : > { %v2430_v45 = vadd.f32 %v2425_v47, %v5818_v2 }
 0xb5f   : > { %v5885_v51 = vadd.f32 %v5881_v59, %v2430_v45 }
 0xb61   : > { %2441 = vrot.lane.b32.xlu0 %v5885_v51, %s6518_s23 }
 0xb64   : > { %v2427_v29 = vpop.permute.xlu1 %2426 }
 0xb65   : > { %v2431_v32 = vadd.f32 %v2427_v29, %v5822_v27  ;;  %v6521_v27 = vld [vmem:[#allocation18_spill] sm:$0xff] }
 0xb67   : > { %v5891_v56 = vadd.f32 %v5881_v59, %v2431_v32 }
 0xb69   : > { %2443 = vrot.lane.b32.xlu2 %v5891_v56, %s6518_s23 }
 0xbc3   : > { %v5895_v44 = vpop.permute.xlu2 %2443 }
 0xbc4   : > { %v2450_v2 = vsel %vm725_vm0, %v5895_v44, 0.0 }
 0xbc5   : > { %2451 = vadd.xlane.f32.xlu0 %v2450_v2 }
 0xbd3   : > { %v5899_v7 = vpop.permute.xlu0 %2441 }
 0xbd4   : > { %v2447_v11 = vsel %vm725_vm0, %v5899_v7, 0.0 }
 0xbd5   : > { %2448 = vadd.xlane.f32.xlu1 %v2447_v11 }
 0xbd9   : > { %2499 = vrot.lane.b32.xlu0 %v6521_v27, %s6419_s1 }
 0xc38   : > { %v2452_v14 = vpop.xlane.xlu0 %2451 }
 0xc39   : > { %v2454_v55 = vmul.f32 %v2452_v14, %v4314_v20 }
 0xc3b   : > { %v2456_v30 = vsub.f32 %v5891_v56, %v2454_v55 }
 0xc3d   : > { %v2458_v13 = vmul.f32 %v2456_v30, %v2456_v30 }
 0xc48   : > { %v2449_v36 = vpop.xlane.xlu1 %2448 }
 0xc49   : > { %v2453_v0 = vmul.f32 %v2449_v36, %v4314_v20 }
 0xc4b   : > { %v2455_v24 = vsub.f32 %v5885_v51, %v2453_v0 }
 0xc4d   : > { %v2457_v5 = vmul.f32 %v2455_v24, %v2455_v24 }
 0xc4f   : > { %2461 = vrot.lane.b32.xlu2 %v2457_v5, %s6518_s23 }
 0xc57   : > { %2463 = vrot.lane.b32.xlu2 %v2458_v13, %s6518_s23 }
 0xca9   : > { %v2462_v48 = vpop.permute.xlu2 %2461 }
 0xcaa   : > { %v2467_v42 = vsel %vm725_vm0, %v2462_v48, 0.0 }
 0xcab   : > { %2468 = vadd.xlane.f32.xlu2 %v2467_v42 }
 0xcb1   : > { %v2464_v54 = vpop.permute.xlu2 %2463 }
 0xcb2   : > { %v2470_v53 = vsel %vm725_vm0, %v2464_v54, 0.0 }
 0xcb3   : > { %2471 = vadd.xlane.f32.xlu1 %v2470_v53 }
 0xccc   : > { %2504 = vrot.lane.b32.xlu1 %v6522_v9, %s6419_s1 }
 0xd1e   : > { %v2469_v52 = vpop.xlane.xlu2 %2468 }
 0xd1f   : > { %v2473_v47 = vmul.f32 %v2469_v52, %v4314_v20 }
 0xd21   : > { %v2475_v45 = vadd.f32 1e-05, %v2473_v47  ;;  %v5917_v47 = vpop.permute.xlu0 %2499 }
 0xd23   : > { %3969 = vrsqrt.f32 %v2475_v45  ;;  %vm2483_vm15 = vweird.f32 %v2475_v45 }
 0xd26   : > { %v2472_v29 = vpop.xlane.xlu1 %2471 }
 0xd27   : > { %v2474_v32 = vmul.f32 %v2472_v29, %v4314_v20 }
 0xd29   : > { %v3970_v2 = vpop.eup %3969  ;;  %v2476_v11 = vadd.f32 1e-05, %v2474_v32 }
 0xd2a   : > { %v2478_v27 = vmul.f32 %v3970_v2, %v2475_v45  ;;  %vm2484_vm14 = vweird.f32 %v3970_v2 }
 0xd2b   : > { %3971 = vrsqrt.f32 %v2476_v11  ;;  %vm2485_vm1 = vmor %vm2483_vm15, %vm2484_vm14  ;;  %vm2493_vm3 = vweird.f32 %v2476_v11 }
 0xd2c   : > { %v2479_v36 = vmul.f32 %v3970_v2, %v2478_v27 }
 0xd2e   : > { %v2480_v0 = vmul.f32 0.5, %v2479_v36 }
 0xd30   : > { %v2481_v14 = vsub.f32 1.5, %v2480_v0 }
 0xd31   : > { %v3972_v55 = vpop.eup %3971 }
 0xd32   : > { %v2482_v5 = vmul.f32 %v3970_v2, %v2481_v14  ;;  %v2488_v13 = vmul.f32 %v3972_v55, %v2476_v11  ;;  %vm2494_vm2 = vweird.f32 %v3972_v55  ;;  %v6524_v11 = vld [vmem:[#allocation47_spill] sm:$0xff]  ;;  %v6525_v14 = vld [vmem:[#allocation48_spill] sm:$0xff] }
 0xd33   : > { %vm2495_vm4 = vmor %vm2493_vm3, %vm2494_vm2 }
 0xd34   : > { %v2489_v48 = vmul.f32 %v3972_v55, %v2488_v13  ;;  %v2486_v54 = vsel %vm2485_vm1, %v3970_v2, %v2482_v5  ;;  %v6527_v5 = vld [vmem:[#allocation50_spill] sm:$0xff]  ;;  %v6528_v13 = vld [vmem:[#allocation51_spill] sm:$0xff] }
 0xd35   : > { %v2497_v9 = vmul.f32 %v2486_v54, %v2455_v24 }
 0xd36   : > { %v2490_v42 = vmul.f32 0.5, %v2489_v48  ;;  %v6529_v48 = vld [vmem:[#allocation52_spill] sm:$0xff] }
 0xd37   : > { %v2502_v27 = vmul.f32 %v5917_v47, %v2497_v9  ;;  %v6532_v9 = vld [vmem:[#allocation55_spill] sm:$0xff] }
 0xd38   : > { %v2491_v53 = vsub.f32 1.5, %v2490_v42  ;;  %v6530_v42 = vld [vmem:[#allocation53_spill] sm:$0xff] }
 0xd3a   : > { %v2492_v52 = vmul.f32 %v3972_v55, %v2491_v53  ;;  %v6531_v53 = vld [vmem:[#allocation54_spill] sm:$0xff] }
 0xd3c   : > { %v2496_v29 = vsel %vm2495_vm4, %v3972_v55, %v2492_v52  ;;  %v6526_v55 = vld [vmem:[#allocation49_spill] sm:$0xff]  ;;  %v6533_v52 = vld [vmem:[#allocation56_spill] sm:$0xff] }
 0xd3d   : > { %v2498_v32 = vmul.f32 %v2496_v29, %v2456_v30  ;;  %v6523_v30 = vld [vmem:[#allocation46_spill] sm:$0xff] }
 0xd3e   : > { %v5920_v36 = vpop.permute.xlu1 %2504 }
 0xd3f   : > { %v2503_v45 = vmul.f32 %v5917_v47, %v2498_v32  ;;  %v2507_v0 = vadd.f32 %v5920_v36, %v2502_v27  ;;  %v6534_v32 = vld [vmem:[#allocation33_spill] sm:$0xff] }
 0xd41   : > { %2511 = vrot.lane.b32.xlu2 %v2507_v0, %s6518_s23  ;;  %v2508_v2 = vadd.f32 %v5920_v36, %v2503_v45 }
 0xd43   : > { %2513 = vrot.lane.b32.xlu0 %v2508_v2, %s6518_s23  ;;  %v6539_v2 = vld [vmem:[#allocation34_spill] sm:$0xff] }
 0xd9b   : > { %v2512_v24 = vpop.permute.xlu2 %2511 }
 0xd9c   : > { %3635 = vmatmul.msk.f32.vlgmr.msra.gmra.mxu3 %vm725_vm0, %v2512_v24  ;;  %v6540_v24 = vld [vmem:[#allocation35_spill] sm:$0xff] }
 0xd9d   : > { %2652 = vmatpush.msra.mxu3 %v5569_v31 }
 0xd9f   : > { %2653 = vmatpush.msra.mxu3 %v5573_v60 }
 0xda1   : > { %2654 = vmatpush.msra.mxu3 %v5577_v61 }
 0xda3   : > { %2655 = vmatpush.msra.mxu3 %v5581_v19 }
 0xda5   : > { %2656 = vmatpush.msra.mxu3 %v5585_v8 }
 0xda7   : > { %2657 = vmatpush.msra.mxu3 %v6523_v30 }
 0xda9   : > { %2658 = vmatpush.msra.mxu3 %v6524_v11 }
 0xdab   : > { %2659 = vmatpush.msra.mxu3 %v6525_v14 }
 0xdad   : > { %2660 = vmatpush.msra.mxu3 %v6526_v55 }
 0xdaf   : > { %2661 = vmatpush.msra.mxu3 %v6527_v5 }
 0xdb1   : > { %2662 = vmatpush.msra.mxu3 %v6528_v13 }
 0xdb3   : > { %2663 = vmatpush.msra.mxu3 %v6529_v48 }
 0xdb5   : > { %2664 = vmatpush.msra.mxu3 %v6530_v42  ;;  %v2514_v54 = vpop.permute.xlu0 %2513 }
 0xdb6   : > { %3636 = vmatmul.msk.f32.gmra.mxu3 %vm725_vm0, %v2514_v54  ;;  %v6541_v54 = vld [vmem:[#allocation36_spill] sm:$0xff] }
 0xdb7   : > { %2665 = vmatpush.msra.mxu3 %v6531_v53 }
 0xdb9   : > { %2666 = vmatpush.msra.mxu3 %v6532_v9 }
 0xdbb   : > { %2667 = vmatpush.msra.mxu3 %v6533_v52 }
 0xe1f   : > { %v2536_v29 = vpop.f32.mrf.mxu3 }
 0xe20   : > { %v2537_v27 = vadd.f32 %v6534_v32, %v2536_v29  ;;  %v6542_v29 = vld [vmem:[#allocation37_spill] sm:$0xff] }
 0xe22   : > { %3653 = vmatmul.msk.f32.vlgmr.msra.gmra.mxu1 %vm725_vm0, %v2537_v27  ;;  %v6545_v27 = vld [vmem:[#allocation40_spill] sm:$0xff] }
 0xe23   : > { %2919 = vmatpush.msra.mxu1 %v5700_v16  ;;  %v4037_v16 = vld [vmem:[%s6462_s26 + $0x18] sm:$0xff] }
 0xe25   : > { %2920 = vmatpush.msra.mxu1 %v5706_v49  ;;  %v4038_v49 = vld [vmem:[%s6462_s26 + $0x10] sm:$0xff] }
 0xe27   : > { %2921 = vmatpush.msra.mxu1 %v5714_v15  ;;  %v4039_v15 = vld [vmem:[%s6462_s26 + $0x8] sm:$0xff] }
 0xe29   : > { %2922 = vmatpush.msra.mxu1 %v5720_v58  ;;  %v4040_v58 = vld [vmem:[%s6462_s26] sm:$0xff] }
 0xe2b   : > { %2923 = vmatpush.msra.mxu1 %v5728_v38  ;;  %v6535_v38 = vld [vmem:[#allocation10_spill] sm:$0xff] }
 0xe2d   : > { %2924 = vmatpush.msra.mxu1 %v5734_v39  ;;  %v6536_v39 = vld [vmem:[#allocation11_spill] sm:$0xff] }
 0xe2f   : > { %2925 = vmatpush.msra.mxu1 %v5742_v21  ;;  %v6537_v21 = vld [vmem:[#allocation16_spill] sm:$0xff] }
 0xe31   : > { %2926 = vmatpush.msra.mxu1 %v5757_v37  ;;  %v6538_v37 = vld [vmem:[#allocation17_spill] sm:$0xff] }
 0xe39   : > { %v2539_v45 = vpop.f32.mrf.mxu3 }
 0xe3a   : > { %v2540_v0 = vadd.f32 %v6534_v32, %v2539_v45  ;;  %v6544_v32 = vld [vmem:[#allocation39_spill] sm:$0xff]  ;;  %v6546_v45 = vld [vmem:[#allocation41_spill] sm:$0xff] }
 0xe3c   : > { %3670 = vmatmul.msk.f32.vlgmr.msrb.gmra.mxu2 %vm725_vm0, %v2540_v0  ;;  %v6547_v0 = vld [vmem:[#allocation42_spill] sm:$0xff] }
 0xe3d   : > { %3032 = vmatpush.msrb.mxu2 %v4037_v16  ;;  %v6548_v16 = vld [vmem:[#allocation43_spill] sm:$0xff] }
 0xe3f   : > { %3033 = vmatpush.msrb.mxu2 %v4038_v49  ;;  %v6550_v49 = vld [vmem:[#allocation45_spill] sm:$0xff] }
 0xe41   : > { %3034 = vmatpush.msrb.mxu2 %v4039_v15 }
 0xe43   : > { %3035 = vmatpush.msrb.mxu2 %v4040_v58 }
 0xe44   : > { %3673 = vmatmul.msk.f32.vlgmr.msra.gmra.mxu2 %vm725_vm0, %v5899_v7  ;;  %v6543_v7 = vld [vmem:[#allocation38_spill] sm:$0xff] }
 0xe45   : > { %3133 = vmatpush.msra.mxu2 %v6535_v38 }
 0xe47   : > { %3134 = vmatpush.msra.mxu2 %v6536_v39 }
 0xe49   : > { %3135 = vmatpush.msra.mxu2 %v6537_v21 }
 0xe4b   : > { %3136 = vmatpush.msra.mxu2 %v6538_v37 }
 0xe4c   : > { %3674 = vmatmul.msk.f32.gmra.mxu2 %vm725_vm0, %v5895_v44  ;;  %v6549_v44 = vld [vmem:[#allocation44_spill] sm:$0xff] }
 0xe4d   : > { %3137 = vmatpush.msra.mxu2 %v6539_v2 }
 0xe4f   : > { %3138 = vmatpush.msra.mxu2 %v6540_v24 }
 0xe51   : > { %3139 = vmatpush.msra.mxu2 %v6541_v54 }
 0xe53   : > { %3140 = vmatpush.msra.mxu2 %v6542_v29 }
 0xe55   : > { %3141 = vmatpush.msra.mxu2 %v6543_v7 }
 0xe57   : > { %3142 = vmatpush.msra.mxu2 %v6544_v32 }
 0xe59   : > { %3143 = vmatpush.msra.mxu2 %v6545_v27 }
 0xe5b   : > { %3144 = vmatpush.msra.mxu2 %v6546_v45 }
 0xe5d   : > { %3145 = vmatpush.msra.mxu2 %v6547_v0 }
 0xe5f   : > { %3146 = vmatpush.msra.mxu2 %v6548_v16 }
 0xe61   : > { %3147 = vmatpush.msra.mxu2 %v6549_v44 }
 0xe63   : > { %3148 = vmatpush.msra.mxu2 %v6550_v49 }
 0xe9f   : > { %v2562_v15 = vpop.f32.mrf.mxu1 }
 0xea0   : > { %v2588_v58 = vrot.slane %v2562_v15, 4 }
 0xea2   : > { %v2589_v38 = vmax.f32 %v2562_v15, %v2588_v58 }
 0xea4   : > { %v2590_v39 = vrot.slane %v2589_v38, 2 }
 0xea6   : > { %v2591_v21 = vmax.f32 %v2589_v38, %v2590_v39 }
 0xea8   : > { %v2592_v37 = vrot.slane %v2591_v21, 1 }
 0xeaa   : > { %v2593_v2 = vmax.f32 %v2591_v21, %v2592_v37 }
 0xeac   : > { %v2600_v24 = vsub.f32 %v2562_v15, %v2593_v2 }
 0xeae   : > { %v2602_v54 = vmul.f32 1.442695, %v2600_v24 }
 0xeb0   : > { %3973 = vpow2.f32 %v2602_v54 }
 0xeb6   : > { %v3974_v29 = vpop.eup %3973 }
 0xeb7   : > { %v2606_v7 = vrot.slane %v3974_v29, 4 }
 0xeb9   : > { %v2607_v32 = vadd.f32 %v3974_v29, %v2606_v7 }
 0xebb   : > { %v2608_v27 = vrot.slane %v2607_v32, 2 }
 0xebd   : > { %v2609_v45 = vadd.f32 %v2608_v27, %v2607_v32 }
 0xebf   : > { %v2585_v0 = vpop.f32.mrf.mxu2  ;;  %v2610_v16 = vrot.slane %v2609_v45, 1 }
 0xec0   : > { %v2594_v44 = vrot.slane %v2585_v0, 4 }
 0xec1   : > { %v2611_v52 = vadd.f32 %v2610_v16, %v2609_v45 }
 0xec2   : > { %v2595_v49 = vmax.f32 %v2585_v0, %v2594_v44 }
 0xec3   : > { %3975 = vrcp.f32 %v2611_v52 }
 0xec4   : > { %v2596_v9 = vrot.slane %v2595_v49, 2 }
 0xec6   : > { %v2597_v58 = vmax.f32 %v2595_v49, %v2596_v9 }
 0xec7   : > { %v2722_v53 = vpop.f32.mrf.mxu2 }
 0xec8   : > { %v2598_v38 = vrot.slane %v2597_v58, 1  ;;  %v5990_v39 = vadd.f32 %v5768_v4, %v2722_v53 }
 0xec9   : > { %v3976_v15 = vpop.eup %3975 }
 0xeca   : > { %v2599_v21 = vmax.f32 %v2597_v58, %v2598_v38  ;;  %2770 = vrot.lane.b32.xlu2 %v5990_v39, %s6551_s5  ;;  %v2620_v37 = vmul.f32 %v3976_v15, %v3974_v29 }
 0xecc   : > { %v2601_v2 = vsub.f32 %v2585_v0, %v2599_v21  ;;  %v2622_v24 = vadd.f32 1e-08, %v2620_v37 }
 0xece   : > { %v2604_v54 = vmul.f32 1.442695, %v2601_v2  ;;  %2624 = vadd.xlane.f32.xlu0 %v2622_v24 }
 0xecf   : > { %v2725_v7 = vpop.f32.mrf.mxu2 }
 0xed0   : > { %3977 = vpow2.f32 %v2604_v54  ;;  %v5995_v52 = vadd.f32 %v5768_v4, %v2725_v7 }
 0xed2   : > { %2772 = vrot.lane.b32.xlu2 %v5995_v52, %s6551_s5 }
 0xed6   : > { %v3978_v53 = vpop.eup %3977 }
 0xed7   : > { %v2612_v9 = vrot.slane %v3978_v53, 4 }
 0xed9   : > { %v2613_v32 = vadd.f32 %v3978_v53, %v2612_v9 }
 0xedb   : > { %v2614_v27 = vrot.slane %v2613_v32, 2 }
 0xedd   : > { %v2615_v45 = vadd.f32 %v2614_v27, %v2613_v32 }
 0xedf   : > { %v2616_v16 = vrot.slane %v2615_v45, 1 }
 0xee1   : > { %v2617_v44 = vadd.f32 %v2616_v16, %v2615_v45 }
 0xee3   : > { %3979 = vrcp.f32 %v2617_v44 }
 0xee9   : > { %v3980_v29 = vpop.eup %3979 }
 0xeea   : > { %v2621_v0 = vmul.f32 %v3980_v29, %v3978_v53 }
 0xeec   : > { %v2623_v49 = vadd.f32 1e-08, %v2621_v0 }
 0xeee   : > { %2626 = vadd.xlane.f32.xlu1 %v2623_v49 }
 0xf41   : > { %v2625_v58 = vpop.xlane.xlu0 %2624 }
 0xf42   : > { %3981 = vrcp.f32 %v2625_v58  ;;  %v2771_v58 = vpop.permute.xlu2 %2770 }
 0xf48   : > { %v3982_v38 = vpop.eup %3981 }
 0xf49   : > { %v2630_v4 = vmul.f32 %v3982_v38, %v2622_v24 }
 0xf4b   : > { %2648 = vmatmul.f32.vlgmr.msrb.gmra.mxu3 %v2630_v4 }
 0xf4c   : > { %2892 = vmatpush.msrb.mxu3 %v5635_v35  ;;  %v6566_v35 = vld [vmem:[#allocation30_spill] sm:$0xff] }
 0xf4e   : > { %2893 = vmatpush.msrb.mxu3 %v5640_v26  ;;  %v6567_v26 = vld [vmem:[#allocation31_spill] sm:$0xff] }
 0xf50   : > { %2894 = vmatpush.msrb.mxu3 %v5646_v18 }
 0xf52   : > { %2895 = vmatpush.msrb.mxu3 %v5652_v33  ;;  %v6568_v33 = vld [vmem:[#allocation57_spill] sm:$0xff] }
 0xf61   : > { %v2627_v15 = vpop.xlane.xlu1 %2626 }
 0xf62   : > { %3983 = vrcp.f32 %v2627_v15 }
 0xf68   : > { %v3984_v21 = vpop.eup %3983 }
 0xf69   : > { %v2631_v37 = vmul.f32 %v3984_v21, %v2623_v49 }
 0xf6b   : > { %2668 = vmatmul.f32.vlgmr.msra.gmra.mxu3 %v2631_v37 }
 0xf6c   : > { %3683 = vmatpush.xpose.msk.msra.mxu3 %vm725_vm0, %v5089_v50 }
 0xf70   : > { %3684 = vmatpush.xpose.msk.msra.mxu3 %vm725_vm0, %v5101_v41  ;;  %v6552_v41 = vld [vmem:[#allocation25_spill] sm:$0xff] }
 0xf74   : > { %3685 = vmatpush.xpose.msk.msra.mxu3 %vm725_vm0, %v5110_v28  ;;  %v6553_v28 = vld [vmem:[#allocation22_spill] sm:$0xff] }
 0xf78   : > { %3686 = vmatpush.xpose.msk.msra.mxu3 %vm725_vm0, %v5118_v34  ;;  %v6554_v34 = vld [vmem:[#allocation19_spill] sm:$0xff] }
 0xf7c   : > { %3687 = vmatpush.xpose.msk.msra.mxu3 %vm725_vm0, %v5129_v22  ;;  %v6555_v22 = vld [vmem:[#allocation15_spill] sm:$0xff] }
 0xf80   : > { %3688 = vmatpush.xpose.msk.msra.mxu3 %vm725_vm0, %v5140_v10  ;;  %v6556_v10 = vld [vmem:[#allocation14_spill] sm:$0xff] }
 0xf84   : > { %3689 = vmatpush.xpose.msk.msra.mxu3 %vm725_vm0, %v5149_v57  ;;  %v6557_v57 = vld [vmem:[#allocation13_spill] sm:$0xff] }
 0xf88   : > { %3690 = vmatpush.xpose.msk.msra.mxu3 %vm725_vm0, %v5157_v40  ;;  %v6558_v40 = vld [vmem:[#allocation12_spill] sm:$0xff] }
 0xf8c   : > { %3691 = vmatpush.xpose.msk.msra.mxu3 %vm725_vm0, %v5165_v46  ;;  %v6559_v46 = vld [vmem:[#allocation21_spill] sm:$0xff] }
 0xf90   : > { %3692 = vmatpush.xpose.msk.msra.mxu3 %vm725_vm0, %v5173_v6 }
 0xf94   : > { %3693 = vmatpush.xpose.msk.msra.mxu3 %vm725_vm0, %v5181_v17  ;;  %v6560_v17 = vld [vmem:[#allocation24_spill] sm:$0xff] }
 0xf98   : > { %3694 = vmatpush.xpose.msk.msra.mxu3 %vm725_vm0, %v5188_v25  ;;  %v6561_v25 = vld [vmem:[#allocation23_spill] sm:$0xff] }
 0xf9c   : > { %3695 = vmatpush.xpose.msk.msra.mxu3 %vm725_vm0, %v5195_v62  ;;  %v6562_v62 = vld [vmem:[#allocation26_spill] sm:$0xff] }
 0xfa0   : > { %3696 = vmatpush.xpose.msk.msra.mxu3 %vm725_vm0, %v5201_v12  ;;  %v6563_v12 = vld [vmem:[#allocation27_spill] sm:$0xff] }
 0xfa4   : > { %3697 = vmatpush.xpose.msk.msra.mxu3 %vm725_vm0, %v5207_v43  ;;  %v6564_v43 = vld [vmem:[#allocation28_spill] sm:$0xff] }
 0xfa8   : > { %3698 = vmatpush.xpose.msk.msra.mxu3 %vm725_vm0, %v5213_v23  ;;  %v6565_v23 = vld [vmem:[#allocation29_spill] sm:$0xff] }
 0xfce   : > { %v2649_v50 = vpop.f32.mrf.mxu3 }
 0xfcf   : > { %3671 = vmatmul.msk.f32.vlgmr.msrb.gmra.mxu1 %vm725_vm0, %v2649_v50 }
 0xfd0   : > { %3700 = vmatpush.xpose.msk.msrb.mxu1 %vm725_vm0, %v6552_v41 }
 0xfd4   : > { %3701 = vmatpush.xpose.msk.msrb.mxu1 %vm725_vm0, %v6553_v28 }
 0xfd8   : > { %3702 = vmatpush.xpose.msk.msrb.mxu1 %vm725_vm0, %v6554_v34 }
 0xfdc   : > { %3703 = vmatpush.xpose.msk.msrb.mxu1 %vm725_vm0, %v6555_v22 }
 0xfe0   : > { %3704 = vmatpush.xpose.msk.msrb.mxu1 %vm725_vm0, %v6556_v10 }
 0xfe4   : > { %3705 = vmatpush.xpose.msk.msrb.mxu1 %vm725_vm0, %v6557_v57 }
 0xfe8   : > { %3706 = vmatpush.xpose.msk.msrb.mxu1 %vm725_vm0, %v6558_v40 }
 0xfec   : > { %3707 = vmatpush.xpose.msk.msrb.mxu1 %vm725_vm0, %v6559_v46 }
 0xfee   : > { %v2669_v6 = vpop.f32.mrf.mxu3 }
 0xfef   : > { %3672 = vmatmul.msk.f32.gmra.mxu1 %vm725_vm0, %v2669_v6 }
 0xff0   : > { %3708 = vmatpush.xpose.msk.msrb.mxu1 %vm725_vm0, %v6560_v17 }
 0xff4   : > { %3709 = vmatpush.xpose.msk.msrb.mxu1 %vm725_vm0, %v6561_v25 }
 0xff8   : > { %3710 = vmatpush.xpose.msk.msrb.mxu1 %vm725_vm0, %v6562_v62 }
 0xffc   : > { %3711 = vmatpush.xpose.msk.msrb.mxu1 %vm725_vm0, %v6563_v12 }
0x1000   : > { %3712 = vmatpush.xpose.msk.msrb.mxu1 %vm725_vm0, %v6564_v43 }
0x1004   : > { %3713 = vmatpush.xpose.msk.msrb.mxu1 %vm725_vm0, %v6565_v23 }
0x1008   : > { %3714 = vmatpush.xpose.msk.msrb.mxu1 %vm725_vm0, %v6566_v35 }
0x100c   : > { %3715 = vmatpush.xpose.msk.msrb.mxu1 %vm725_vm0, %v6567_v26 }
0x104c   : > { %v2695_v18 = vpop.f32.mrf.mxu1 }
0x104d   : > { %v2696_v2 = vadd.f32 %v6568_v33, %v2695_v18 }
0x104f   : > { %v2728_v24 = vadd.f32 %v5990_v39, %v2696_v2 }
0x1051   : > { %v3675_v54 = vmul.f32 -1.442695, %v2728_v24 }
0x1053   : > { %3985 = vpow2.f32 %v3675_v54 }
0x1059   : > { %v3986_v7 = vpop.eup %3985 }
0x105a   : > { %v2736_v53 = vadd.f32 1.0, %v3986_v7 }
0x105c   : > { %3987 = vrcp.f32 %v2736_v53  ;;  %v2749_v45 = vand.u32 2147483648, %v2736_v53  ;;  %v2747_v44 = vand.u32 2147483647, %v2736_v53  ;;  %vm2743_vm6 = vweird.f32 %v2736_v53 }
0x105e   : > { %v2750_v0 = vor.u32 1.1754944e-38, %v2749_v45  ;;  %vm2748_vm8 = vcmp.eq.f32.partialorder %v2747_v44, 8.507059e+37 }
0x1062   : > { %v3988_v9 = vpop.eup %3987 }
0x1063   : > { %v2739_v32 = vmul.f32 %v3988_v9, %v2736_v53  ;;  %vm2744_vm5 = vweird.f32 %v3988_v9 }
0x1064   : > { %vm2745_vm7 = vmor %vm2743_vm6, %vm2744_vm5 }
0x1065   : > { %v2740_v27 = vsub.f32 1.0, %v2739_v32 }
0x1067   : > { %v2741_v16 = vmul.f32 %v3988_v9, %v2740_v27 }
0x1069   : > { %v2742_v29 = vadd.f32 %v3988_v9, %v2741_v16 }
0x106b   : > { %v2746_v49 = vsel %vm2745_vm7, %v3988_v9, %v2742_v29 }
0x106c   : > { %v2698_v39 = vpop.f32.mrf.mxu1  ;;  %v2751_v38 = vsel %vm2748_vm8, %v2750_v0, %v2746_v49 }
0x106d   : > { %v2699_v4 = vadd.f32 %v6568_v33, %v2698_v39  ;;  %v2776_v15 = vmul.f32 %v2771_v58, %v2751_v38  ;;  %v2790_v33 = vsub.f32 1.0, %v2751_v38  ;;  %v2802_v54 = vmul.f32 %v2751_v38, %v5885_v51 }
0x106f   : > { %v2729_v21 = vadd.f32 %v5995_v52, %v2699_v4  ;;  %2780 = vrot.lane.b32.xlu2 %v2776_v15, %s6551_s5  ;;  %v2773_v52 = vpop.permute.xlu2 %2772 }
0x1071   : > { %v3676_v37 = vmul.f32 -1.442695, %v2729_v21 }
0x1073   : > { %3989 = vpow2.f32 %v3676_v37 }
0x1079   : > { %v3990_v50 = vpop.eup %3989 }
0x107a   : > { %v2737_v41 = vadd.f32 1.0, %v3990_v50 }
0x107c   : > { %3991 = vrcp.f32 %v2737_v41  ;;  %v2764_v10 = vand.u32 2147483648, %v2737_v41  ;;  %v2762_v40 = vand.u32 2147483647, %v2737_v41  ;;  %vm2758_vm10 = vweird.f32 %v2737_v41 }
0x107e   : > { %v2765_v6 = vor.u32 1.1754944e-38, %v2764_v10  ;;  %vm2763_vm12 = vcmp.eq.f32.partialorder %v2762_v40, 8.507059e+37 }
0x1082   : > { %v3992_v28 = vpop.eup %3991 }
0x1083   : > { %v2754_v34 = vmul.f32 %v3992_v28, %v2737_v41  ;;  %vm2759_vm9 = vweird.f32 %v3992_v28 }
0x1084   : > { %vm2760_vm11 = vmor %vm2758_vm10, %vm2759_vm9 }
0x1085   : > { %v2755_v22 = vsub.f32 1.0, %v2754_v34 }
0x1087   : > { %v2756_v57 = vmul.f32 %v3992_v28, %v2755_v22 }
0x1089   : > { %v2757_v46 = vadd.f32 %v3992_v28, %v2756_v57 }
0x108b   : > { %v2761_v17 = vsel %vm2760_vm11, %v3992_v28, %v2757_v46 }
0x108c   : > { %v2766_v25 = vsel %vm2763_vm12, %v2765_v6, %v2761_v17 }
0x108d   : > { %v2777_v62 = vmul.f32 %v2773_v52, %v2766_v25  ;;  %v2803_v32 = vmul.f32 %v2766_v25, %v5891_v56 }
0x108f   : > { %2782 = vrot.lane.b32.xlu2 %v2777_v62, %s6551_s5 }
0x10c9   : > { %v2781_v12 = vpop.permute.xlu2 %2780 }
0x10ca   : > { %v2786_v43 = vadd.f32 %v2781_v12, %v2696_v2  ;;  %v2791_v2 = vsub.f32 1.0, %v2766_v25 }
0x10cc   : > { %3993 = vtanh.f32 %v2786_v43 }
0x10d2   : > { %v3994_v23 = vpop.eup %3993 }
0x10d3   : > { %2794 = vrot.lane.b32.xlu0 %v3994_v23, %s6518_s23 }
0x10e9   : > { %v2783_v35 = vpop.permute.xlu2 %2782 }
0x10ea   : > { %v2787_v26 = vadd.f32 %v2783_v35, %v2699_v4 }
0x10ec   : > { %3995 = vtanh.f32 %v2787_v26 }
0x10f2   : > { %v3996_v18 = vpop.eup %3995 }
0x10f3   : > { %2796 = vrot.lane.b32.xlu2 %v3996_v18, %s6518_s23 }
0x1145   : > { %v2795_v24 = vpop.permute.xlu0 %2794 }
0x1146   : > { %v2800_v7 = vmul.f32 %v2795_v24, %v2790_v33 }
0x1148   : > { %v6078_v53 = vadd.f32 %v2802_v54, %v2800_v7 }
0x114a   : > { %2808 = vrot.lane.b32.xlu1 %v6078_v53, %s6518_s23 }
0x114d   : > { %v2797_v9 = vpop.permute.xlu2 %2796 }
0x114e   : > { %v2801_v27 = vmul.f32 %v2797_v9, %v2791_v2 }
0x1150   : > { %v6083_v45 = vadd.f32 %v2803_v32, %v2801_v27 }
0x1152   : > { %2810 = vrot.lane.b32.xlu2 %v6083_v45, %s6518_s23 }
0x11ac   : > { %v2811_v16 = vpop.permute.xlu2 %2810 }
0x11ad   : > { %v2817_v44 = vsel %vm725_vm0, %v2811_v16, 0.0 }
0x11ae   : > { %2818 = vadd.xlane.f32.xlu0 %v2817_v44  ;;  %v4041_v44 = vld [vmem:[%s6516_s6 + $0x18] sm:$0xff] }
0x11bc   : > { %v2809_v51 = vpop.permute.xlu1 %2808 }
0x11bd   : > { %v2814_v29 = vsel %vm725_vm0, %v2809_v51, 0.0  ;;  %v4042_v51 = vld [vmem:[%s6516_s6 + $0x10] sm:$0xff] }
0x11be   : > { %2815 = vadd.xlane.f32.xlu2 %v2814_v29  ;;  %v4043_v29 = vld [vmem:[%s6516_s6 + $0x8] sm:$0xff] }
0x1221   : > { %v2819_v58 = vpop.xlane.xlu0 %2818 }
0x1222   : > { %v2821_v39 = vmul.f32 %v2819_v58, %v4314_v20 }
0x1224   : > { %v2823_v4 = vsub.f32 %v6083_v45, %v2821_v39 }
0x1226   : > { %v2825_v15 = vmul.f32 %v2823_v4, %v2823_v4 }
0x1231   : > { %v2816_v0 = vpop.xlane.xlu2 %2815 }
0x1232   : > { %v2820_v49 = vmul.f32 %v2816_v0, %v4314_v20 }
0x1234   : > { %v2822_v56 = vsub.f32 %v6078_v53, %v2820_v49  ;;  %v4044_v49 = vld [vmem:[%s6516_s6] sm:$0xff] }
0x1236   : > { %v2824_v38 = vmul.f32 %v2822_v56, %v2822_v56 }
0x1238   : > { %2828 = vrot.lane.b32.xlu1 %v2824_v38, %s6518_s23  ;;  %v4045_v38 = vld [vmem:[%s6489_s7 + $0x18] sm:$0xff] }
0x1240   : > { %2830 = vrot.lane.b32.xlu1 %v2825_v15, %s6518_s23  ;;  %v4046_v15 = vld [vmem:[%s6489_s7 + $0x10] sm:$0xff] }
0x12aa   : > { %v2829_v21 = vpop.permute.xlu1 %2828 }
0x12ab   : > { %v2834_v37 = vsel %vm725_vm0, %v2829_v21, 0.0 }
0x12ac   : > { %2835 = vadd.xlane.f32.xlu1 %v2834_v37  ;;  %v4047_v37 = vld [vmem:[%s6489_s7 + $0x8] sm:$0xff] }
0x12b2   : > { %v2831_v50 = vpop.permute.xlu1 %2830 }
0x12b3   : > { %v2837_v41 = vsel %vm725_vm0, %v2831_v50, 0.0 }
0x12b4   : > { %2838 = vadd.xlane.f32.xlu2 %v2837_v41  ;;  %v4048_v41 = vld [vmem:[%s6489_s7] sm:$0xff] }
0x131f   : > { %v2836_v28 = vpop.xlane.xlu1 %2835 }
0x1320   : > { %v2840_v34 = vmul.f32 %v2836_v28, %v4314_v20 }
0x1322   : > { %v2842_v22 = vadd.f32 1e-05, %v2840_v34 }
0x1324   : > { %3997 = vrsqrt.f32 %v2842_v22  ;;  %vm2850_vm15 = vweird.f32 %v2842_v22 }
0x1327   : > { %v2839_v10 = vpop.xlane.xlu2 %2838 }
0x1328   : > { %v2841_v57 = vmul.f32 %v2839_v10, %v4314_v20 }
0x132a   : > { %v3998_v40 = vpop.eup %3997  ;;  %v2843_v46 = vadd.f32 1e-05, %v2841_v57 }
0x132b   : > { %v2845_v6 = vmul.f32 %v3998_v40, %v2842_v22  ;;  %vm2851_vm14 = vweird.f32 %v3998_v40 }
0x132c   : > { %3999 = vrsqrt.f32 %v2843_v46  ;;  %vm2852_vm1 = vmor %vm2850_vm15, %vm2851_vm14  ;;  %vm2860_vm3 = vweird.f32 %v2843_v46 }
0x132d   : > { %v2846_v17 = vmul.f32 %v3998_v40, %v2845_v6 }
0x132f   : > { %v2847_v52 = vmul.f32 0.5, %v2846_v17 }
0x1331   : > { %v2848_v25 = vsub.f32 1.5, %v2847_v52 }
0x1332   : > { %v4000_v62 = vpop.eup %3999 }
0x1333   : > { %v2849_v12 = vmul.f32 %v3998_v40, %v2848_v25  ;;  %v2855_v43 = vmul.f32 %v4000_v62, %v2843_v46  ;;  %vm2861_vm2 = vweird.f32 %v4000_v62 }
0x1334   : > { %vm2862_vm4 = vmor %vm2860_vm3, %vm2861_vm2 }
0x1335   : > { %v2853_v23 = vsel %vm2852_vm1, %v3998_v40, %v2849_v12  ;;  %v2856_v35 = vmul.f32 %v4000_v62, %v2855_v43 }
0x1336   : > { %v2864_v26 = vmul.f32 %v2853_v23, %v2822_v56 }
0x1337   : > { %v2857_v18 = vmul.f32 0.5, %v2856_v35 }
0x1338   : > { %v2866_v33 = vmul.f32 %v2864_v26, %v5846_v3 }
0x1339   : > { %v2858_v24 = vsub.f32 1.5, %v2857_v18 }
0x133a   : > { %v2868_v54 = vadd.f32 %v2866_v33, %v5849_v1 }
0x133b   : > { %v2859_v7 = vmul.f32 %v4000_v62, %v2858_v24 }
0x133c   : > { %2872 = vrot.lane.b32.xlu0 %v2868_v54, %s6518_s23 }
0x133d   : > { %v2863_v2 = vsel %vm2862_vm4, %v4000_v62, %v2859_v7 }
0x133e   : > { %v2865_v9 = vmul.f32 %v2863_v2, %v2823_v4 }
0x1340   : > { %v2867_v32 = vmul.f32 %v2865_v9, %v5846_v3 }
0x1342   : > { %v2869_v27 = vadd.f32 %v2867_v32, %v5849_v1 }
0x1344   : > { %2874 = vrot.lane.b32.xlu2 %v2869_v27, %s6518_s23 }
0x139e   : > { %v2875_v0 = vpop.permute.xlu2 %2874 }
0x13ae   : > { %v2873_v16 = vpop.permute.xlu0 %2872 }
0x13af   : > { %3677 = vmatmul.msk.f32.vlgmr.msrb.gmra.mxu3 %vm725_vm0, %v2873_v16 }
0x13b0   : > { %3191 = vmatpush.msrb.mxu3 %v4041_v44 }
0x13b2   : > { %3192 = vmatpush.msrb.mxu3 %v4042_v51 }
0x13b4   : > { %3193 = vmatpush.msrb.mxu3 %v4043_v29 }
0x13b6   : > { %3194 = vmatpush.msrb.mxu3 %v4044_v49 }
0x13b7   : > { %3678 = vmatmul.msk.f32.gmra.mxu3 %vm725_vm0, %v2875_v0 }
0x1432   : > { %v2897_v58 = vpop.f32.mrf.mxu3 }
0x1433   : > { %v2898_v56 = vadd.f32 %v5865_v63, %v2897_v58 }
0x1435   : > { %v2903_v39 = vmax.f32 %v2898_v56, 0.0 }
0x1437   : > { %3679 = vmatmul.msk.f32.vlgmr.msra.gmra.mxu1 %vm2392_vm13, %v2903_v39 }
0x1438   : > { %3218 = vmatpush.msra.mxu1 %v4045_v38 }
0x143a   : > { %v2900_v4 = vpop.f32.mrf.mxu3  ;;  %3219 = vmatpush.msra.mxu1 %v4046_v15 }
0x143b   : > { %v2901_v21 = vadd.f32 %v5865_v63, %v2900_v4 }
0x143c   : > { %3220 = vmatpush.msra.mxu1 %v4047_v37 }
0x143d   : > { %v2904_v50 = vmax.f32 %v2901_v21, 0.0 }
0x143e   : > { %3221 = vmatpush.msra.mxu1 %v4048_v41 }
0x143f   : > { %3680 = vmatmul.msk.f32.gmra.mxu1 %vm2392_vm13, %v2904_v50 }
0x14b4   : > { %v2928_v28 = vpop.f32.mrf.mxu1 }
0x14b5   : > { %2936 = vrot.lane.b32.xlu0 %v2928_v28, %s6569_s27 }
0x14bc   : > { %v2931_v34 = vpop.f32.mrf.mxu1 }
0x14bd   : > { %2938 = vrot.lane.b32.xlu1 %v2931_v34, %s6569_s27 }
0x1527   : > { %v2937_v63 = vpop.permute.xlu0 %2936 }
0x1528   : > { %v2942_v22 = vadd.f32 %v2937_v63, %v6078_v53 }
0x152a   : > { %v6139_v10 = vadd.f32 %v2942_v22, %v5881_v59 }
0x152c   : > { %2948 = vrot.lane.b32.xlu0 %v6139_v10, %s6518_s23 }
0x152f   : > { %v2939_v57 = vpop.permute.xlu1 %2938 }
0x1530   : > { %v2943_v40 = vadd.f32 %v2939_v57, %v6083_v45 }
0x1532   : > { %v6145_v46 = vadd.f32 %v2943_v40, %v5881_v59 }
0x1534   : > { %2950 = vrot.lane.b32.xlu2 %v6145_v46, %s6518_s23 }
0x158e   : > { %v6149_v6 = vpop.permute.xlu2 %2950 }
0x158f   : > { %v2957_v53 = vsel %vm725_vm0, %v6149_v6, 0.0 }
0x1590   : > { %2958 = vadd.xlane.f32.xlu2 %v2957_v53 }
0x159e   : > { %v6153_v17 = vpop.permute.xlu0 %2948 }
0x159f   : > { %v2954_v52 = vsel %vm725_vm0, %v6153_v17, 0.0 }
0x15a0   : > { %2955 = vadd.xlane.f32.xlu0 %v2954_v52 }
0x1603   : > { %v2959_v62 = vpop.xlane.xlu2 %2958 }
0x1604   : > { %v2961_v43 = vmul.f32 %v2959_v62, %v4314_v20 }
0x1606   : > { %v2963_v35 = vsub.f32 %v6145_v46, %v2961_v43 }
0x1608   : > { %v2965_v26 = vmul.f32 %v2963_v35, %v2963_v35 }
0x1613   : > { %v2956_v25 = vpop.xlane.xlu0 %2955 }
0x1614   : > { %v2960_v45 = vmul.f32 %v2956_v25, %v4314_v20 }
0x1616   : > { %v2962_v12 = vsub.f32 %v6139_v10, %v2960_v45 }
0x1618   : > { %v2964_v23 = vmul.f32 %v2962_v12, %v2962_v12 }
0x161a   : > { %2968 = vrot.lane.b32.xlu1 %v2964_v23, %s6518_s23 }
0x1622   : > { %2970 = vrot.lane.b32.xlu1 %v2965_v26, %s6518_s23 }
0x168c   : > { %v2969_v18 = vpop.permute.xlu1 %2968 }
0x168d   : > { %v2974_v33 = vsel %vm725_vm0, %v2969_v18, 0.0 }
0x168e   : > { %2975 = vadd.xlane.f32.xlu1 %v2974_v33 }
0x1694   : > { %v2971_v24 = vpop.permute.xlu1 %2970 }
0x1695   : > { %v2977_v54 = vsel %vm725_vm0, %v2971_v24, 0.0 }
0x1696   : > { %2978 = vadd.xlane.f32.xlu0 %v2977_v54 }
0x1701   : > { %v2976_v7 = vpop.xlane.xlu1 %2975 }
0x1702   : > { %v2980_v2 = vmul.f32 %v2976_v7, %v4314_v20 }
0x1704   : > { %v2982_v9 = vadd.f32 1e-05, %v2980_v2 }
0x1706   : > { %4001 = vrsqrt.f32 %v2982_v9  ;;  %vm2990_vm6 = vweird.f32 %v2982_v9 }
0x1709   : > { %v2979_v32 = vpop.xlane.xlu0 %2978 }
0x170a   : > { %v2981_v27 = vmul.f32 %v2979_v32, %v4314_v20 }
0x170c   : > { %v4002_v16 = vpop.eup %4001  ;;  %v2983_v44 = vadd.f32 1e-05, %v2981_v27 }
0x170d   : > { %v2985_v51 = vmul.f32 %v4002_v16, %v2982_v9  ;;  %vm2991_vm5 = vweird.f32 %v4002_v16 }
0x170e   : > { %4003 = vrsqrt.f32 %v2983_v44  ;;  %vm2992_vm7 = vmor %vm2990_vm6, %vm2991_vm5  ;;  %vm3000_vm9 = vweird.f32 %v2983_v44 }
0x170f   : > { %v2986_v29 = vmul.f32 %v4002_v16, %v2985_v51 }
0x1711   : > { %v2987_v0 = vmul.f32 0.5, %v2986_v29 }
0x1713   : > { %v2988_v49 = vsub.f32 1.5, %v2987_v0  ;;  %v4058_v0 = vld [vmem:[%s6336_s9] ss:$0 sm:$0xff] }
0x1714   : > { %v4004_v58 = vpop.eup %4003 }
0x1715   : > { %v2989_v56 = vmul.f32 %v4002_v16, %v2988_v49  ;;  %v2995_v39 = vmul.f32 %v4004_v58, %v2983_v44  ;;  %vm3001_vm8 = vweird.f32 %v4004_v58 }
0x1716   : > { %vm3002_vm10 = vmor %vm3000_vm9, %vm3001_vm8 }
0x1717   : > { %v2993_v38 = vsel %vm2992_vm7, %v4002_v16, %v2989_v56  ;;  %v2996_v4 = vmul.f32 %v4004_v58, %v2995_v39 }
0x1718   : > { %v3004_v15 = vmul.f32 %v2993_v38, %v2962_v12 }
0x1719   : > { %v2997_v21 = vmul.f32 0.5, %v2996_v4 }
0x171a   : > { %v3006_v37 = vmul.f32 %v3004_v15, %v5917_v47 }
0x171b   : > { %v2998_v50 = vsub.f32 1.5, %v2997_v21 }
0x171c   : > { %v3008_v41 = vadd.f32 %v3006_v37, %v5920_v36 }
0x171d   : > { %v2999_v28 = vmul.f32 %v4004_v58, %v2998_v50 }
0x171e   : > { %3012 = vrot.lane.b32.xlu2 %v3008_v41, %s6518_s23 }
0x171f   : > { %v3003_v34 = vsel %vm3002_vm10, %v4004_v58, %v2999_v28 }
0x1720   : > { %v3005_v63 = vmul.f32 %v3003_v34, %v2963_v35 }
0x1722   : > { %v3007_v22 = vmul.f32 %v3005_v63, %v5917_v47  ;;  %v4049_v47 = vld [vmem:[%s6491_s0] ss:$0 sm:$0xff] }
0x1724   : > { %v3009_v57 = vadd.f32 %v3007_v22, %v5920_v36 }
0x1726   : > { %3014 = vrot.lane.b32.xlu0 %v3009_v57, %s6518_s23 }
0x1778   : > { %v3013_v40 = vpop.permute.xlu2 %3012 }
0x1779   : > { %3681 = vmatmul.msk.f32.vlgmr.msrb.gmra.mxu2 %vm725_vm0, %v3013_v40 }
0x177a   : > { %3153 = vmatpush.msrb.mxu2 %v5569_v31  ;;  %v6570_v31 = vld [vmem:[#allocation54_spill] sm:$0xff] }
0x177c   : > { %3154 = vmatpush.msrb.mxu2 %v5573_v60  ;;  %v6571_v60 = vld [vmem:[#allocation55_spill] sm:$0xff] }
0x177e   : > { %3155 = vmatpush.msrb.mxu2 %v5577_v61  ;;  %v6572_v61 = vld [vmem:[#allocation56_spill] sm:$0xff] }
0x1780   : > { %3156 = vmatpush.msrb.mxu2 %v5581_v19 }
0x1782   : > { %3157 = vmatpush.msrb.mxu2 %v5585_v8 }
0x1784   : > { %3158 = vmatpush.msrb.mxu2 %v6523_v30  ;;  %v4050_v30 = vld [vmem:[%s6339_s12 + $0x38] sm:$0xff] }
0x1786   : > { %3159 = vmatpush.msrb.mxu2 %v6524_v11  ;;  %v4051_v11 = vld [vmem:[%s6339_s12 + $0x30] sm:$0xff] }
0x1788   : > { %3160 = vmatpush.msrb.mxu2 %v6525_v14  ;;  %v4052_v14 = vld [vmem:[%s6339_s12 + $0x28] sm:$0xff] }
0x178a   : > { %3161 = vmatpush.msrb.mxu2 %v6526_v55  ;;  %v4053_v55 = vld [vmem:[%s6339_s12 + $0x20] sm:$0xff] }
0x178c   : > { %3162 = vmatpush.msrb.mxu2 %v6527_v5  ;;  %v4054_v5 = vld [vmem:[%s6339_s12 + $0x18] sm:$0xff] }
0x178e   : > { %3163 = vmatpush.msrb.mxu2 %v6528_v13  ;;  %v4055_v13 = vld [vmem:[%s6339_s12 + $0x10] sm:$0xff] }
0x1790   : > { %3164 = vmatpush.msrb.mxu2 %v6529_v48  ;;  %v4056_v48 = vld [vmem:[%s6339_s12 + $0x8] sm:$0xff] }
0x1792   : > { %3165 = vmatpush.msrb.mxu2 %v6530_v42  ;;  %v4057_v42 = vld [vmem:[%s6339_s12] sm:$0xff] }
0x1794   : > { %3166 = vmatpush.msrb.mxu2 %v6570_v31 }
0x1796   : > { %3167 = vmatpush.msrb.mxu2 %v6571_v60 }
0x1798   : > { %3168 = vmatpush.msrb.mxu2 %v6572_v61  ;;  %v3015_v19 = vpop.permute.xlu0 %3014 }
0x1799   : > { %3682 = vmatmul.msk.f32.gmra.mxu2 %vm725_vm0, %v3015_v19 }
0x17fc   : > { %v3037_v8 = vpop.f32.mrf.mxu2 }
0x17fd   : > { %v3038_v36 = vadd.f32 %v4049_v47, %v3037_v8 }
0x17ff   : > { %3699 = vmatmul.msk.f32.vlgmr.msra.gmra.mxu3 %vm725_vm0, %v3038_v36  ;;  %v4060_v36 = vld [vmem:[%s6337_s10 + $0x10] sm:$0xff] }
0x1800   : > { %3420 = vmatpush.msra.mxu3 %v4050_v30  ;;  %v4061_v30 = vld [vmem:[%s6337_s10 + $0x8] sm:$0xff] }
0x1802   : > { %3421 = vmatpush.msra.mxu3 %v4051_v11  ;;  %v4062_v11 = vld [vmem:[%s6337_s10] sm:$0xff] }
0x1804   : > { %3422 = vmatpush.msra.mxu3 %v4052_v14 }
0x1806   : > { %3423 = vmatpush.msra.mxu3 %v4053_v55 }
0x1808   : > { %3424 = vmatpush.msra.mxu3 %v4054_v5 }
0x180a   : > { %3425 = vmatpush.msra.mxu3 %v4055_v13 }
0x180c   : > { %3426 = vmatpush.msra.mxu3 %v4056_v48 }
0x180e   : > { %3427 = vmatpush.msra.mxu3 %v4057_v42 }
0x181c   : > { %v3040_v53 = vpop.f32.mrf.mxu2 }
0x181d   : > { %v3041_v52 = vadd.f32 %v4049_v47, %v3040_v53  ;;  %v4059_v47 = vld [vmem:[%s6337_s10 + $0x18] sm:$0xff]  ;;  %v4063_v53 = vld [vmem:[%s6335_s8] ss:$0 sm:$0xff] }
0x181f   : > { %3716 = vmatmul.msk.f32.vlgmr.msrb.gmra.mxu1 %vm725_vm0, %v3041_v52 }
0x1827   : > { %3719 = vmatmul.msk.f32.vlgmr.msra.gmra.mxu1 %vm725_vm0, %v6153_v17 }
0x182f   : > { %3720 = vmatmul.msk.f32.gmra.mxu1 %vm725_vm0, %v6149_v6 }
0x1882   : > { %v3063_v25 = vpop.f32.mrf.mxu3 }
0x1883   : > { %v3089_v45 = vrot.slane %v3063_v25, 4 }
0x1885   : > { %v3090_v62 = vmax.f32 %v3063_v25, %v3089_v45 }
0x1887   : > { %v3091_v12 = vrot.slane %v3090_v62, 2 }
0x1889   : > { %v3092_v43 = vmax.f32 %v3090_v62, %v3091_v12 }
0x188b   : > { %v3093_v23 = vrot.slane %v3092_v43, 1 }
0x188d   : > { %v3094_v35 = vmax.f32 %v3092_v43, %v3093_v23 }
0x188f   : > { %v3101_v26 = vsub.f32 %v3063_v25, %v3094_v35 }
0x1891   : > { %v3103_v18 = vmul.f32 1.442695, %v3101_v26 }
0x1893   : > { %4005 = vpow2.f32 %v3103_v18 }
0x1899   : > { %v4006_v33 = vpop.eup %4005 }
0x189a   : > { %v3107_v24 = vrot.slane %v4006_v33, 4 }
0x189c   : > { %v3086_v54 = vpop.f32.mrf.mxu1  ;;  %v3108_v7 = vadd.f32 %v4006_v33, %v3107_v24 }
0x189d   : > { %v3095_v2 = vrot.slane %v3086_v54, 4 }
0x189e   : > { %v3109_v9 = vrot.slane %v3108_v7, 2 }
0x189f   : > { %v3096_v17 = vmax.f32 %v3086_v54, %v3095_v2 }
0x18a0   : > { %v3110_v32 = vadd.f32 %v3109_v9, %v3108_v7 }
0x18a1   : > { %v3097_v27 = vrot.slane %v3096_v17, 2 }
0x18a2   : > { %v3111_v6 = vrot.slane %v3110_v32, 1 }
0x18a3   : > { %v3098_v16 = vmax.f32 %v3096_v17, %v3097_v27 }
0x18a4   : > { %v3223_v44 = vpop.f32.mrf.mxu1  ;;  %v3112_v51 = vadd.f32 %v3111_v6, %v3110_v32 }
0x18a5   : > { %v3099_v29 = vrot.slane %v3098_v16, 1  ;;  %v3224_v49 = vadd.f32 %v4058_v0, %v3223_v44 }
0x18a6   : > { %4007 = vrcp.f32 %v3112_v51 }
0x18a7   : > { %v3100_v58 = vmax.f32 %v3098_v16, %v3099_v29  ;;  %3271 = vrot.lane.b32.xlu1 %v3224_v49, %s6551_s5 }
0x18a9   : > { %v3102_v56 = vsub.f32 %v3086_v54, %v3100_v58 }
0x18ab   : > { %v3105_v39 = vmul.f32 1.442695, %v3102_v56 }
0x18ac   : > { %v4008_v38 = vpop.eup %4007  ;;  %v3226_v4 = vpop.f32.mrf.mxu1 }
0x18ad   : > { %4009 = vpow2.f32 %v3105_v39  ;;  %v3227_v15 = vadd.f32 %v4058_v0, %v3226_v4  ;;  %v3121_v21 = vmul.f32 %v4008_v38, %v4006_v33 }
0x18af   : > { %3273 = vrot.lane.b32.xlu1 %v3227_v15, %s6551_s5  ;;  %v3123_v37 = vadd.f32 1e-08, %v3121_v21 }
0x18b1   : > { %3125 = vadd.xlane.f32.xlu2 %v3123_v37 }
0x18b3   : > { %v4010_v50 = vpop.eup %4009 }
0x18b4   : > { %v3113_v41 = vrot.slane %v4010_v50, 4 }
0x18b6   : > { %v3114_v28 = vadd.f32 %v4010_v50, %v3113_v41 }
0x18b8   : > { %v3115_v34 = vrot.slane %v3114_v28, 2 }
0x18ba   : > { %v3116_v63 = vadd.f32 %v3115_v34, %v3114_v28 }
0x18bc   : > { %v3117_v22 = vrot.slane %v3116_v63, 1 }
0x18be   : > { %v3118_v57 = vadd.f32 %v3117_v22, %v3116_v63 }
0x18c0   : > { %4011 = vrcp.f32 %v3118_v57 }
0x18c6   : > { %v4012_v40 = vpop.eup %4011 }
0x18c7   : > { %v3122_v31 = vmul.f32 %v4012_v40, %v4010_v50 }
0x18c9   : > { %v3124_v60 = vadd.f32 1e-08, %v3122_v31 }
0x18cb   : > { %3127 = vadd.xlane.f32.xlu0 %v3124_v60 }
0x1919   : > { %v3272_v27 = vpop.permute.xlu1 %3271 }
0x1921   : > { %v3274_v21 = vpop.permute.xlu1 %3273 }
0x1924   : > { %v3126_v61 = vpop.xlane.xlu2 %3125 }
0x1925   : > { %4013 = vrcp.f32 %v3126_v61 }
0x192b   : > { %v4014_v19 = vpop.eup %4013 }
0x192c   : > { %v3131_v8 = vmul.f32 %v4014_v19, %v3123_v37 }
0x192e   : > { %3149 = vmatmul.f32.vlgmr.msra.gmra.mxu2 %v3131_v8 }
0x192f   : > { %3393 = vmatpush.msra.mxu2 %v4059_v47 }
0x1931   : > { %3394 = vmatpush.msra.mxu2 %v4060_v36 }
0x1933   : > { %3395 = vmatpush.msra.mxu2 %v4061_v30 }
0x1935   : > { %3396 = vmatpush.msra.mxu2 %v4062_v11 }
0x193e   : > { %v3128_v14 = vpop.xlane.xlu0 %3127 }
0x193f   : > { %4015 = vrcp.f32 %v3128_v14 }
0x1945   : > { %v4016_v55 = vpop.eup %4015 }
0x1946   : > { %v3132_v5 = vmul.f32 %v4016_v55, %v3124_v60 }
0x1948   : > { %3169 = vmatmul.f32.vlgmr.msrb.gmra.mxu2 %v3132_v5 }
0x19b1   : > { %v3150_v13 = vpop.f32.mrf.mxu2 }
0x19b2   : > { %3717 = vmatmul.msk.f32.vlgmr.msrb.gmra.mxu3 %vm725_vm0, %v3150_v13 }
0x19cb   : > { %v3170_v48 = vpop.f32.mrf.mxu2 }
0x19cc   : > { %3718 = vmatmul.msk.f32.gmra.mxu3 %vm725_vm0, %v3170_v48 }
0x1a35   : > { %v3196_v42 = vpop.f32.mrf.mxu3 }
0x1a36   : > { %v3197_v52 = vadd.f32 %v4063_v53, %v3196_v42 }
0x1a38   : > { %v3229_v25 = vadd.f32 %v3224_v49, %v3197_v52 }
0x1a3a   : > { %v3721_v45 = vmul.f32 -1.442695, %v3229_v25 }
0x1a3c   : > { %4017 = vpow2.f32 %v3721_v45 }
0x1a42   : > { %v4018_v62 = vpop.eup %4017 }
0x1a43   : > { %v3237_v12 = vadd.f32 1.0, %v4018_v62 }
0x1a45   : > { %4019 = vrcp.f32 %v3237_v12  ;;  %v3250_v18 = vand.u32 2147483648, %v3237_v12  ;;  %v3248_v54 = vand.u32 2147483647, %v3237_v12  ;;  %vm3244_vm12 = vweird.f32 %v3237_v12 }
0x1a47   : > { %v3251_v9 = vor.u32 1.1754944e-38, %v3250_v18  ;;  %vm3249_vm15 = vcmp.eq.f32.partialorder %v3248_v54, 8.507059e+37 }
0x1a4b   : > { %v4020_v43 = vpop.eup %4019 }
0x1a4c   : > { %v3240_v23 = vmul.f32 %v4020_v43, %v3237_v12  ;;  %vm3245_vm11 = vweird.f32 %v4020_v43 }
0x1a4d   : > { %vm3246_vm14 = vmor %vm3244_vm12, %vm3245_vm11 }
0x1a4e   : > { %v3241_v35 = vsub.f32 1.0, %v3240_v23 }
0x1a4f   : > { %v3199_v26 = vpop.f32.mrf.mxu3 }
0x1a50   : > { %v3200_v33 = vadd.f32 %v4063_v53, %v3199_v26  ;;  %v3242_v24 = vmul.f32 %v4020_v43, %v3241_v35 }
0x1a52   : > { %v3230_v7 = vadd.f32 %v3227_v15, %v3200_v33  ;;  %v3243_v2 = vadd.f32 %v4020_v43, %v3242_v24 }
0x1a54   : > { %v3722_v17 = vmul.f32 -1.442695, %v3230_v7  ;;  %v3247_v32 = vsel %vm3246_vm14, %v4020_v43, %v3243_v2 }
0x1a55   : > { %v3252_v6 = vsel %vm3249_vm15, %v3251_v9, %v3247_v32 }
0x1a56   : > { %4021 = vpow2.f32 %v3722_v17  ;;  %v3277_v16 = vmul.f32 %v3272_v27, %v3252_v6  ;;  %v3291_v40 = vsub.f32 1.0, %v3252_v6  ;;  %v3303_v60 = vmul.f32 %v3252_v6, %v6139_v10 }
0x1a58   : > { %3281 = vrot.lane.b32.xlu1 %v3277_v16, %s6551_s5 }
0x1a5c   : > { %v4022_v44 = vpop.eup %4021 }
0x1a5d   : > { %v3238_v51 = vadd.f32 1.0, %v4022_v44 }
0x1a5f   : > { %4023 = vrcp.f32 %v3238_v51  ;;  %v3265_v58 = vand.u32 2147483648, %v3238_v51  ;;  %v3263_v39 = vand.u32 2147483647, %v3238_v51  ;;  %vm3259_vm2 = vweird.f32 %v3238_v51 }
0x1a61   : > { %v3266_v4 = vor.u32 1.1754944e-38, %v3265_v58  ;;  %vm3264_vm4 = vcmp.eq.f32.partialorder %v3263_v39, 8.507059e+37 }
0x1a65   : > { %v4024_v29 = vpop.eup %4023 }
0x1a66   : > { %v3255_v0 = vmul.f32 %v4024_v29, %v3238_v51  ;;  %vm3260_vm1 = vweird.f32 %v4024_v29 }
0x1a67   : > { %vm3261_vm3 = vmor %vm3259_vm2, %vm3260_vm1 }
0x1a68   : > { %v3256_v49 = vsub.f32 1.0, %v3255_v0 }
0x1a6a   : > { %v3257_v56 = vmul.f32 %v4024_v29, %v3256_v49 }
0x1a6c   : > { %v3258_v38 = vadd.f32 %v4024_v29, %v3257_v56 }
0x1a6e   : > { %v3262_v15 = vsel %vm3261_vm3, %v4024_v29, %v3258_v38 }
0x1a6f   : > { %v3267_v37 = vsel %vm3264_vm4, %v3266_v4, %v3262_v15 }
0x1a70   : > { %v3278_v50 = vmul.f32 %v3274_v21, %v3267_v37  ;;  %v3292_v47 = vsub.f32 1.0, %v3267_v37  ;;  %v3304_v30 = vmul.f32 %v3267_v37, %v6145_v46 }
0x1a72   : > { %3283 = vrot.lane.b32.xlu2 %v3278_v50, %s6551_s5 }
0x1aca   : > { %v3282_v41 = vpop.permute.xlu1 %3281 }
0x1acb   : > { %v3287_v28 = vadd.f32 %v3282_v41, %v3197_v52  ;;  %v4064_v41 = vld [vmem:[%s6338_s11] ss:$0 sm:$0xff] }
0x1acc   : > { %v3284_v34 = vpop.permute.xlu2 %3283 }
0x1acd   : > { %4025 = vtanh.f32 %v3287_v28  ;;  %v3288_v63 = vadd.f32 %v3284_v34, %v3200_v33 }
0x1acf   : > { %4027 = vtanh.f32 %v3288_v63 }
0x1ad3   : > { %v4026_v22 = vpop.eup %4025 }
0x1ad4   : > { %3295 = vrot.lane.b32.xlu0 %v4026_v22, %s6518_s23 }
0x1ad5   : > { %v4028_v57 = vpop.eup %4027 }
0x1ad6   : > { %3297 = vrot.lane.b32.xlu1 %v4028_v57, %s6518_s23 }
0x1b46   : > { %v3296_v31 = vpop.permute.xlu0 %3295 }
0x1b47   : > { %v3301_v61 = vmul.f32 %v3296_v31, %v3291_v40 }
0x1b48   : > { %v3298_v8 = vpop.permute.xlu1 %3297 }
0x1b49   : > { %v6251_v19 = vadd.f32 %v3303_v60, %v3301_v61  ;;  %v3302_v36 = vmul.f32 %v3298_v8, %v3292_v47 }
0x1b4b   : > { %3309 = vrot.lane.b32.xlu1 %v6251_v19, %s6518_s23  ;;  %v6256_v11 = vadd.f32 %v3304_v30, %v3302_v36 }
0x1b53   : > { %3311 = vrot.lane.b32.xlu1 %v6256_v11, %s6518_s23 }
0x1bbd   : > { %v3310_v14 = vpop.permute.xlu1 %3309 }
0x1bbe   : > { %v3315_v55 = vsel %vm725_vm0, %v3310_v14, 0.0 }
0x1bbf   : > { %3316 = vadd.xlane.f32.xlu2 %v3315_v55 }
0x1bc5   : > { %v3312_v10 = vpop.permute.xlu1 %3311 }
0x1bc6   : > { %v3318_v5 = vsel %vm725_vm0, %v3312_v10, 0.0 }
0x1bc7   : > { %3319 = vadd.xlane.f32.xlu0 %v3318_v5 }
0x1c32   : > { %v3317_v13 = vpop.xlane.xlu2 %3316 }
0x1c33   : > { %v3321_v48 = vmul.f32 %v3317_v13, %v4314_v20 }
0x1c35   : > { %v3323_v42 = vsub.f32 %v6251_v19, %v3321_v48 }
0x1c37   : > { %v3325_v53 = vmul.f32 %v3323_v42, %v3323_v42 }
0x1c39   : > { %3329 = vrot.lane.b32.xlu1 %v3325_v53, %s6518_s23 }
0x1c3a   : > { %v3320_v46 = vpop.xlane.xlu0 %3319 }
0x1c3b   : > { %v3322_v52 = vmul.f32 %v3320_v46, %v4314_v20 }
0x1c3d   : > { %v3324_v25 = vsub.f32 %v6256_v11, %v3322_v52 }
0x1c3f   : > { %v3326_v45 = vmul.f32 %v3324_v25, %v3324_v25 }
0x1c41   : > { %3331 = vrot.lane.b32.xlu1 %v3326_v45, %s6518_s23 }
0x1cab   : > { %v3330_v62 = vpop.permute.xlu1 %3329 }
0x1cac   : > { %v3335_v12 = vsel %vm725_vm0, %v3330_v62, 0.0 }
0x1cad   : > { %3336 = vadd.xlane.f32.xlu1 %v3335_v12 }
0x1cb3   : > { %v3332_v43 = vpop.permute.xlu1 %3331 }
0x1cb4   : > { %v3338_v23 = vsel %vm725_vm0, %v3332_v43, 0.0 }
0x1cb5   : > { %3339 = vadd.xlane.f32.xlu2 %v3338_v23 }
0x1d20   : > { %v3337_v35 = vpop.xlane.xlu1 %3336 }
0x1d21   : > { %v3341_v26 = vmul.f32 %v3337_v35, %v4314_v20 }
0x1d23   : > { %v3343_v18 = vadd.f32 1e-05, %v3341_v26 }
0x1d25   : > { %4029 = vrsqrt.f32 %v3343_v18  ;;  %vm3351_vm6 = vweird.f32 %v3343_v18 }
0x1d28   : > { %v3340_v33 = vpop.xlane.xlu2 %3339 }
0x1d29   : > { %v3342_v24 = vmul.f32 %v3340_v33, %v4314_v20 }
0x1d2b   : > { %v4030_v54 = vpop.eup %4029  ;;  %v3344_v7 = vadd.f32 1e-05, %v3342_v24 }
0x1d2c   : > { %v3346_v2 = vmul.f32 %v4030_v54, %v3343_v18  ;;  %vm3352_vm5 = vweird.f32 %v4030_v54 }
0x1d2d   : > { %4031 = vrsqrt.f32 %v3344_v7  ;;  %vm3353_vm7 = vmor %vm3351_vm6, %vm3352_vm5  ;;  %vm3361_vm9 = vweird.f32 %v3344_v7 }
0x1d2e   : > { %v3347_v9 = vmul.f32 %v4030_v54, %v3346_v2 }
0x1d30   : > { %v3348_v17 = vmul.f32 0.5, %v3347_v9 }
0x1d32   : > { %v3349_v32 = vsub.f32 1.5, %v3348_v17 }
0x1d33   : > { %v4032_v27 = vpop.eup %4031 }
0x1d34   : > { %v3350_v6 = vmul.f32 %v4030_v54, %v3349_v32  ;;  %v3356_v16 = vmul.f32 %v4032_v27, %v3344_v7  ;;  %vm3362_vm8 = vweird.f32 %v4032_v27 }
0x1d35   : > { %vm3363_vm10 = vmor %vm3361_vm9, %vm3362_vm8 }
0x1d36   : > { %v3354_v44 = vsel %vm3353_vm7, %v4030_v54, %v3350_v6  ;;  %v3357_v51 = vmul.f32 %v4032_v27, %v3356_v16 }
0x1d37   : > { %v3365_v29 = vmul.f32 %v3354_v44, %v3323_v42 }
0x1d38   : > { %v3358_v0 = vmul.f32 0.5, %v3357_v51 }
0x1d39   : > { %v3367_v49 = vmul.f32 %v3365_v29, %v5846_v3 }
0x1d3a   : > { %v3359_v20 = vsub.f32 1.5, %v3358_v0 }
0x1d3b   : > { %v3369_v58 = vadd.f32 %v3367_v49, %v5849_v1 }
0x1d3c   : > { %v3360_v56 = vmul.f32 %v4032_v27, %v3359_v20 }
0x1d3d   : > { %3373 = vrot.lane.b32.xlu0 %v3369_v58, %s6518_s23 }
0x1d3e   : > { %v3364_v39 = vsel %vm3363_vm10, %v4032_v27, %v3360_v56 }
0x1d3f   : > { %v3366_v38 = vmul.f32 %v3364_v39, %v3324_v25 }
0x1d41   : > { %v3368_v4 = vmul.f32 %v3366_v38, %v5846_v3 }
0x1d43   : > { %v3370_v15 = vadd.f32 %v3368_v4, %v5849_v1 }
0x1d45   : > { %3375 = vrot.lane.b32.xlu2 %v3370_v15, %s6518_s23 }
0x1d9f   : > { %v3376_v37 = vpop.permute.xlu2 %3375 }
0x1daf   : > { %v3374_v21 = vpop.permute.xlu0 %3373 }
0x1db0   : > { %3723 = vmatmul.msk.f32.vlgmr.msra.gmra.mxu2 %vm725_vm0, %v3374_v21 }
0x1db8   : > { %3724 = vmatmul.msk.f32.gmra.mxu2 %vm725_vm0, %v3376_v37 }
0x1e33   : > { %v3398_v50 = vpop.f32.mrf.mxu2 }
0x1e34   : > { %v3399_v28 = vadd.f32 %v4064_v41, %v3398_v50 }
0x1e36   : > { %v3404_v34 = vmax.f32 %v3399_v28, 0.0 }
0x1e38   : > { %3725 = vmatmul.msk.f32.vlgmr.msra.gmra.mxu3 %vm2392_vm13, %v3404_v34 }
0x1e3b   : > { %v3401_v3 = vpop.f32.mrf.mxu2 }
0x1e3c   : > { %v3402_v1 = vadd.f32 %v4064_v41, %v3401_v3 }
0x1e3e   : > { %v3405_v63 = vmax.f32 %v3402_v1, 0.0 }
0x1e40   : > { %3726 = vmatmul.msk.f32.gmra.mxu3 %vm2392_vm13, %v3405_v63 }
0x1ebb   : > { %v3429_v22 = vpop.f32.mrf.mxu3 }
0x1ebc   : > { %3437 = vrot.lane.b32.xlu0 %v3429_v22, %s6569_s27 }
0x1ec3   : > { %v3432_v57 = vpop.f32.mrf.mxu3 }
0x1ec4   : > { %3439 = vrot.lane.b32.xlu1 %v3432_v57, %s6569_s27  ;;  %s3733_s27 = sshll.u32 %s4261_s2, 4 }
0x1ec5   : > { %s3469_s6 = scalar_lea.hbm %s6347_s20, %s3733_s27 }
0x1ec6   : > { %s3472_s7 = sshll.u32 %s3469_s6, 4  ;;  %s3473_s7 = int_to_ptr.hbm [resolvable:$true] %s3472_s7 }
0x1ec7   : > { %s4079_s0 = sshra.s32 %s3473_s7, 4  ;;  %s4080_s0 = int_to_ptr.hbm [resolvable:$true] %s4079_s0 }
0x1ec8   : > { %s4081_s5 = scalar_lea.hbm %s4080_s0, 16  ;;  %p4086_p0 = scmp.lt.s32.totalorder %s4080_s0, %s6347_s20 }
0x1ec9   : > { %p4082_p11 = scmp.ne.s32.totalorder %s4080_s0, %s4081_s5  ;;  %p4087_p1 = scmp.lt.s32.totalorder %s4085_s30, %s4081_s5 }
0x1ecb   : > { %p4083_p12 = pnand %p4082_p11, %p4278_p5  ;;  %p4088_p2 = por %p4087_p1, %p4086_p0 }
0x1ecd   : > { %p4084_p13 = pneg %p4083_p12 }
0x1ecf   : > { %p4089_p3 = pnand %p4088_p2, %p4084_p13 }
0x1f2e   : > { %v3438_v40 = vpop.permute.xlu0 %3437 }
0x1f2f   : > { %v3443_v31 = vadd.f32 %v3438_v40, %v6251_v19 }
0x1f31   : > { %v3445_v60 = vadd.f32 %v3443_v31, %v5881_v59 }
0x1f33   : > { %3449 = vrot.lane.b32.xlu0 %v3445_v60, %s6518_s23 }
0x1f36   : > { %v3440_v61 = vpop.permute.xlu1 %3439 }
0x1f37   : > { %v3444_v8 = vadd.f32 %v3440_v61, %v6256_v11 }
0x1f39   : > { %v3446_v47 = vadd.f32 %v3444_v8, %v5881_v59 }
0x1f3b   : > { %3451 = vrot.lane.b32.xlu2 %v3446_v47, %s6518_s23  ;;  %s3458_s23 = scalar_lea.sflag [#allocation3], %s639_s21 }
0x1f95   : > { %v3452_v36 = vpop.permute.xlu2 %3451 }
0x1f96   : > { %3456 = vst.msk [vmem:[%s641_s13 + $0x8] sm:$0xff] %vm725_vm0, %v3452_v36 }
0x1fa5   : > { %v3450_v19 = vpop.permute.xlu0 %3449 }
0x1fa6   : > { %3455 = vst.msk [vmem:[%s641_s13] sm:$0xff] %vm725_vm0, %v3450_v19 }
0x1fa7   : > { %4092 = shalt.err (!%p4089_p3)
}
0x1fa8   : > { %s4133_s21 = smov 128   ;;  %s4134_s13 = smov 8  }
0x1fa9   : > { %3734 = dma.vmem_to_hbm [thread:$0]  (%p4278_p5), %s3471_s29, 256, %s3473_s7, %s3458_s23, %s4133_s21, %s4133_s21, %s4134_s13  }
0x1faa PF: > { %s6573_s28 = sld [smem:[#allocation5_spill]]  ;;  %p3740_p4 = scmp.ge.s32.totalorder %s4127_s24, 2 }
0x1fac   : > { %p3737_p7 = pnand %p3740_p4, %p4282_p6 }
0x1fae   : > { %p3738_p8 = pneg %p3737_p7 }
0x1fb0   : > { %s3487_s2 = sand.u32 1, %s6573_s28  }
0x1fb1   : > { %s3488_s1 = scalar_lea.sflag [#allocation3], %s3487_s2 }
0x1fb2   : > { %4110 = dma.done.wait (%p3738_p8), %s3488_s1, 256  }
0x1fb3   : > { %4112 = vsyncadd (%p3738_p8), %s3488_s1, 4294967040  ;;  %s6575_s24 = sld [smem:[#allocation7_spill]]  ;;  %s6578_s1 = smov %s4119_s22 }
0x1fb4   : > { %s6576_s0 = sld [smem:[#allocation6_spill]] }
0x1fb5   : > { %s6577_s23 = sld [smem:[#allocation8_spill]] }
0x1fb9   : > { %p30_p9 = scmp.ge.s32.totalorder %s6575_s24, 4  }
0x1fba   : > { %s6579_s22 = smov %s6576_s0 }
0x1fbb   :  { %32 = sbr.rel (!%p30_p9) target bundleno = 13 (0xd), region = 138 }
0x1fc0   :  { %3494 = vsyncpa [#allocation3], 1 }
0x1fc1   :  { %3496 = vsyncpa [#allocation3 + $0x1], 1 }

</bundles_post_ra>
